<compile_context>
chip_gen: v7x
topology: tpu7x:2x2x1
jax: 0.10.0
libtpu: 0.0.40
codegen_flags: <defaults>
</compile_context>

<pallas_src>
import jax
import jax.numpy as jnp
import numpy as np
from jax.experimental import pallas as pl
from jax.experimental.pallas import tpu as pltpu

N, C, H, W = 1, 488, 7, 7
EPS = 1e-5

HW = H * W          # 49 real spatial positions
HWP = 56            # rows padded to a sublane multiple (8)
CP = 512            # channels padded to a lane multiple (128)
TAPS = 9            # 3x3 depthwise taps
KP = 512            # contraction dim of the depthwise matmul (9*56 = 504 -> 512)
SUB = 8             # one sublane tile of rows

N_PW_CHUNKS = 4             # 1x1-conv weight DMA'd as 4 contiguous row slabs
PW_CHUNK = CP // N_PW_CHUNKS  # 128 rows (256 KiB f32) per slab


def _build_shift_matrix():
    """T[p, k*HWP + q] = 1 iff spatial position q is tap k's valid source for p.

    Encodes both the 3x3 spatial shifts and the pad=1 boundary masking, so the
    whole depthwise convolution becomes one MXU matmul `T @ (stacked per-tap-
    scaled inputs)`.
    """
    t = np.zeros((HWP, KP), np.float32)
    for dy in range(3):
        for dx in range(3):
            k = dy * 3 + dx
            for h in range(H):
                for w in range(W):
                    hs, ws = h + dy - 1, w + dx - 1
                    if 0 <= hs < H and 0 <= ws < W:
                        t[h * W + w, k * HWP + hs * W + ws] = 1.0
    return t


_T_NP = _build_shift_matrix()


def _kernel(x_ref, t_ref, dw_ref, gamma_ref, beta_ref, pw_hbm_ref, o_ref,
            x2_ref, pw_vmem_ref, pw_sems):
    # ---- kick off the 1x1-conv weight DMA immediately, as 4 contiguous row ----
    # ---- slabs, so it overlaps the ReLU/depthwise/BN work and the final    ----
    # ---- matmul only ever waits on the slab it is about to consume.        ----
    pw_copies = []
    for j in range(N_PW_CHUNKS):
        lo = j * PW_CHUNK
        cp = pltpu.make_async_copy(
            pw_hbm_ref.at[pl.ds(lo, PW_CHUNK), :],
            pw_vmem_ref.at[pl.ds(lo, PW_CHUNK), :],
            pw_sems.at[j])
        cp.start()
        pw_copies.append(cp)

    # ---- ReLU (VPU). Zero padding is preserved since ReLU(0) == 0. ----
    xr = jnp.maximum(x_ref[...], 0.0)                         # (HWP, CP) f32

    # ---- depthwise 3x3 conv (pad=1) as a single MXU matmul ----
    # Zero the unused tail rows of the stacked operand: T's matching columns
    # are zero, but 0 * (uninitialized VMEM NaN) would still poison the product.
    x2_ref[TAPS * HWP:KP, :] = jnp.zeros((KP - TAPS * HWP, CP), jnp.float32)
    # Stack nine per-tap-scaled copies of the input. Every store is 8-sublane
    # aligned and 512 lanes wide.  The per-tap per-channel scale is broadcast
    # ONCE to a single 8-row sublane tile and reused for all 7 row blocks
    # (avoids 9 full (1,CP)->(HWP,CP) broadcast expansions).
    for k in range(TAPS):
        dwk = jnp.broadcast_to(dw_ref[k:k + 1, :], (SUB, CP))   # (8, CP)
        base = k * HWP
        for s in range(0, HWP, SUB):
            x2_ref[base + s:base + s + SUB, :] = xr[s:s + SUB, :] * dwk
    # T is stored in bf16 (0/1 exact); upcast and contract on the MXU.
    acc = jnp.dot(t_ref[...].astype(jnp.float32), x2_ref[...],
                  preferred_element_type=jnp.float32)         # (HWP, CP)

    # ---- BatchNorm2d (training-mode batch stats, biased variance), folded ----
    # ---- into one per-channel affine.  Two-pass variance for robustness;  ----
    # ---- padded rows 49..55 of `acc` are exactly zero, so they contribute ----
    # ---- (0 - mean)^2 = mean^2 each to the raw sum of squares: subtract   ----
    # ---- that closed-form correction instead of masking.                  ----
    cnt = float(HW)
    mean = jnp.sum(acc, axis=0, keepdims=True) / cnt          # (1, CP)
    diff = acc - mean
    var = (jnp.sum(diff * diff, axis=0, keepdims=True)
           - float(HWP - HW) * mean * mean) / cnt
    scale = gamma_ref[...] * jax.lax.rsqrt(var + EPS)
    bias = beta_ref[...] - mean * scale
    y = acc * scale + bias                                    # (HWP, CP)
    # (padded rows of `y` equal `bias`; they feed the matmul below but are
    #  sliced away by the wrapper.)

    # ---- 1x1 conv == channel matmul on the MXU, lane-dense 512-wide output ----
    # Four accumulating matmuls, each gated only on its own weight slab.
    for j in range(N_PW_CHUNKS):
        lo = j * PW_CHUNK
        pw_copies[j].wait()
        part = jnp.dot(y[:, lo:lo + PW_CHUNK],
                       pw_vmem_ref[pl.ds(lo, PW_CHUNK), :],
                       preferred_element_type=jnp.float32)
        if j == 0:
            o_ref[...] = part
        else:
            o_ref[...] += part


def prepare_params(dw_w_oihw, gamma, beta, pw_w_oihw):
    """One-time parameter relayout/padding (hoisted OUT of the per-call path)."""
    f32 = jnp.float32
    # depthwise weights (C,1,3,3) -> (9, C) -> (9, CP); tap index k = dy*3 + dx
    dw = jnp.transpose(dw_w_oihw[:, 0, :, :].reshape(C, TAPS), (1, 0)).astype(f32)
    dw = jnp.pad(dw, ((0, 0), (0, CP - C)))
    # pointwise weights (Cout,Cin,1,1) -> (Cin, Cout) -> (CP, CP), kept f32
    pw = jnp.transpose(pw_w_oihw[:, :, 0, 0], (1, 0)).astype(f32)
    pw = jnp.pad(pw, ((0, CP - C), (0, CP - C)))
    g = jnp.pad(gamma.astype(f32), (0, CP - C)).reshape(1, CP)
    b = jnp.pad(beta.astype(f32), (0, CP - C)).reshape(1, CP)
    # 0/1 shift matrix: exact in bfloat16 -> half the per-call HBM bytes.
    t = jnp.asarray(_T_NP, dtype=jnp.bfloat16)
    return t, dw, g, b, pw


@jax.jit
def module_forward(x_nchw, t_mat, dw, g, b, pw):
    f32 = jnp.float32
    # activations: NCHW -> (H*W, C), zero-padded to (HWP, CP)
    x2d = jnp.transpose(x_nchw[0], (1, 2, 0)).reshape(HW, C).astype(f32)
    x2d = jnp.pad(x2d, ((0, HWP - HW), (0, CP - C)))

    vmem = pl.BlockSpec(memory_space=pltpu.MemorySpace.VMEM)
    out2d = pl.pallas_call(
        _kernel,
        out_shape=jax.ShapeDtypeStruct((HWP, CP), f32),
        in_specs=[vmem, vmem, vmem, vmem, vmem,
                  pl.BlockSpec(memory_space=pl.ANY)],   # pw stays in HBM; manual DMA
        out_specs=vmem,
        scratch_shapes=[
            pltpu.VMEM((KP, CP), f32),                  # stacked per-tap-scaled input
            pltpu.VMEM((CP, CP), f32),                  # 1x1-conv weights (DMA dest)
            pltpu.SemaphoreType.DMA((N_PW_CHUNKS,)),    # per-slab DMA semaphores
        ],
    )(x2d, t_mat, dw, g, b, pw)

    # (HWP, CP) -> (1, C, H, W)
    out = out2d[:HW, :C].reshape(H, W, C)
    return jnp.transpose(out, (2, 0, 1))[None]


def reference_forward(x_nchw, dw_w, gamma, beta, pw_w):
    """Pure-JAX reference (mirrors the PyTorch module in training mode)."""
    x = jnp.maximum(x_nchw, 0.0)
    y = jax.lax.conv_general_dilated(
        x, dw_w, window_strides=(1, 1), padding=((1, 1), (1, 1)),
        dimension_numbers=("NCHW", "OIHW", "NCHW"), feature_group_count=C)
    mean = jnp.mean(y, axis=(0, 2, 3), keepdims=True)
    var = jnp.var(y, axis=(0, 2, 3), keepdims=True)
    yn = (y - mean) / jnp.sqrt(var + EPS)
    yn = yn * gamma[None, :, None, None] + beta[None, :, None, None]
    out = jax.lax.conv_general_dilated(
        yn, pw_w, window_strides=(1, 1), padding="VALID",
        dimension_numbers=("NCHW", "OIHW", "NCHW"))
    return out


if __name__ == "__main__":
    key = jax.random.PRNGKey(0)
    k_x, k_dw, k_pw = jax.random.split(key, 3)

    # input x301: (1, 488, 7, 7)
    x = jax.random.normal(k_x, (N, C, H, W), dtype=jnp.float32)

    # deterministic parameter init (shapes from the module's __init__)
    dw_w = jax.random.normal(k_dw, (C, 1, 3, 3), dtype=jnp.float32) * 0.1   # conv2d47
    pw_w = jax.random.normal(k_pw, (C, C, 1, 1), dtype=jnp.float32) * 0.05  # conv2d48
    gamma = jnp.ones((C,), jnp.float32)   # batchnorm2d47.weight (PyTorch default)
    beta = jnp.zeros((C,), jnp.float32)   # batchnorm2d47.bias   (PyTorch default)

    # one-time parameter relayout (off the per-call hot path)
    params = prepare_params(dw_w, gamma, beta, pw_w)

    out = jax.block_until_ready(module_forward(x, *params))
    ref = jax.block_until_ready(reference_forward(x, dw_w, gamma, beta, pw_w))

    assert out.shape == (N, C, H, W)
    np.testing.assert_allclose(np.asarray(out), np.asarray(ref), rtol=1e-4, atol=1e-4)

    print("KERNEL_OK")
</pallas_src>

<mosaic_0001>
module attributes {stable_mosaic.version = 11 : i64} {
  func.func @_kernel(%arg0: memref<56x512xf32, #tpu.memory_space<vmem>>, %arg1: memref<56x512xbf16, #tpu.memory_space<vmem>>, %arg2: memref<9x512xf32, #tpu.memory_space<vmem>>, %arg3: memref<1x512xf32, #tpu.memory_space<vmem>>, %arg4: memref<1x512xf32, #tpu.memory_space<vmem>>, %arg5: memref<512x512xf32, #tpu.memory_space<any>>, %arg6: memref<56x512xf32, #tpu.memory_space<vmem>>, %arg7: memref<512x512xf32, #tpu.memory_space<vmem>>, %arg8: memref<512x512xf32, #tpu.memory_space<vmem>>, %arg9: memref<4x!tpu.dma_semaphore, #tpu.memory_space<semaphore_mem>>) attributes {dimension_semantics = [], scalar_prefetch = 0 : i64, scratch_operands = 3 : i64, tpu.core_type = #tpu.core_type<tc>} {
    %c0_i32 = arith.constant 0 : i32
    %c0_i32_0 = arith.constant 0 : i32
    %c0_i32_1 = arith.constant 0 : i32
    %0 = tpu.memref_slice %arg5[%c0_i32_0, %c0_i32_1] : memref<512x512xf32, #tpu.memory_space<any>> -> memref<128x512xf32, #tpu.memory_space<any>>
    %c0_i32_2 = arith.constant 0 : i32
    %c0_i32_3 = arith.constant 0 : i32
    %1 = tpu.memref_slice %arg8[%c0_i32_2, %c0_i32_3] : memref<512x512xf32, #tpu.memory_space<vmem>> -> memref<128x512xf32, #tpu.memory_space<vmem>>
    %2 = tpu.memref_slice %arg9[%c0_i32] : memref<4x!tpu.dma_semaphore, #tpu.memory_space<semaphore_mem>> -> memref<1x!tpu.dma_semaphore, #tpu.memory_space<semaphore_mem>>
    %3 = tpu.memref_squeeze %2 : memref<1x!tpu.dma_semaphore, #tpu.memory_space<semaphore_mem>> -> memref<!tpu.dma_semaphore, #tpu.memory_space<semaphore_mem>>
    tpu.enqueue_dma source(%0 : memref<128x512xf32, #tpu.memory_space<any>>) target(%1 : memref<128x512xf32, #tpu.memory_space<vmem>>) target_semaphore(%3 : memref<!tpu.dma_semaphore, #tpu.memory_space<semaphore_mem>>)
    %c1_i32 = arith.constant 1 : i32
    %c128_i32 = arith.constant 128 : i32
    %c0_i32_4 = arith.constant 0 : i32
    %4 = tpu.memref_slice %arg5[%c128_i32, %c0_i32_4] : memref<512x512xf32, #tpu.memory_space<any>> -> memref<128x512xf32, #tpu.memory_space<any>>
    %c128_i32_5 = arith.constant 128 : i32
    %c0_i32_6 = arith.constant 0 : i32
    %5 = tpu.memref_slice %arg8[%c128_i32_5, %c0_i32_6] : memref<512x512xf32, #tpu.memory_space<vmem>> -> memref<128x512xf32, #tpu.memory_space<vmem>>
    %6 = tpu.memref_slice %arg9[%c1_i32] : memref<4x!tpu.dma_semaphore, #tpu.memory_space<semaphore_mem>> -> memref<1x!tpu.dma_semaphore, #tpu.memory_space<semaphore_mem>>
    %7 = tpu.memref_squeeze %6 : memref<1x!tpu.dma_semaphore, #tpu.memory_space<semaphore_mem>> -> memref<!tpu.dma_semaphore, #tpu.memory_space<semaphore_mem>>
    tpu.enqueue_dma source(%4 : memref<128x512xf32, #tpu.memory_space<any>>) target(%5 : memref<128x512xf32, #tpu.memory_space<vmem>>) target_semaphore(%7 : memref<!tpu.dma_semaphore, #tpu.memory_space<semaphore_mem>>)
    %c2_i32 = arith.constant 2 : i32
    %c256_i32 = arith.constant 256 : i32
    %c0_i32_7 = arith.constant 0 : i32
    %8 = tpu.memref_slice %arg5[%c256_i32, %c0_i32_7] : memref<512x512xf32, #tpu.memory_space<any>> -> memref<128x512xf32, #tpu.memory_space<any>>
    %c256_i32_8 = arith.constant 256 : i32
    %c0_i32_9 = arith.constant 0 : i32
    %9 = tpu.memref_slice %arg8[%c256_i32_8, %c0_i32_9] : memref<512x512xf32, #tpu.memory_space<vmem>> -> memref<128x512xf32, #tpu.memory_space<vmem>>
    %10 = tpu.memref_slice %arg9[%c2_i32] : memref<4x!tpu.dma_semaphore, #tpu.memory_space<semaphore_mem>> -> memref<1x!tpu.dma_semaphore, #tpu.memory_space<semaphore_mem>>
    %11 = tpu.memref_squeeze %10 : memref<1x!tpu.dma_semaphore, #tpu.memory_space<semaphore_mem>> -> memref<!tpu.dma_semaphore, #tpu.memory_space<semaphore_mem>>
    tpu.enqueue_dma source(%8 : memref<128x512xf32, #tpu.memory_space<any>>) target(%9 : memref<128x512xf32, #tpu.memory_space<vmem>>) target_semaphore(%11 : memref<!tpu.dma_semaphore, #tpu.memory_space<semaphore_mem>>)
    %c3_i32 = arith.constant 3 : i32
    %c384_i32 = arith.constant 384 : i32
    %c0_i32_10 = arith.constant 0 : i32
    %12 = tpu.memref_slice %arg5[%c384_i32, %c0_i32_10] : memref<512x512xf32, #tpu.memory_space<any>> -> memref<128x512xf32, #tpu.memory_space<any>>
    %c384_i32_11 = arith.constant 384 : i32
    %c0_i32_12 = arith.constant 0 : i32
    %13 = tpu.memref_slice %arg8[%c384_i32_11, %c0_i32_12] : memref<512x512xf32, #tpu.memory_space<vmem>> -> memref<128x512xf32, #tpu.memory_space<vmem>>
    %14 = tpu.memref_slice %arg9[%c3_i32] : memref<4x!tpu.dma_semaphore, #tpu.memory_space<semaphore_mem>> -> memref<1x!tpu.dma_semaphore, #tpu.memory_space<semaphore_mem>>
    %15 = tpu.memref_squeeze %14 : memref<1x!tpu.dma_semaphore, #tpu.memory_space<semaphore_mem>> -> memref<!tpu.dma_semaphore, #tpu.memory_space<semaphore_mem>>
    tpu.enqueue_dma source(%12 : memref<128x512xf32, #tpu.memory_space<any>>) target(%13 : memref<128x512xf32, #tpu.memory_space<vmem>>) target_semaphore(%15 : memref<!tpu.dma_semaphore, #tpu.memory_space<semaphore_mem>>)
    %c0 = arith.constant 0 : index
    %c0_13 = arith.constant 0 : index
    %16 = vector.load %arg0[%c0, %c0_13] : memref<56x512xf32, #tpu.memory_space<vmem>>, vector<56x512xf32>
    %cst = arith.constant 0.000000e+00 : f32
    %17 = vector.broadcast %cst : f32 to vector<56x512xf32>
    %18 = arith.maximumf %16, %17 : vector<56x512xf32>
    %cst_14 = arith.constant 0.000000e+00 : f32
    %19 = vector.broadcast %cst_14 : f32 to vector<8x512xf32>
    %c504 = arith.constant 504 : index
    %c0_15 = arith.constant 0 : index
    %20 = vector.load %arg7[%c504, %c0_15] : memref<512x512xf32, #tpu.memory_space<vmem>>, vector<8x512xf32>
    tpu.vector_store %arg7[%c504, %c0_15], %19 {strides = array<i32>} : memref<512x512xf32, #tpu.memory_space<vmem>>, vector<8x512xf32>,
    %c0_16 = arith.constant 0 : index
    %c0_17 = arith.constant 0 : index
    %21 = vector.load %arg2[%c0_16, %c0_17] : memref<9x512xf32, #tpu.memory_space<vmem>>, vector<1x512xf32>
    %22 = vector.shape_cast %21 : vector<1x512xf32> to vector<1x512xf32>
    %23 = vector.broadcast %22 : vector<1x512xf32> to vector<8x512xf32>
    %24 = vector.extract_strided_slice %18 {offsets = [0, 0], sizes = [8, 512], strides = [1, 1]} : vector<56x512xf32> to vector<8x512xf32>
    %25 = arith.mulf %24, %23 : vector<8x512xf32>
    %c0_18 = arith.constant 0 : index
    %c0_19 = arith.constant 0 : index
    %26 = vector.load %arg7[%c0_18, %c0_19] : memref<512x512xf32, #tpu.memory_space<vmem>>, vector<8x512xf32>
    tpu.vector_store %arg7[%c0_18, %c0_19], %25 {strides = array<i32>} : memref<512x512xf32, #tpu.memory_space<vmem>>, vector<8x512xf32>,
    %27 = vector.extract_strided_slice %18 {offsets = [8, 0], sizes = [8, 512], strides = [1, 1]} : vector<56x512xf32> to vector<8x512xf32>
    %28 = arith.mulf %27, %23 : vector<8x512xf32>
    %c8 = arith.constant 8 : index
    %c0_20 = arith.constant 0 : index
    %29 = vector.load %arg7[%c8, %c0_20] : memref<512x512xf32, #tpu.memory_space<vmem>>, vector<8x512xf32>
    tpu.vector_store %arg7[%c8, %c0_20], %28 {strides = array<i32>} : memref<512x512xf32, #tpu.memory_space<vmem>>, vector<8x512xf32>,
    %30 = vector.extract_strided_slice %18 {offsets = [16, 0], sizes = [8, 512], strides = [1, 1]} : vector<56x512xf32> to vector<8x512xf32>
    %31 = arith.mulf %30, %23 : vector<8x512xf32>
    %c16 = arith.constant 16 : index
    %c0_21 = arith.constant 0 : index
    %32 = vector.load %arg7[%c16, %c0_21] : memref<512x512xf32, #tpu.memory_space<vmem>>, vector<8x512xf32>
    tpu.vector_store %arg7[%c16, %c0_21], %31 {strides = array<i32>} : memref<512x512xf32, #tpu.memory_space<vmem>>, vector<8x512xf32>,
    %33 = vector.extract_strided_slice %18 {offsets = [24, 0], sizes = [8, 512], strides = [1, 1]} : vector<56x512xf32> to vector<8x512xf32>
    %34 = arith.mulf %33, %23 : vector<8x512xf32>
    %c24 = arith.constant 24 : index
    %c0_22 = arith.constant 0 : index
    %35 = vector.load %arg7[%c24, %c0_22] : memref<512x512xf32, #tpu.memory_space<vmem>>, vector<8x512xf32>
    tpu.vector_store %arg7[%c24, %c0_22], %34 {strides = array<i32>} : memref<512x512xf32, #tpu.memory_space<vmem>>, vector<8x512xf32>,
    %36 = vector.extract_strided_slice %18 {offsets = [32, 0], sizes = [8, 512], strides = [1, 1]} : vector<56x512xf32> to vector<8x512xf32>
    %37 = arith.mulf %36, %23 : vector<8x512xf32>
    %c32 = arith.constant 32 : index
    %c0_23 = arith.constant 0 : index
    %38 = vector.load %arg7[%c32, %c0_23] : memref<512x512xf32, #tpu.memory_space<vmem>>, vector<8x512xf32>
    tpu.vector_store %arg7[%c32, %c0_23], %37 {strides = array<i32>} : memref<512x512xf32, #tpu.memory_space<vmem>>, vector<8x512xf32>,
    %39 = vector.extract_strided_slice %18 {offsets = [40, 0], sizes = [8, 512], strides = [1, 1]} : vector<56x512xf32> to vector<8x512xf32>
    %40 = arith.mulf %39, %23 : vector<8x512xf32>
    %c40 = arith.constant 40 : index
    %c0_24 = arith.constant 0 : index
    %41 = vector.load %arg7[%c40, %c0_24] : memref<512x512xf32, #tpu.memory_space<vmem>>, vector<8x512xf32>
    tpu.vector_store %arg7[%c40, %c0_24], %40 {strides = array<i32>} : memref<512x512xf32, #tpu.memory_space<vmem>>, vector<8x512xf32>,
    %42 = vector.extract_strided_slice %18 {offsets = [48, 0], sizes = [8, 512], strides = [1, 1]} : vector<56x512xf32> to vector<8x512xf32>
    %43 = arith.mulf %42, %23 : vector<8x512xf32>
    %c48 = arith.constant 48 : index
    %c0_25 = arith.constant 0 : index
    %44 = vector.load %arg7[%c48, %c0_25] : memref<512x512xf32, #tpu.memory_space<vmem>>, vector<8x512xf32>
    tpu.vector_store %arg7[%c48, %c0_25], %43 {strides = array<i32>} : memref<512x512xf32, #tpu.memory_space<vmem>>, vector<8x512xf32>,
    %c1 = arith.constant 1 : index
    %c0_26 = arith.constant 0 : index
    %45 = vector.load %arg2[%c1, %c0_26] : memref<9x512xf32, #tpu.memory_space<vmem>>, vector<1x512xf32>
    %46 = vector.shape_cast %45 : vector<1x512xf32> to vector<1x512xf32>
    %47 = vector.broadcast %46 : vector<1x512xf32> to vector<8x512xf32>
    %48 = vector.extract_strided_slice %18 {offsets = [0, 0], sizes = [8, 512], strides = [1, 1]} : vector<56x512xf32> to vector<8x512xf32>
    %49 = arith.mulf %48, %47 : vector<8x512xf32>
    %c56 = arith.constant 56 : index
    %c0_27 = arith.constant 0 : index
    %50 = vector.load %arg7[%c56, %c0_27] : memref<512x512xf32, #tpu.memory_space<vmem>>, vector<8x512xf32>
    tpu.vector_store %arg7[%c56, %c0_27], %49 {strides = array<i32>} : memref<512x512xf32, #tpu.memory_space<vmem>>, vector<8x512xf32>,
    %51 = vector.extract_strided_slice %18 {offsets = [8, 0], sizes = [8, 512], strides = [1, 1]} : vector<56x512xf32> to vector<8x512xf32>
    %52 = arith.mulf %51, %47 : vector<8x512xf32>
    %c64 = arith.constant 64 : index
    %c0_28 = arith.constant 0 : index
    %53 = vector.load %arg7[%c64, %c0_28] : memref<512x512xf32, #tpu.memory_space<vmem>>, vector<8x512xf32>
    tpu.vector_store %arg7[%c64, %c0_28], %52 {strides = array<i32>} : memref<512x512xf32, #tpu.memory_space<vmem>>, vector<8x512xf32>,
    %54 = vector.extract_strided_slice %18 {offsets = [16, 0], sizes = [8, 512], strides = [1, 1]} : vector<56x512xf32> to vector<8x512xf32>
    %55 = arith.mulf %54, %47 : vector<8x512xf32>
    %c72 = arith.constant 72 : index
    %c0_29 = arith.constant 0 : index
    %56 = vector.load %arg7[%c72, %c0_29] : memref<512x512xf32, #tpu.memory_space<vmem>>, vector<8x512xf32>
    tpu.vector_store %arg7[%c72, %c0_29], %55 {strides = array<i32>} : memref<512x512xf32, #tpu.memory_space<vmem>>, vector<8x512xf32>,
    %57 = vector.extract_strided_slice %18 {offsets = [24, 0], sizes = [8, 512], strides = [1, 1]} : vector<56x512xf32> to vector<8x512xf32>
    %58 = arith.mulf %57, %47 : vector<8x512xf32>
    %c80 = arith.constant 80 : index
    %c0_30 = arith.constant 0 : index
    %59 = vector.load %arg7[%c80, %c0_30] : memref<512x512xf32, #tpu.memory_space<vmem>>, vector<8x512xf32>
    tpu.vector_store %arg7[%c80, %c0_30], %58 {strides = array<i32>} : memref<512x512xf32, #tpu.memory_space<vmem>>, vector<8x512xf32>,
    %60 = vector.extract_strided_slice %18 {offsets = [32, 0], sizes = [8, 512], strides = [1, 1]} : vector<56x512xf32> to vector<8x512xf32>
    %61 = arith.mulf %60, %47 : vector<8x512xf32>
    %c88 = arith.constant 88 : index
    %c0_31 = arith.constant 0 : index
    %62 = vector.load %arg7[%c88, %c0_31] : memref<512x512xf32, #tpu.memory_space<vmem>>, vector<8x512xf32>
    tpu.vector_store %arg7[%c88, %c0_31], %61 {strides = array<i32>} : memref<512x512xf32, #tpu.memory_space<vmem>>, vector<8x512xf32>,
    %63 = vector.extract_strided_slice %18 {offsets = [40, 0], sizes = [8, 512], strides = [1, 1]} : vector<56x512xf32> to vector<8x512xf32>
    %64 = arith.mulf %63, %47 : vector<8x512xf32>
    %c96 = arith.constant 96 : index
    %c0_32 = arith.constant 0 : index
    %65 = vector.load %arg7[%c96, %c0_32] : memref<512x512xf32, #tpu.memory_space<vmem>>, vector<8x512xf32>
    tpu.vector_store %arg7[%c96, %c0_32], %64 {strides = array<i32>} : memref<512x512xf32, #tpu.memory_space<vmem>>, vector<8x512xf32>,
    %66 = vector.extract_strided_slice %18 {offsets = [48, 0], sizes = [8, 512], strides = [1, 1]} : vector<56x512xf32> to vector<8x512xf32>
    %67 = arith.mulf %66, %47 : vector<8x512xf32>
    %c104 = arith.constant 104 : index
    %c0_33 = arith.constant 0 : index
    %68 = vector.load %arg7[%c104, %c0_33] : memref<512x512xf32, #tpu.memory_space<vmem>>, vector<8x512xf32>
    tpu.vector_store %arg7[%c104, %c0_33], %67 {strides = array<i32>} : memref<512x512xf32, #tpu.memory_space<vmem>>, vector<8x512xf32>,
    %c2 = arith.constant 2 : index
    %c0_34 = arith.constant 0 : index
    %69 = vector.load %arg2[%c2, %c0_34] : memref<9x512xf32, #tpu.memory_space<vmem>>, vector<1x512xf32>
    %70 = vector.shape_cast %69 : vector<1x512xf32> to vector<1x512xf32>
    %71 = vector.broadcast %70 : vector<1x512xf32> to vector<8x512xf32>
    %72 = vector.extract_strided_slice %18 {offsets = [0, 0], sizes = [8, 512], strides = [1, 1]} : vector<56x512xf32> to vector<8x512xf32>
    %73 = arith.mulf %72, %71 : vector<8x512xf32>
    %c112 = arith.constant 112 : index
    %c0_35 = arith.constant 0 : index
    %74 = vector.load %arg7[%c112, %c0_35] : memref<512x512xf32, #tpu.memory_space<vmem>>, vector<8x512xf32>
    tpu.vector_store %arg7[%c112, %c0_35], %73 {strides = array<i32>} : memref<512x512xf32, #tpu.memory_space<vmem>>, vector<8x512xf32>,
    %75 = vector.extract_strided_slice %18 {offsets = [8, 0], sizes = [8, 512], strides = [1, 1]} : vector<56x512xf32> to vector<8x512xf32>
    %76 = arith.mulf %75, %71 : vector<8x512xf32>
    %c120 = arith.constant 120 : index
    %c0_36 = arith.constant 0 : index
    %77 = vector.load %arg7[%c120, %c0_36] : memref<512x512xf32, #tpu.memory_space<vmem>>, vector<8x512xf32>
    tpu.vector_store %arg7[%c120, %c0_36], %76 {strides = array<i32>} : memref<512x512xf32, #tpu.memory_space<vmem>>, vector<8x512xf32>,
    %78 = vector.extract_strided_slice %18 {offsets = [16, 0], sizes = [8, 512], strides = [1, 1]} : vector<56x512xf32> to vector<8x512xf32>
    %79 = arith.mulf %78, %71 : vector<8x512xf32>
    %c128 = arith.constant 128 : index
    %c0_37 = arith.constant 0 : index
    %80 = vector.load %arg7[%c128, %c0_37] : memref<512x512xf32, #tpu.memory_space<vmem>>, vector<8x512xf32>
    tpu.vector_store %arg7[%c128, %c0_37], %79 {strides = array<i32>} : memref<512x512xf32, #tpu.memory_space<vmem>>, vector<8x512xf32>,
    %81 = vector.extract_strided_slice %18 {offsets = [24, 0], sizes = [8, 512], strides = [1, 1]} : vector<56x512xf32> to vector<8x512xf32>
    %82 = arith.mulf %81, %71 : vector<8x512xf32>
    %c136 = arith.constant 136 : index
    %c0_38 = arith.constant 0 : index
    %83 = vector.load %arg7[%c136, %c0_38] : memref<512x512xf32, #tpu.memory_space<vmem>>, vector<8x512xf32>
    tpu.vector_store %arg7[%c136, %c0_38], %82 {strides = array<i32>} : memref<512x512xf32, #tpu.memory_space<vmem>>, vector<8x512xf32>,
    %84 = vector.extract_strided_slice %18 {offsets = [32, 0], sizes = [8, 512], strides = [1, 1]} : vector<56x512xf32> to vector<8x512xf32>
    %85 = arith.mulf %84, %71 : vector<8x512xf32>
    %c144 = arith.constant 144 : index
    %c0_39 = arith.constant 0 : index
    %86 = vector.load %arg7[%c144, %c0_39] : memref<512x512xf32, #tpu.memory_space<vmem>>, vector<8x512xf32>
    tpu.vector_store %arg7[%c144, %c0_39], %85 {strides = array<i32>} : memref<512x512xf32, #tpu.memory_space<vmem>>, vector<8x512xf32>,
    %87 = vector.extract_strided_slice %18 {offsets = [40, 0], sizes = [8, 512], strides = [1, 1]} : vector<56x512xf32> to vector<8x512xf32>
    %88 = arith.mulf %87, %71 : vector<8x512xf32>
    %c152 = arith.constant 152 : index
    %c0_40 = arith.constant 0 : index
    %89 = vector.load %arg7[%c152, %c0_40] : memref<512x512xf32, #tpu.memory_space<vmem>>, vector<8x512xf32>
    tpu.vector_store %arg7[%c152, %c0_40], %88 {strides = array<i32>} : memref<512x512xf32, #tpu.memory_space<vmem>>, vector<8x512xf32>,
    %90 = vector.extract_strided_slice %18 {offsets = [48, 0], sizes = [8, 512], strides = [1, 1]} : vector<56x512xf32> to vector<8x512xf32>
    %91 = arith.mulf %90, %71 : vector<8x512xf32>
    %c160 = arith.constant 160 : index
    %c0_41 = arith.constant 0 : index
    %92 = vector.load %arg7[%c160, %c0_41] : memref<512x512xf32, #tpu.memory_space<vmem>>, vector<8x512xf32>
    tpu.vector_store %arg7[%c160, %c0_41], %91 {strides = array<i32>} : memref<512x512xf32, #tpu.memory_space<vmem>>, vector<8x512xf32>,
    %c3 = arith.constant 3 : index
    %c0_42 = arith.constant 0 : index
    %93 = vector.load %arg2[%c3, %c0_42] : memref<9x512xf32, #tpu.memory_space<vmem>>, vector<1x512xf32>
    %94 = vector.shape_cast %93 : vector<1x512xf32> to vector<1x512xf32>
    %95 = vector.broadcast %94 : vector<1x512xf32> to vector<8x512xf32>
    %96 = vector.extract_strided_slice %18 {offsets = [0, 0], sizes = [8, 512], strides = [1, 1]} : vector<56x512xf32> to vector<8x512xf32>
    %97 = arith.mulf %96, %95 : vector<8x512xf32>
    %c168 = arith.constant 168 : index
    %c0_43 = arith.constant 0 : index
    %98 = vector.load %arg7[%c168, %c0_43] : memref<512x512xf32, #tpu.memory_space<vmem>>, vector<8x512xf32>
    tpu.vector_store %arg7[%c168, %c0_43], %97 {strides = array<i32>} : memref<512x512xf32, #tpu.memory_space<vmem>>, vector<8x512xf32>,
    %99 = vector.extract_strided_slice %18 {offsets = [8, 0], sizes = [8, 512], strides = [1, 1]} : vector<56x512xf32> to vector<8x512xf32>
    %100 = arith.mulf %99, %95 : vector<8x512xf32>
    %c176 = arith.constant 176 : index
    %c0_44 = arith.constant 0 : index
    %101 = vector.load %arg7[%c176, %c0_44] : memref<512x512xf32, #tpu.memory_space<vmem>>, vector<8x512xf32>
    tpu.vector_store %arg7[%c176, %c0_44], %100 {strides = array<i32>} : memref<512x512xf32, #tpu.memory_space<vmem>>, vector<8x512xf32>,
    %102 = vector.extract_strided_slice %18 {offsets = [16, 0], sizes = [8, 512], strides = [1, 1]} : vector<56x512xf32> to vector<8x512xf32>
    %103 = arith.mulf %102, %95 : vector<8x512xf32>
    %c184 = arith.constant 184 : index
    %c0_45 = arith.constant 0 : index
    %104 = vector.load %arg7[%c184, %c0_45] : memref<512x512xf32, #tpu.memory_space<vmem>>, vector<8x512xf32>
    tpu.vector_store %arg7[%c184, %c0_45], %103 {strides = array<i32>} : memref<512x512xf32, #tpu.memory_space<vmem>>, vector<8x512xf32>,
    %105 = vector.extract_strided_slice %18 {offsets = [24, 0], sizes = [8, 512], strides = [1, 1]} : vector<56x512xf32> to vector<8x512xf32>
    %106 = arith.mulf %105, %95 : vector<8x512xf32>
    %c192 = arith.constant 192 : index
    %c0_46 = arith.constant 0 : index
    %107 = vector.load %arg7[%c192, %c0_46] : memref<512x512xf32, #tpu.memory_space<vmem>>, vector<8x512xf32>
    tpu.vector_store %arg7[%c192, %c0_46], %106 {strides = array<i32>} : memref<512x512xf32, #tpu.memory_space<vmem>>, vector<8x512xf32>,
    %108 = vector.extract_strided_slice %18 {offsets = [32, 0], sizes = [8, 512], strides = [1, 1]} : vector<56x512xf32> to vector<8x512xf32>
    %109 = arith.mulf %108, %95 : vector<8x512xf32>
    %c200 = arith.constant 200 : index
    %c0_47 = arith.constant 0 : index
    %110 = vector.load %arg7[%c200, %c0_47] : memref<512x512xf32, #tpu.memory_space<vmem>>, vector<8x512xf32>
    tpu.vector_store %arg7[%c200, %c0_47], %109 {strides = array<i32>} : memref<512x512xf32, #tpu.memory_space<vmem>>, vector<8x512xf32>,
    %111 = vector.extract_strided_slice %18 {offsets = [40, 0], sizes = [8, 512], strides = [1, 1]} : vector<56x512xf32> to vector<8x512xf32>
    %112 = arith.mulf %111, %95 : vector<8x512xf32>
    %c208 = arith.constant 208 : index
    %c0_48 = arith.constant 0 : index
    %113 = vector.load %arg7[%c208, %c0_48] : memref<512x512xf32, #tpu.memory_space<vmem>>, vector<8x512xf32>
    tpu.vector_store %arg7[%c208, %c0_48], %112 {strides = array<i32>} : memref<512x512xf32, #tpu.memory_space<vmem>>, vector<8x512xf32>,
    %114 = vector.extract_strided_slice %18 {offsets = [48, 0], sizes = [8, 512], strides = [1, 1]} : vector<56x512xf32> to vector<8x512xf32>
    %115 = arith.mulf %114, %95 : vector<8x512xf32>
    %c216 = arith.constant 216 : index
    %c0_49 = arith.constant 0 : index
    %116 = vector.load %arg7[%c216, %c0_49] : memref<512x512xf32, #tpu.memory_space<vmem>>, vector<8x512xf32>
    tpu.vector_store %arg7[%c216, %c0_49], %115 {strides = array<i32>} : memref<512x512xf32, #tpu.memory_space<vmem>>, vector<8x512xf32>,
    %c4 = arith.constant 4 : index
    %c0_50 = arith.constant 0 : index
    %117 = vector.load %arg2[%c4, %c0_50] : memref<9x512xf32, #tpu.memory_space<vmem>>, vector<1x512xf32>
    %118 = vector.shape_cast %117 : vector<1x512xf32> to vector<1x512xf32>
    %119 = vector.broadcast %118 : vector<1x512xf32> to vector<8x512xf32>
    %120 = vector.extract_strided_slice %18 {offsets = [0, 0], sizes = [8, 512], strides = [1, 1]} : vector<56x512xf32> to vector<8x512xf32>
    %121 = arith.mulf %120, %119 : vector<8x512xf32>
    %c224 = arith.constant 224 : index
    %c0_51 = arith.constant 0 : index
    %122 = vector.load %arg7[%c224, %c0_51] : memref<512x512xf32, #tpu.memory_space<vmem>>, vector<8x512xf32>
    tpu.vector_store %arg7[%c224, %c0_51], %121 {strides = array<i32>} : memref<512x512xf32, #tpu.memory_space<vmem>>, vector<8x512xf32>,
    %123 = vector.extract_strided_slice %18 {offsets = [8, 0], sizes = [8, 512], strides = [1, 1]} : vector<56x512xf32> to vector<8x512xf32>
    %124 = arith.mulf %123, %119 : vector<8x512xf32>
    %c232 = arith.constant 232 : index
    %c0_52 = arith.constant 0 : index
    %125 = vector.load %arg7[%c232, %c0_52] : memref<512x512xf32, #tpu.memory_space<vmem>>, vector<8x512xf32>
    tpu.vector_store %arg7[%c232, %c0_52], %124 {strides = array<i32>} : memref<512x512xf32, #tpu.memory_space<vmem>>, vector<8x512xf32>,
    %126 = vector.extract_strided_slice %18 {offsets = [16, 0], sizes = [8, 512], strides = [1, 1]} : vector<56x512xf32> to vector<8x512xf32>
    %127 = arith.mulf %126, %119 : vector<8x512xf32>
    %c240 = arith.constant 240 : index
    %c0_53 = arith.constant 0 : index
    %128 = vector.load %arg7[%c240, %c0_53] : memref<512x512xf32, #tpu.memory_space<vmem>>, vector<8x512xf32>
    tpu.vector_store %arg7[%c240, %c0_53], %127 {strides = array<i32>} : memref<512x512xf32, #tpu.memory_space<vmem>>, vector<8x512xf32>,
    %129 = vector.extract_strided_slice %18 {offsets = [24, 0], sizes = [8, 512], strides = [1, 1]} : vector<56x512xf32> to vector<8x512xf32>
    %130 = arith.mulf %129, %119 : vector<8x512xf32>
    %c248 = arith.constant 248 : index
    %c0_54 = arith.constant 0 : index
    %131 = vector.load %arg7[%c248, %c0_54] : memref<512x512xf32, #tpu.memory_space<vmem>>, vector<8x512xf32>
    tpu.vector_store %arg7[%c248, %c0_54], %130 {strides = array<i32>} : memref<512x512xf32, #tpu.memory_space<vmem>>, vector<8x512xf32>,
    %132 = vector.extract_strided_slice %18 {offsets = [32, 0], sizes = [8, 512], strides = [1, 1]} : vector<56x512xf32> to vector<8x512xf32>
    %133 = arith.mulf %132, %119 : vector<8x512xf32>
    %c256 = arith.constant 256 : index
    %c0_55 = arith.constant 0 : index
    %134 = vector.load %arg7[%c256, %c0_55] : memref<512x512xf32, #tpu.memory_space<vmem>>, vector<8x512xf32>
    tpu.vector_store %arg7[%c256, %c0_55], %133 {strides = array<i32>} : memref<512x512xf32, #tpu.memory_space<vmem>>, vector<8x512xf32>,
    %135 = vector.extract_strided_slice %18 {offsets = [40, 0], sizes = [8, 512], strides = [1, 1]} : vector<56x512xf32> to vector<8x512xf32>
    %136 = arith.mulf %135, %119 : vector<8x512xf32>
    %c264 = arith.constant 264 : index
    %c0_56 = arith.constant 0 : index
    %137 = vector.load %arg7[%c264, %c0_56] : memref<512x512xf32, #tpu.memory_space<vmem>>, vector<8x512xf32>
    tpu.vector_store %arg7[%c264, %c0_56], %136 {strides = array<i32>} : memref<512x512xf32, #tpu.memory_space<vmem>>, vector<8x512xf32>,
    %138 = vector.extract_strided_slice %18 {offsets = [48, 0], sizes = [8, 512], strides = [1, 1]} : vector<56x512xf32> to vector<8x512xf32>
    %139 = arith.mulf %138, %119 : vector<8x512xf32>
    %c272 = arith.constant 272 : index
    %c0_57 = arith.constant 0 : index
    %140 = vector.load %arg7[%c272, %c0_57] : memref<512x512xf32, #tpu.memory_space<vmem>>, vector<8x512xf32>
    tpu.vector_store %arg7[%c272, %c0_57], %139 {strides = array<i32>} : memref<512x512xf32, #tpu.memory_space<vmem>>, vector<8x512xf32>,
    %c5 = arith.constant 5 : index
    %c0_58 = arith.constant 0 : index
    %141 = vector.load %arg2[%c5, %c0_58] : memref<9x512xf32, #tpu.memory_space<vmem>>, vector<1x512xf32>
    %142 = vector.shape_cast %141 : vector<1x512xf32> to vector<1x512xf32>
    %143 = vector.broadcast %142 : vector<1x512xf32> to vector<8x512xf32>
    %144 = vector.extract_strided_slice %18 {offsets = [0, 0], sizes = [8, 512], strides = [1, 1]} : vector<56x512xf32> to vector<8x512xf32>
    %145 = arith.mulf %144, %143 : vector<8x512xf32>
    %c280 = arith.constant 280 : index
    %c0_59 = arith.constant 0 : index
    %146 = vector.load %arg7[%c280, %c0_59] : memref<512x512xf32, #tpu.memory_space<vmem>>, vector<8x512xf32>
    tpu.vector_store %arg7[%c280, %c0_59], %145 {strides = array<i32>} : memref<512x512xf32, #tpu.memory_space<vmem>>, vector<8x512xf32>,
    %147 = vector.extract_strided_slice %18 {offsets = [8, 0], sizes = [8, 512], strides = [1, 1]} : vector<56x512xf32> to vector<8x512xf32>
    %148 = arith.mulf %147, %143 : vector<8x512xf32>
    %c288 = arith.constant 288 : index
    %c0_60 = arith.constant 0 : index
    %149 = vector.load %arg7[%c288, %c0_60] : memref<512x512xf32, #tpu.memory_space<vmem>>, vector<8x512xf32>
    tpu.vector_store %arg7[%c288, %c0_60], %148 {strides = array<i32>} : memref<512x512xf32, #tpu.memory_space<vmem>>, vector<8x512xf32>,
    %150 = vector.extract_strided_slice %18 {offsets = [16, 0], sizes = [8, 512], strides = [1, 1]} : vector<56x512xf32> to vector<8x512xf32>
    %151 = arith.mulf %150, %143 : vector<8x512xf32>
    %c296 = arith.constant 296 : index
    %c0_61 = arith.constant 0 : index
    %152 = vector.load %arg7[%c296, %c0_61] : memref<512x512xf32, #tpu.memory_space<vmem>>, vector<8x512xf32>
    tpu.vector_store %arg7[%c296, %c0_61], %151 {strides = array<i32>} : memref<512x512xf32, #tpu.memory_space<vmem>>, vector<8x512xf32>,
    %153 = vector.extract_strided_slice %18 {offsets = [24, 0], sizes = [8, 512], strides = [1, 1]} : vector<56x512xf32> to vector<8x512xf32>
    %154 = arith.mulf %153, %143 : vector<8x512xf32>
    %c304 = arith.constant 304 : index
    %c0_62 = arith.constant 0 : index
    %155 = vector.load %arg7[%c304, %c0_62] : memref<512x512xf32, #tpu.memory_space<vmem>>, vector<8x512xf32>
    tpu.vector_store %arg7[%c304, %c0_62], %154 {strides = array<i32>} : memref<512x512xf32, #tpu.memory_space<vmem>>, vector<8x512xf32>,
    %156 = vector.extract_strided_slice %18 {offsets = [32, 0], sizes = [8, 512], strides = [1, 1]} : vector<56x512xf32> to vector<8x512xf32>
    %157 = arith.mulf %156, %143 : vector<8x512xf32>
    %c312 = arith.constant 312 : index
    %c0_63 = arith.constant 0 : index
    %158 = vector.load %arg7[%c312, %c0_63] : memref<512x512xf32, #tpu.memory_space<vmem>>, vector<8x512xf32>
    tpu.vector_store %arg7[%c312, %c0_63], %157 {strides = array<i32>} : memref<512x512xf32, #tpu.memory_space<vmem>>, vector<8x512xf32>,
    %159 = vector.extract_strided_slice %18 {offsets = [40, 0], sizes = [8, 512], strides = [1, 1]} : vector<56x512xf32> to vector<8x512xf32>
    %160 = arith.mulf %159, %143 : vector<8x512xf32>
    %c320 = arith.constant 320 : index
    %c0_64 = arith.constant 0 : index
    %161 = vector.load %arg7[%c320, %c0_64] : memref<512x512xf32, #tpu.memory_space<vmem>>, vector<8x512xf32>
    tpu.vector_store %arg7[%c320, %c0_64], %160 {strides = array<i32>} : memref<512x512xf32, #tpu.memory_space<vmem>>, vector<8x512xf32>,
    %162 = vector.extract_strided_slice %18 {offsets = [48, 0], sizes = [8, 512], strides = [1, 1]} : vector<56x512xf32> to vector<8x512xf32>
    %163 = arith.mulf %162, %143 : vector<8x512xf32>
    %c328 = arith.constant 328 : index
    %c0_65 = arith.constant 0 : index
    %164 = vector.load %arg7[%c328, %c0_65] : memref<512x512xf32, #tpu.memory_space<vmem>>, vector<8x512xf32>
    tpu.vector_store %arg7[%c328, %c0_65], %163 {strides = array<i32>} : memref<512x512xf32, #tpu.memory_space<vmem>>, vector<8x512xf32>,
    %c6 = arith.constant 6 : index
    %c0_66 = arith.constant 0 : index
    %165 = vector.load %arg2[%c6, %c0_66] : memref<9x512xf32, #tpu.memory_space<vmem>>, vector<1x512xf32>
    %166 = vector.shape_cast %165 : vector<1x512xf32> to vector<1x512xf32>
    %167 = vector.broadcast %166 : vector<1x512xf32> to vector<8x512xf32>
    %168 = vector.extract_strided_slice %18 {offsets = [0, 0], sizes = [8, 512], strides = [1, 1]} : vector<56x512xf32> to vector<8x512xf32>
    %169 = arith.mulf %168, %167 : vector<8x512xf32>
    %c336 = arith.constant 336 : index
    %c0_67 = arith.constant 0 : index
    %170 = vector.load %arg7[%c336, %c0_67] : memref<512x512xf32, #tpu.memory_space<vmem>>, vector<8x512xf32>
    tpu.vector_store %arg7[%c336, %c0_67], %169 {strides = array<i32>} : memref<512x512xf32, #tpu.memory_space<vmem>>, vector<8x512xf32>,
    %171 = vector.extract_strided_slice %18 {offsets = [8, 0], sizes = [8, 512], strides = [1, 1]} : vector<56x512xf32> to vector<8x512xf32>
    %172 = arith.mulf %171, %167 : vector<8x512xf32>
    %c344 = arith.constant 344 : index
    %c0_68 = arith.constant 0 : index
    %173 = vector.load %arg7[%c344, %c0_68] : memref<512x512xf32, #tpu.memory_space<vmem>>, vector<8x512xf32>
    tpu.vector_store %arg7[%c344, %c0_68], %172 {strides = array<i32>} : memref<512x512xf32, #tpu.memory_space<vmem>>, vector<8x512xf32>,
    %174 = vector.extract_strided_slice %18 {offsets = [16, 0], sizes = [8, 512], strides = [1, 1]} : vector<56x512xf32> to vector<8x512xf32>
    %175 = arith.mulf %174, %167 : vector<8x512xf32>
    %c352 = arith.constant 352 : index
    %c0_69 = arith.constant 0 : index
    %176 = vector.load %arg7[%c352, %c0_69] : memref<512x512xf32, #tpu.memory_space<vmem>>, vector<8x512xf32>
    tpu.vector_store %arg7[%c352, %c0_69], %175 {strides = array<i32>} : memref<512x512xf32, #tpu.memory_space<vmem>>, vector<8x512xf32>,
    %177 = vector.extract_strided_slice %18 {offsets = [24, 0], sizes = [8, 512], strides = [1, 1]} : vector<56x512xf32> to vector<8x512xf32>
    %178 = arith.mulf %177, %167 : vector<8x512xf32>
    %c360 = arith.constant 360 : index
    %c0_70 = arith.constant 0 : index
    %179 = vector.load %arg7[%c360, %c0_70] : memref<512x512xf32, #tpu.memory_space<vmem>>, vector<8x512xf32>
    tpu.vector_store %arg7[%c360, %c0_70], %178 {strides = array<i32>} : memref<512x512xf32, #tpu.memory_space<vmem>>, vector<8x512xf32>,
    %180 = vector.extract_strided_slice %18 {offsets = [32, 0], sizes = [8, 512], strides = [1, 1]} : vector<56x512xf32> to vector<8x512xf32>
    %181 = arith.mulf %180, %167 : vector<8x512xf32>
    %c368 = arith.constant 368 : index
    %c0_71 = arith.constant 0 : index
    %182 = vector.load %arg7[%c368, %c0_71] : memref<512x512xf32, #tpu.memory_space<vmem>>, vector<8x512xf32>
    tpu.vector_store %arg7[%c368, %c0_71], %181 {strides = array<i32>} : memref<512x512xf32, #tpu.memory_space<vmem>>, vector<8x512xf32>,
    %183 = vector.extract_strided_slice %18 {offsets = [40, 0], sizes = [8, 512], strides = [1, 1]} : vector<56x512xf32> to vector<8x512xf32>
    %184 = arith.mulf %183, %167 : vector<8x512xf32>
    %c376 = arith.constant 376 : index
    %c0_72 = arith.constant 0 : index
    %185 = vector.load %arg7[%c376, %c0_72] : memref<512x512xf32, #tpu.memory_space<vmem>>, vector<8x512xf32>
    tpu.vector_store %arg7[%c376, %c0_72], %184 {strides = array<i32>} : memref<512x512xf32, #tpu.memory_space<vmem>>, vector<8x512xf32>,
    %186 = vector.extract_strided_slice %18 {offsets = [48, 0], sizes = [8, 512], strides = [1, 1]} : vector<56x512xf32> to vector<8x512xf32>
    %187 = arith.mulf %186, %167 : vector<8x512xf32>
    %c384 = arith.constant 384 : index
    %c0_73 = arith.constant 0 : index
    %188 = vector.load %arg7[%c384, %c0_73] : memref<512x512xf32, #tpu.memory_space<vmem>>, vector<8x512xf32>
    tpu.vector_store %arg7[%c384, %c0_73], %187 {strides = array<i32>} : memref<512x512xf32, #tpu.memory_space<vmem>>, vector<8x512xf32>,
    %c7 = arith.constant 7 : index
    %c0_74 = arith.constant 0 : index
    %189 = vector.load %arg2[%c7, %c0_74] : memref<9x512xf32, #tpu.memory_space<vmem>>, vector<1x512xf32>
    %190 = vector.shape_cast %189 : vector<1x512xf32> to vector<1x512xf32>
    %191 = vector.broadcast %190 : vector<1x512xf32> to vector<8x512xf32>
    %192 = vector.extract_strided_slice %18 {offsets = [0, 0], sizes = [8, 512], strides = [1, 1]} : vector<56x512xf32> to vector<8x512xf32>
    %193 = arith.mulf %192, %191 : vector<8x512xf32>
    %c392 = arith.constant 392 : index
    %c0_75 = arith.constant 0 : index
    %194 = vector.load %arg7[%c392, %c0_75] : memref<512x512xf32, #tpu.memory_space<vmem>>, vector<8x512xf32>
    tpu.vector_store %arg7[%c392, %c0_75], %193 {strides = array<i32>} : memref<512x512xf32, #tpu.memory_space<vmem>>, vector<8x512xf32>,
    %195 = vector.extract_strided_slice %18 {offsets = [8, 0], sizes = [8, 512], strides = [1, 1]} : vector<56x512xf32> to vector<8x512xf32>
    %196 = arith.mulf %195, %191 : vector<8x512xf32>
    %c400 = arith.constant 400 : index
    %c0_76 = arith.constant 0 : index
    %197 = vector.load %arg7[%c400, %c0_76] : memref<512x512xf32, #tpu.memory_space<vmem>>, vector<8x512xf32>
    tpu.vector_store %arg7[%c400, %c0_76], %196 {strides = array<i32>} : memref<512x512xf32, #tpu.memory_space<vmem>>, vector<8x512xf32>,
    %198 = vector.extract_strided_slice %18 {offsets = [16, 0], sizes = [8, 512], strides = [1, 1]} : vector<56x512xf32> to vector<8x512xf32>
    %199 = arith.mulf %198, %191 : vector<8x512xf32>
    %c408 = arith.constant 408 : index
    %c0_77 = arith.constant 0 : index
    %200 = vector.load %arg7[%c408, %c0_77] : memref<512x512xf32, #tpu.memory_space<vmem>>, vector<8x512xf32>
    tpu.vector_store %arg7[%c408, %c0_77], %199 {strides = array<i32>} : memref<512x512xf32, #tpu.memory_space<vmem>>, vector<8x512xf32>,
    %201 = vector.extract_strided_slice %18 {offsets = [24, 0], sizes = [8, 512], strides = [1, 1]} : vector<56x512xf32> to vector<8x512xf32>
    %202 = arith.mulf %201, %191 : vector<8x512xf32>
    %c416 = arith.constant 416 : index
    %c0_78 = arith.constant 0 : index
    %203 = vector.load %arg7[%c416, %c0_78] : memref<512x512xf32, #tpu.memory_space<vmem>>, vector<8x512xf32>
    tpu.vector_store %arg7[%c416, %c0_78], %202 {strides = array<i32>} : memref<512x512xf32, #tpu.memory_space<vmem>>, vector<8x512xf32>,
    %204 = vector.extract_strided_slice %18 {offsets = [32, 0], sizes = [8, 512], strides = [1, 1]} : vector<56x512xf32> to vector<8x512xf32>
    %205 = arith.mulf %204, %191 : vector<8x512xf32>
    %c424 = arith.constant 424 : index
    %c0_79 = arith.constant 0 : index
    %206 = vector.load %arg7[%c424, %c0_79] : memref<512x512xf32, #tpu.memory_space<vmem>>, vector<8x512xf32>
    tpu.vector_store %arg7[%c424, %c0_79], %205 {strides = array<i32>} : memref<512x512xf32, #tpu.memory_space<vmem>>, vector<8x512xf32>,
    %207 = vector.extract_strided_slice %18 {offsets = [40, 0], sizes = [8, 512], strides = [1, 1]} : vector<56x512xf32> to vector<8x512xf32>
    %208 = arith.mulf %207, %191 : vector<8x512xf32>
    %c432 = arith.constant 432 : index
    %c0_80 = arith.constant 0 : index
    %209 = vector.load %arg7[%c432, %c0_80] : memref<512x512xf32, #tpu.memory_space<vmem>>, vector<8x512xf32>
    tpu.vector_store %arg7[%c432, %c0_80], %208 {strides = array<i32>} : memref<512x512xf32, #tpu.memory_space<vmem>>, vector<8x512xf32>,
    %210 = vector.extract_strided_slice %18 {offsets = [48, 0], sizes = [8, 512], strides = [1, 1]} : vector<56x512xf32> to vector<8x512xf32>
    %211 = arith.mulf %210, %191 : vector<8x512xf32>
    %c440 = arith.constant 440 : index
    %c0_81 = arith.constant 0 : index
    %212 = vector.load %arg7[%c440, %c0_81] : memref<512x512xf32, #tpu.memory_space<vmem>>, vector<8x512xf32>
    tpu.vector_store %arg7[%c440, %c0_81], %211 {strides = array<i32>} : memref<512x512xf32, #tpu.memory_space<vmem>>, vector<8x512xf32>,
    %c8_82 = arith.constant 8 : index
    %c0_83 = arith.constant 0 : index
    %213 = vector.load %arg2[%c8_82, %c0_83] : memref<9x512xf32, #tpu.memory_space<vmem>>, vector<1x512xf32>
    %214 = vector.shape_cast %213 : vector<1x512xf32> to vector<1x512xf32>
    %215 = vector.broadcast %214 : vector<1x512xf32> to vector<8x512xf32>
    %216 = vector.extract_strided_slice %18 {offsets = [0, 0], sizes = [8, 512], strides = [1, 1]} : vector<56x512xf32> to vector<8x512xf32>
    %217 = arith.mulf %216, %215 : vector<8x512xf32>
    %c448 = arith.constant 448 : index
    %c0_84 = arith.constant 0 : index
    %218 = vector.load %arg7[%c448, %c0_84] : memref<512x512xf32, #tpu.memory_space<vmem>>, vector<8x512xf32>
    tpu.vector_store %arg7[%c448, %c0_84], %217 {strides = array<i32>} : memref<512x512xf32, #tpu.memory_space<vmem>>, vector<8x512xf32>,
    %219 = vector.extract_strided_slice %18 {offsets = [8, 0], sizes = [8, 512], strides = [1, 1]} : vector<56x512xf32> to vector<8x512xf32>
    %220 = arith.mulf %219, %215 : vector<8x512xf32>
    %c456 = arith.constant 456 : index
    %c0_85 = arith.constant 0 : index
    %221 = vector.load %arg7[%c456, %c0_85] : memref<512x512xf32, #tpu.memory_space<vmem>>, vector<8x512xf32>
    tpu.vector_store %arg7[%c456, %c0_85], %220 {strides = array<i32>} : memref<512x512xf32, #tpu.memory_space<vmem>>, vector<8x512xf32>,
    %222 = vector.extract_strided_slice %18 {offsets = [16, 0], sizes = [8, 512], strides = [1, 1]} : vector<56x512xf32> to vector<8x512xf32>
    %223 = arith.mulf %222, %215 : vector<8x512xf32>
    %c464 = arith.constant 464 : index
    %c0_86 = arith.constant 0 : index
    %224 = vector.load %arg7[%c464, %c0_86] : memref<512x512xf32, #tpu.memory_space<vmem>>, vector<8x512xf32>
    tpu.vector_store %arg7[%c464, %c0_86], %223 {strides = array<i32>} : memref<512x512xf32, #tpu.memory_space<vmem>>, vector<8x512xf32>,
    %225 = vector.extract_strided_slice %18 {offsets = [24, 0], sizes = [8, 512], strides = [1, 1]} : vector<56x512xf32> to vector<8x512xf32>
    %226 = arith.mulf %225, %215 : vector<8x512xf32>
    %c472 = arith.constant 472 : index
    %c0_87 = arith.constant 0 : index
    %227 = vector.load %arg7[%c472, %c0_87] : memref<512x512xf32, #tpu.memory_space<vmem>>, vector<8x512xf32>
    tpu.vector_store %arg7[%c472, %c0_87], %226 {strides = array<i32>} : memref<512x512xf32, #tpu.memory_space<vmem>>, vector<8x512xf32>,
    %228 = vector.extract_strided_slice %18 {offsets = [32, 0], sizes = [8, 512], strides = [1, 1]} : vector<56x512xf32> to vector<8x512xf32>
    %229 = arith.mulf %228, %215 : vector<8x512xf32>
    %c480 = arith.constant 480 : index
    %c0_88 = arith.constant 0 : index
    %230 = vector.load %arg7[%c480, %c0_88] : memref<512x512xf32, #tpu.memory_space<vmem>>, vector<8x512xf32>
    tpu.vector_store %arg7[%c480, %c0_88], %229 {strides = array<i32>} : memref<512x512xf32, #tpu.memory_space<vmem>>, vector<8x512xf32>,
    %231 = vector.extract_strided_slice %18 {offsets = [40, 0], sizes = [8, 512], strides = [1, 1]} : vector<56x512xf32> to vector<8x512xf32>
    %232 = arith.mulf %231, %215 : vector<8x512xf32>
    %c488 = arith.constant 488 : index
    %c0_89 = arith.constant 0 : index
    %233 = vector.load %arg7[%c488, %c0_89] : memref<512x512xf32, #tpu.memory_space<vmem>>, vector<8x512xf32>
    tpu.vector_store %arg7[%c488, %c0_89], %232 {strides = array<i32>} : memref<512x512xf32, #tpu.memory_space<vmem>>, vector<8x512xf32>,
    %234 = vector.extract_strided_slice %18 {offsets = [48, 0], sizes = [8, 512], strides = [1, 1]} : vector<56x512xf32> to vector<8x512xf32>
    %235 = arith.mulf %234, %215 : vector<8x512xf32>
    %c496 = arith.constant 496 : index
    %c0_90 = arith.constant 0 : index
    %236 = vector.load %arg7[%c496, %c0_90] : memref<512x512xf32, #tpu.memory_space<vmem>>, vector<8x512xf32>
    tpu.vector_store %arg7[%c496, %c0_90], %235 {strides = array<i32>} : memref<512x512xf32, #tpu.memory_space<vmem>>, vector<8x512xf32>,
    %c0_91 = arith.constant 0 : index
    %c0_92 = arith.constant 0 : index
    %237 = vector.load %arg1[%c0_91, %c0_92] : memref<56x512xbf16, #tpu.memory_space<vmem>>, vector<56x512xbf16>
    %238 = arith.extf %237 : vector<56x512xbf16> to vector<56x512xf32>
    %c0_93 = arith.constant 0 : index
    %c0_94 = arith.constant 0 : index
    %239 = vector.load %arg7[%c0_93, %c0_94] : memref<512x512xf32, #tpu.memory_space<vmem>>, vector<512x512xf32>
    %cst_95 = arith.constant dense<0.000000e+00> : vector<56x512xf32>
    %240 = tpu.matmul %238, %239, %cst_95 {dimension_numbers = #tpu.dot_dimension_numbers<[1], [0], [0], [1], [0, 0, 1, 1], [], []>} : vector<56x512xf32>, vector<512x512xf32>, vector<56x512xf32> -> vector<56x512xf32>
    %cst_96 = arith.constant dense<0.000000e+00> : vector<512xf32>
    %241 = vector.multi_reduction <add>, %240, %cst_96 [0] : vector<56x512xf32> to vector<512xf32>
    %242 = vector.shape_cast %241 : vector<512xf32> to vector<1x512xf32>
    %cst_97 = arith.constant 4.900000e+01 : f32
    %243 = vector.broadcast %cst_97 : f32 to vector<1x512xf32>
    %244 = arith.divf %242, %243 : vector<1x512xf32>
    %245 = vector.broadcast %244 : vector<1x512xf32> to vector<56x512xf32>
    %246 = arith.subf %240, %245 : vector<56x512xf32>
    %247 = arith.mulf %246, %246 : vector<56x512xf32>
    %cst_98 = arith.constant dense<0.000000e+00> : vector<512xf32>
    %248 = vector.multi_reduction <add>, %247, %cst_98 [0] : vector<56x512xf32> to vector<512xf32>
    %249 = vector.shape_cast %248 : vector<512xf32> to vector<1x512xf32>
    %cst_99 = arith.constant 7.000000e+00 : f32
    %250 = vector.broadcast %cst_99 : f32 to vector<1x512xf32>
    %251 = arith.mulf %250, %244 : vector<1x512xf32>
    %252 = arith.mulf %251, %244 : vector<1x512xf32>
    %253 = arith.subf %249, %252 : vector<1x512xf32>
    %cst_100 = arith.constant 4.900000e+01 : f32
    %254 = vector.broadcast %cst_100 : f32 to vector<1x512xf32>
    %255 = arith.divf %253, %254 : vector<1x512xf32>
    %c0_101 = arith.constant 0 : index
    %c0_102 = arith.constant 0 : index
    %256 = vector.load %arg3[%c0_101, %c0_102] : memref<1x512xf32, #tpu.memory_space<vmem>>, vector<1x512xf32>
    %cst_103 = arith.constant 9.99999974E-6 : f32
    %257 = vector.broadcast %cst_103 : f32 to vector<1x512xf32>
    %258 = arith.addf %255, %257 : vector<1x512xf32>
    %259 = math.rsqrt %258 : vector<1x512xf32>
    %260 = arith.mulf %256, %259 : vector<1x512xf32>
    %c0_104 = arith.constant 0 : index
    %c0_105 = arith.constant 0 : index
    %261 = vector.load %arg4[%c0_104, %c0_105] : memref<1x512xf32, #tpu.memory_space<vmem>>, vector<1x512xf32>
    %262 = arith.mulf %244, %260 : vector<1x512xf32>
    %263 = arith.subf %261, %262 : vector<1x512xf32>
    %264 = vector.broadcast %260 : vector<1x512xf32> to vector<56x512xf32>
    %265 = arith.mulf %240, %264 : vector<56x512xf32>
    %266 = vector.broadcast %263 : vector<1x512xf32> to vector<56x512xf32>
    %267 = arith.addf %265, %266 : vector<56x512xf32>
    %c0_i32_106 = arith.constant 0 : i32
    %c0_i32_107 = arith.constant 0 : i32
    %c0_i32_108 = arith.constant 0 : i32
    %268 = tpu.memref_slice %arg5[%c0_i32_107, %c0_i32_108] : memref<512x512xf32, #tpu.memory_space<any>> -> memref<128x512xf32, #tpu.memory_space<any>>
    %c0_i32_109 = arith.constant 0 : i32
    %c0_i32_110 = arith.constant 0 : i32
    %269 = tpu.memref_slice %arg8[%c0_i32_109, %c0_i32_110] : memref<512x512xf32, #tpu.memory_space<vmem>> -> memref<128x512xf32, #tpu.memory_space<vmem>>
    %270 = tpu.memref_slice %arg9[%c0_i32_106] : memref<4x!tpu.dma_semaphore, #tpu.memory_space<semaphore_mem>> -> memref<1x!tpu.dma_semaphore, #tpu.memory_space<semaphore_mem>>
    %271 = tpu.memref_squeeze %270 : memref<1x!tpu.dma_semaphore, #tpu.memory_space<semaphore_mem>> -> memref<!tpu.dma_semaphore, #tpu.memory_space<semaphore_mem>>
    tpu.wait_dma2 semaphore(%271 : memref<!tpu.dma_semaphore, #tpu.memory_space<semaphore_mem>>) src(%268 : memref<128x512xf32, #tpu.memory_space<any>>) dst(%269 : memref<128x512xf32, #tpu.memory_space<vmem>>)
    %272 = vector.extract_strided_slice %267 {offsets = [0, 0], sizes = [56, 128], strides = [1, 1]} : vector<56x512xf32> to vector<56x128xf32>
    %c0_111 = arith.constant 0 : index
    %c0_112 = arith.constant 0 : index
    %273 = vector.load %arg8[%c0_111, %c0_112] : memref<512x512xf32, #tpu.memory_space<vmem>>, vector<128x512xf32>
    %cst_113 = arith.constant dense<0.000000e+00> : vector<56x512xf32>
    %274 = tpu.matmul %272, %273, %cst_113 {dimension_numbers = #tpu.dot_dimension_numbers<[1], [0], [0], [1], [0, 0, 1, 1], [], []>} : vector<56x128xf32>, vector<128x512xf32>, vector<56x512xf32> -> vector<56x512xf32>
    %c0_114 = arith.constant 0 : index
    %c0_115 = arith.constant 0 : index
    %275 = vector.load %arg6[%c0_114, %c0_115] : memref<56x512xf32, #tpu.memory_space<vmem>>, vector<56x512xf32>
    tpu.vector_store %arg6[%c0_114, %c0_115], %274 {strides = array<i32>} : memref<56x512xf32, #tpu.memory_space<vmem>>, vector<56x512xf32>,
    %c1_i32_116 = arith.constant 1 : i32
    %c128_i32_117 = arith.constant 128 : i32
    %c0_i32_118 = arith.constant 0 : i32
    %276 = tpu.memref_slice %arg5[%c128_i32_117, %c0_i32_118] : memref<512x512xf32, #tpu.memory_space<any>> -> memref<128x512xf32, #tpu.memory_space<any>>
    %c128_i32_119 = arith.constant 128 : i32
    %c0_i32_120 = arith.constant 0 : i32
    %277 = tpu.memref_slice %arg8[%c128_i32_119, %c0_i32_120] : memref<512x512xf32, #tpu.memory_space<vmem>> -> memref<128x512xf32, #tpu.memory_space<vmem>>
    %278 = tpu.memref_slice %arg9[%c1_i32_116] : memref<4x!tpu.dma_semaphore, #tpu.memory_space<semaphore_mem>> -> memref<1x!tpu.dma_semaphore, #tpu.memory_space<semaphore_mem>>
    %279 = tpu.memref_squeeze %278 : memref<1x!tpu.dma_semaphore, #tpu.memory_space<semaphore_mem>> -> memref<!tpu.dma_semaphore, #tpu.memory_space<semaphore_mem>>
    tpu.wait_dma2 semaphore(%279 : memref<!tpu.dma_semaphore, #tpu.memory_space<semaphore_mem>>) src(%276 : memref<128x512xf32, #tpu.memory_space<any>>) dst(%277 : memref<128x512xf32, #tpu.memory_space<vmem>>)
    %280 = vector.extract_strided_slice %267 {offsets = [0, 128], sizes = [56, 128], strides = [1, 1]} : vector<56x512xf32> to vector<56x128xf32>
    %c128_121 = arith.constant 128 : index
    %c0_122 = arith.constant 0 : index
    %281 = vector.load %arg8[%c128_121, %c0_122] : memref<512x512xf32, #tpu.memory_space<vmem>>, vector<128x512xf32>
    %cst_123 = arith.constant dense<0.000000e+00> : vector<56x512xf32>
    %282 = tpu.matmul %280, %281, %cst_123 {dimension_numbers = #tpu.dot_dimension_numbers<[1], [0], [0], [1], [0, 0, 1, 1], [], []>} : vector<56x128xf32>, vector<128x512xf32>, vector<56x512xf32> -> vector<56x512xf32>
    %c0_124 = arith.constant 0 : index
    %c0_125 = arith.constant 0 : index
    %283 = vector.load %arg6[%c0_124, %c0_125] : memref<56x512xf32, #tpu.memory_space<vmem>>, vector<56x512xf32>
    %284 = arith.addf %283, %282 : vector<56x512xf32>
    %c0_126 = arith.constant 0 : index
    %c0_127 = arith.constant 0 : index
    %285 = vector.load %arg6[%c0_126, %c0_127] : memref<56x512xf32, #tpu.memory_space<vmem>>, vector<56x512xf32>
    tpu.vector_store %arg6[%c0_126, %c0_127], %284 {strides = array<i32>} : memref<56x512xf32, #tpu.memory_space<vmem>>, vector<56x512xf32>,
    %c2_i32_128 = arith.constant 2 : i32
    %c256_i32_129 = arith.constant 256 : i32
    %c0_i32_130 = arith.constant 0 : i32
    %286 = tpu.memref_slice %arg5[%c256_i32_129, %c0_i32_130] : memref<512x512xf32, #tpu.memory_space<any>> -> memref<128x512xf32, #tpu.memory_space<any>>
    %c256_i32_131 = arith.constant 256 : i32
    %c0_i32_132 = arith.constant 0 : i32
    %287 = tpu.memref_slice %arg8[%c256_i32_131, %c0_i32_132] : memref<512x512xf32, #tpu.memory_space<vmem>> -> memref<128x512xf32, #tpu.memory_space<vmem>>
    %288 = tpu.memref_slice %arg9[%c2_i32_128] : memref<4x!tpu.dma_semaphore, #tpu.memory_space<semaphore_mem>> -> memref<1x!tpu.dma_semaphore, #tpu.memory_space<semaphore_mem>>
    %289 = tpu.memref_squeeze %288 : memref<1x!tpu.dma_semaphore, #tpu.memory_space<semaphore_mem>> -> memref<!tpu.dma_semaphore, #tpu.memory_space<semaphore_mem>>
    tpu.wait_dma2 semaphore(%289 : memref<!tpu.dma_semaphore, #tpu.memory_space<semaphore_mem>>) src(%286 : memref<128x512xf32, #tpu.memory_space<any>>) dst(%287 : memref<128x512xf32, #tpu.memory_space<vmem>>)
    %290 = vector.extract_strided_slice %267 {offsets = [0, 256], sizes = [56, 128], strides = [1, 1]} : vector<56x512xf32> to vector<56x128xf32>
    %c256_133 = arith.constant 256 : index
    %c0_134 = arith.constant 0 : index
    %291 = vector.load %arg8[%c256_133, %c0_134] : memref<512x512xf32, #tpu.memory_space<vmem>>, vector<128x512xf32>
    %cst_135 = arith.constant dense<0.000000e+00> : vector<56x512xf32>
    %292 = tpu.matmul %290, %291, %cst_135 {dimension_numbers = #tpu.dot_dimension_numbers<[1], [0], [0], [1], [0, 0, 1, 1], [], []>} : vector<56x128xf32>, vector<128x512xf32>, vector<56x512xf32> -> vector<56x512xf32>
    %c0_136 = arith.constant 0 : index
    %c0_137 = arith.constant 0 : index
    %293 = vector.load %arg6[%c0_136, %c0_137] : memref<56x512xf32, #tpu.memory_space<vmem>>, vector<56x512xf32>
    %294 = arith.addf %293, %292 : vector<56x512xf32>
    %c0_138 = arith.constant 0 : index
    %c0_139 = arith.constant 0 : index
    %295 = vector.load %arg6[%c0_138, %c0_139] : memref<56x512xf32, #tpu.memory_space<vmem>>, vector<56x512xf32>
    tpu.vector_store %arg6[%c0_138, %c0_139], %294 {strides = array<i32>} : memref<56x512xf32, #tpu.memory_space<vmem>>, vector<56x512xf32>,
    %c3_i32_140 = arith.constant 3 : i32
    %c384_i32_141 = arith.constant 384 : i32
    %c0_i32_142 = arith.constant 0 : i32
    %296 = tpu.memref_slice %arg5[%c384_i32_141, %c0_i32_142] : memref<512x512xf32, #tpu.memory_space<any>> -> memref<128x512xf32, #tpu.memory_space<any>>
    %c384_i32_143 = arith.constant 384 : i32
    %c0_i32_144 = arith.constant 0 : i32
    %297 = tpu.memref_slice %arg8[%c384_i32_143, %c0_i32_144] : memref<512x512xf32, #tpu.memory_space<vmem>> -> memref<128x512xf32, #tpu.memory_space<vmem>>
    %298 = tpu.memref_slice %arg9[%c3_i32_140] : memref<4x!tpu.dma_semaphore, #tpu.memory_space<semaphore_mem>> -> memref<1x!tpu.dma_semaphore, #tpu.memory_space<semaphore_mem>>
    %299 = tpu.memref_squeeze %298 : memref<1x!tpu.dma_semaphore, #tpu.memory_space<semaphore_mem>> -> memref<!tpu.dma_semaphore, #tpu.memory_space<semaphore_mem>>
    tpu.wait_dma2 semaphore(%299 : memref<!tpu.dma_semaphore, #tpu.memory_space<semaphore_mem>>) src(%296 : memref<128x512xf32, #tpu.memory_space<any>>) dst(%297 : memref<128x512xf32, #tpu.memory_space<vmem>>)
    %300 = vector.extract_strided_slice %267 {offsets = [0, 384], sizes = [56, 128], strides = [1, 1]} : vector<56x512xf32> to vector<56x128xf32>
    %c384_145 = arith.constant 384 : index
    %c0_146 = arith.constant 0 : index
    %301 = vector.load %arg8[%c384_145, %c0_146] : memref<512x512xf32, #tpu.memory_space<vmem>>, vector<128x512xf32>
    %cst_147 = arith.constant dense<0.000000e+00> : vector<56x512xf32>
    %302 = tpu.matmul %300, %301, %cst_147 {dimension_numbers = #tpu.dot_dimension_numbers<[1], [0], [0], [1], [0, 0, 1, 1], [], []>} : vector<56x128xf32>, vector<128x512xf32>, vector<56x512xf32> -> vector<56x512xf32>
    %c0_148 = arith.constant 0 : index
    %c0_149 = arith.constant 0 : index
    %303 = vector.load %arg6[%c0_148, %c0_149] : memref<56x512xf32, #tpu.memory_space<vmem>>, vector<56x512xf32>
    %304 = arith.addf %303, %302 : vector<56x512xf32>
    %c0_150 = arith.constant 0 : index
    %c0_151 = arith.constant 0 : index
    %305 = vector.load %arg6[%c0_150, %c0_151] : memref<56x512xf32, #tpu.memory_space<vmem>>, vector<56x512xf32>
    tpu.vector_store %arg6[%c0_150, %c0_151], %304 {strides = array<i32>} : memref<56x512xf32, #tpu.memory_space<vmem>>, vector<56x512xf32>,
    return
  }
}

</mosaic_0001>

<bundles_post_ra>
// kernel: module_forward.1
= control target key start
LH: loop header
LB: loop body
LE: loop exit
PB: predicated region body
PF: predicated region fallthrough
CT: control target
= control target key end

     0   :  { %v136_v0 = vlaneseq  ;;  %s4096_s25 = smov [#allocation3 + $0x200]   ;;  %s5442_s0 = inlined_call_operand.vmem [shape: f32[56,512], index: 0, kind: input, shape index: {}]   ;;  %s5443_s2 = inlined_call_operand.vmem [shape: f32[9,512], index: 2, kind: input, shape index: {}]   ;;  %s5444_s1 = inlined_call_operand.vmem [shape: bf16[56,512], index: 1, kind: input, shape index: {}]   ;;  %s5445_s5 = inlined_call_operand.hbm [shape: f32[512,512], index: 5, kind: input, shape index: {}]   ;;  %s5446_s6 = inlined_call_operand.vmem [shape: f32[56,512], index: 6, kind: output, shape index: {}]   ;;  %s5447_s3 = inlined_call_operand.vmem [shape: f32[1,512], index: 3, kind: input, shape index: {}]   ;;  %s5448_s4 = inlined_call_operand.vmem [shape: f32[1,512], index: 4, kind: input, shape index: {}]  }
   0x1   :  { %v75_v1 = vld [vmem:[%s5442_s0 + $0x8] sm:$0xff]  ;;  %v77_v7 = vld [vmem:[%s5442_s0 + $0x18] sm:$0xff]  ;;  %v74_v9 = vld [vmem:[%s5442_s0] sm:$0xff]  ;;  %s42_s26 = sshll.u32 %s4096_s25, 4  ;;  %s4923_s29 = scalar_lea.hbm %s5445_s5, 8192  ;;  %s43_s26 = int_to_ptr.vmem [resolvable:$true] %s42_s26 }
   0x2   :  { %v79_v2 = vld [vmem:[%s5442_s0 + $0x28] sm:$0xff]  ;;  %v4145_v4 = vmax.f32 %v75_v1, 0.0  ;;  %v4149_v6 = vshrl.u32 %v136_v0, 7  ;;  %v81_v8 = vld [vmem:[%s5442_s0 + $0x38] sm:$0xff]  ;;  %v4160_v10 = vmax.f32 %v77_v7, 0.0  ;;  %v78_v12 = vld [vmem:[%s5442_s0 + $0x20] sm:$0xff]  ;;  %p3991_p0 = scmp.ne.s32.totalorder %s5445_s5, %s4923_s29  ;;  %p3994_p2 = scmp.lt.u32.totalorder %s4923_s29, %s5445_s5 }
   0x3   :  { %v134_v3 = vld [vmem:[%s5443_s2] ss:$8 sm:$0xf]  ;;  %v4147_v5 = vmax.f32 %v79_v2, 0.0  ;;  %v4162_v11 = vmax.f32 %v81_v8, 0.0  ;;  %v4167_v13 = vmax.f32 %v74_v9, 0.0 }
   0x4   :  { %5459 = vst [vmem:[#allocation19_spill] sm:$0xff] %v4145_v4  ;;  %5460 = vst [vmem:[#allocation20_spill] sm:$0xff] %v4149_v6  ;;  %v76_v14 = vld [vmem:[%s5442_s0 + $0x10] sm:$0xff]  ;;  %v4176_v16 = vsub.s32 1, %v4149_v6  ;;  %v4179_v17 = vsub.s32 3, %v4149_v6  ;;  %v4181_v18 = vmax.f32 %v78_v12, 0.0 }
   0x5   :  { %5461 = vst [vmem:[#allocation21_spill] sm:$0xff] %v4160_v10  ;;  %v80_v15 = vld [vmem:[%s5442_s0 + $0x30] sm:$0xff]  ;;  %v4184_v19 = vsub.s32 0, %v4149_v6  ;;  %v83_v20 = vld [vmem:[%s5442_s0 + $0x48] sm:$0xff]  ;;  %v4192_v22 = vmax.f32 %v76_v14, 0.0  ;;  %v4197_v24 = vsub.s32 2, %v4149_v6 }
   0x6   :  { %v87_v21 = vld [vmem:[%s5442_s0 + $0x68] sm:$0xff]  ;;  %v4194_v23 = vmax.f32 %v80_v15, 0.0  ;;  %v4199_v25 = vmax.f32 %v83_v20, 0.0  ;;  %v85_v26 = vld [vmem:[%s5442_s0 + $0x58] sm:$0xff]  ;;  %v4208_v28 = vrot.slane %v134_v3, %v4176_v16  ;;  %v4211_v29 = vrot.slane %v134_v3, %v4179_v17  ;;  %v82_v32 = vld [vmem:[%s5442_s0 + $0x40] sm:$0xff] }
   0x7   :  { %5462 = vst [vmem:[#allocation22_spill] sm:$0xff] %v4192_v22  ;;  %v89_v27 = vld [vmem:[%s5442_s0 + $0x78] sm:$0xff]  ;;  %v4214_v30 = vrot.slane %v134_v3, %v4184_v19  ;;  %v4216_v31 = vmax.f32 %v87_v21, 0.0  ;;  %v4222_v33 = vrot.slane %v134_v3, %v4197_v24  ;;  %v4224_v34 = vmax.f32 %v85_v26, 0.0  ;;  %v86_v45 = vld [vmem:[%s5442_s0 + $0x60] sm:$0xff]  ;;  %v84_v46 = vld [vmem:[%s5442_s0 + $0x50] sm:$0xff] }
   0x8   :  { %v4226_v35 = vmax.f32 %v89_v27, 0.0  ;;  %v4228_v36 = vmax.f32 %v82_v32, 0.0  ;;  %v157_v37 = vmul.f32 %v4208_v28, %v4145_v4  ;;  %v165_v38 = vmul.f32 %v4208_v28, %v4147_v5  ;;  %v88_v51 = vld [vmem:[%s5442_s0 + $0x70] sm:$0xff]  ;;  %v91_v52 = vld [vmem:[%s5442_s0 + $0x88] sm:$0xff]  ;;  %v93_v58 = vld [vmem:[%s5442_s0 + $0x98] sm:$0xff] }
   0x9   :  { %v159_v39 = vmul.f32 %v4211_v29, %v4160_v10  ;;  %v167_v40 = vmul.f32 %v4211_v29, %v4162_v11  ;;  %v156_v41 = vmul.f32 %v4214_v30, %v4167_v13  ;;  %v164_v42 = vmul.f32 %v4214_v30, %v4181_v18  ;;  %v95_v53 = vld [vmem:[%s5442_s0 + $0xa8] sm:$0xff]  ;;  %v97_v59 = vld [vmem:[%s5442_s0 + $0xb8] sm:$0xff]  ;;  %v90_v0 = vld [vmem:[%s5442_s0 + $0x80] sm:$0xff] }
   0xa   :  { %v158_v43 = vmul.f32 %v4222_v33, %v4192_v22  ;;  %v166_v44 = vmul.f32 %v4222_v33, %v4194_v23  ;;  %v3360_v47 = vpack.c.bf16 %v165_v38, %v157_v37  ;;  %v173_v49 = vmul.f32 %v4208_v28, %v4199_v25  ;;  %v94_v8 = vld [vmem:[%s5442_s0 + $0xa0] sm:$0xff]  ;;  %v92_v20 = vld [vmem:[%s5442_s0 + $0x90] sm:$0xff]  ;;  %v99_v38 = vld [vmem:[%s5442_s0 + $0xc8] sm:$0xff] }
   0xb   :  { %v3484_v48 = vpack.c.bf16 %v167_v40, %v159_v39  ;;  %v181_v50 = vmul.f32 %v4208_v28, %v4216_v31  ;;  %v3362_v54 = vpack.c.bf16 %v164_v42, %v156_v41  ;;  %v175_v56 = vmul.f32 %v4211_v29, %v4224_v34  ;;  %v96_v37 = vld [vmem:[%s5442_s0 + $0xb0] sm:$0xff] }
   0xc   :  { %v3486_v55 = vpack.c.bf16 %v166_v44, %v158_v43  ;;  %v183_v57 = vmul.f32 %v4211_v29, %v4226_v35  ;;  %3361 = vmatprep.subr.bf16.mxu0 %v3360_v47  ;;  %v4275_v61 = vmax.f32 %v86_v45, 0.0  ;;  %v172_v62 = vmul.f32 %v4214_v30, %v4228_v36  ;;  %v3348_v43 = vld [vmem:[%s5443_s2 + $0x1] ss:$8 sm:$0xf] }
   0xd   :  { %3485 = vmatprep.subr.bf16.mxu1 %v3484_v48  ;;  %v3364_v60 = vpack.c.bf16 %v181_v50, %v173_v49  ;;  %v4279_v63 = vmax.f32 %v84_v46, 0.0  ;;  %3363 = vmatpush1.bf16.msra.mxu0 %v3362_v54  ;;  %v4284_v2 = vmax.f32 %v88_v51, 0.0  ;;  %v4286_v3 = vmax.f32 %v91_v52, 0.0  ;;  %v101_v44 = vld [vmem:[%s5442_s0 + $0xd8] sm:$0xff]  ;;  %v98_v49 = vld [vmem:[%s5442_s0 + $0xc0] sm:$0xff] }
   0xe   :  { %3487 = vmatpush1.bf16.msra.mxu1 %v3486_v55  ;;  %v3488_v1 = vpack.c.bf16 %v183_v57, %v175_v56  ;;  %v4288_v7 = vmax.f32 %v95_v53, 0.0  ;;  %v180_v9 = vmul.f32 %v4214_v30, %v4275_v61  ;;  %v4297_v14 = vmax.f32 %v93_v58, 0.0  ;;  %v100_v58 = vld [vmem:[%s5442_s0 + $0xd0] sm:$0xff] }
   0xf   :  { %3365 = vmatprep.subr.bf16.mxu0 %v3364_v60  ;;  %v174_v12 = vmul.f32 %v4222_v33, %v4279_v63  ;;  %v4299_v15 = vmax.f32 %v97_v59, 0.0  ;;  %v182_v21 = vmul.f32 %v4222_v33, %v4284_v2  ;;  %v189_v26 = vmul.f32 %v4208_v28, %v4286_v3 }
  0x10   :  { %3489 = vmatprep.subr.bf16.mxu1 %v3488_v1  ;;  %v197_v27 = vmul.f32 %v4208_v28, %v4288_v7  ;;  %v4310_v32 = vmax.f32 %v90_v0, 0.0  ;;  %v3366_v39 = vpack.c.bf16 %v180_v9, %v172_v62  ;;  %v191_v40 = vmul.f32 %v4211_v29, %v4297_v14 }
  0x11   :  { %v199_v41 = vmul.f32 %v4211_v29, %v4299_v15  ;;  %v4322_v42 = vmax.f32 %v94_v8, 0.0  ;;  %v3490_v45 = vpack.c.bf16 %v182_v21, %v174_v12  ;;  %v4332_v48 = vmax.f32 %v92_v20, 0.0 }
  0x12   :  { %v3368_v46 = vpack.c.bf16 %v197_v27, %v189_v26  ;;  %v188_v47 = vmul.f32 %v4214_v30, %v4310_v32  ;;  %3367 = vmatpush1.bf16.msra.mxu0 %v3366_v39  ;;  %v4339_v52 = vmax.f32 %v96_v37, 0.0  ;;  %v4341_v53 = vmax.f32 %v99_v38, 0.0 }
  0x13   :  { %v3492_v50 = vpack.c.bf16 %v199_v41, %v191_v40  ;;  %v196_v51 = vmul.f32 %v4214_v30, %v4322_v42  ;;  %3491 = vmatpush1.bf16.msra.mxu1 %v3490_v45  ;;  %v190_v54 = vmul.f32 %v4222_v33, %v4332_v48  ;;  %v222_v55 = vrot.slane %v3348_v43, %v4176_v16 }
  0x14   :  { %3369 = vmatprep.subr.bf16.mxu0 %v3368_v46  ;;  %v4346_v56 = vmax.f32 %v101_v44, 0.0  ;;  %v230_v57 = vrot.slane %v3348_v43, %v4179_v17  ;;  %v198_v60 = vmul.f32 %v4222_v33, %v4339_v52  ;;  %v205_v62 = vmul.f32 %v4208_v28, %v4341_v53  ;;  %v4380_v46 = vld [vmem:[%s5444_s1] sm:$0xff] }
  0x15   :  { %3493 = vmatprep.subr.bf16.mxu1 %v3492_v50  ;;  %v3370_v59 = vpack.c.bf16 %v196_v51, %v188_v47  ;;  %v4356_v0 = vmax.f32 %v98_v49, 0.0  ;;  %v236_v1 = vmul.f32 %v222_v55, %v4145_v4  ;;  %v218_v12 = vrot.slane %v3348_v43, %v4184_v19 }
  0x16   :  { %v207_v8 = vmul.f32 %v4211_v29, %v4346_v56  ;;  %v238_v9 = vmul.f32 %v230_v57, %v4160_v10  ;;  %v3494_v20 = vpack.c.bf16 %v198_v60, %v190_v54  ;;  %v4365_v26 = vmax.f32 %v100_v58, 0.0 }
  0x17   :  { %3371 = vmatpush1.bf16.msra.mxu0 %v3370_v59  ;;  %v204_v21 = vmul.f32 %v4214_v30, %v4356_v0  ;;  %v226_v28 = vrot.slane %v3348_v43, %v4197_v24  ;;  %v3372_v27 = vpack.c.bf16 %v236_v1, %v205_v62  ;;  %v235_v38 = vmul.f32 %v218_v12, %v4167_v13 }
  0x18   :  { %v3496_v37 = vpack.c.bf16 %v238_v9, %v207_v8  ;;  %v244_v39 = vmul.f32 %v222_v55, %v4147_v5  ;;  %3495 = vmatpush1.bf16.msra.mxu1 %v3494_v20  ;;  %v206_v29 = vmul.f32 %v4222_v33, %v4365_v26  ;;  %v252_v41 = vmul.f32 %v222_v55, %v4199_v25 }
  0x19   :  { %v237_v40 = vmul.f32 %v226_v28, %v4192_v22  ;;  %v246_v30 = vmul.f32 %v230_v57, %v4162_v11  ;;  %3373 = vmatprep.subr.bf16.mxu0 %v3372_v27  ;;  %v3374_v44 = vpack.c.bf16 %v235_v38, %v204_v21  ;;  %v254_v43 = vmul.f32 %v230_v57, %v4224_v34 }
  0x1a   :  { %3497 = vmatprep.subr.bf16.mxu1 %v3496_v37  ;;  %v243_v45 = vmul.f32 %v218_v12, %v4181_v18  ;;  %v3376_v33 = vpack.c.bf16 %v252_v41, %v244_v39  ;;  %v251_v49 = vmul.f32 %v218_v12, %v4228_v36  ;;  %v245_v50 = vmul.f32 %v226_v28, %v4194_v23 }
  0x1b   :  { %v3498_v47 = vpack.c.bf16 %v237_v40, %v206_v29  ;;  %3375 = vmatpush1.bf16.msra.mxu0 %v3374_v44  ;;  %v3500_v51 = vpack.c.bf16 %v254_v43, %v246_v30  ;;  %v253_v54 = vmul.f32 %v226_v28, %v4279_v63  ;;  %v260_v58 = vmul.f32 %v222_v55, %v4216_v31  ;;  %v3349_v43 = vld [vmem:[%s5443_s2 + $0x2] ss:$8 sm:$0xf] }
  0x1c   :  { %v268_v59 = vmul.f32 %v222_v55, %v4286_v3  ;;  %3377 = vmatprep.subr.bf16.mxu0 %v3376_v33  ;;  %v3378_v60 = vpack.c.bf16 %v251_v49, %v243_v45  ;;  %v262_v62 = vmul.f32 %v230_v57, %v4226_v35  ;;  %v270_v1 = vmul.f32 %v230_v57, %v4297_v14  ;;  %v4406_v49 = vld [vmem:[%s5443_s2 + $0x3] ss:$8 sm:$0xf] }
  0x1d   :  { %3499 = vmatpush1.bf16.msra.mxu1 %v3498_v47  ;;  %v859_v8 = vunpack.c.h.bf16 %v4380_v46  ;;  %v3502_v9 = vpack.c.bf16 %v253_v54, %v245_v50  ;;  %v259_v21 = vmul.f32 %v218_v12, %v4275_v61  ;;  %v267_v27 = vmul.f32 %v218_v12, %v4310_v32 }
  0x1e   :  { %3501 = vmatprep.subr.bf16.mxu1 %v3500_v51  ;;  %v3380_v20 = vpack.c.bf16 %v268_v59, %v260_v58  ;;  %v3504_v37 = vpack.c.bf16 %v270_v1, %v262_v62  ;;  %v261_v38 = vmul.f32 %v226_v28, %v4284_v2  ;;  %v269_v39 = vmul.f32 %v226_v28, %v4332_v48 }
  0x1f   :  { %v276_v29 = vmul.f32 %v222_v55, %v4288_v7  ;;  %1206 = vmatprep.mubr.f32.mxu0 %v859_v8  ;;  %3379 = vmatpush1.bf16.msra.mxu0 %v3378_v60  ;;  %v3382_v40 = vpack.c.bf16 %v267_v27, %v259_v21  ;;  %v284_v41 = vmul.f32 %v222_v55, %v4341_v53 }
  0x20   :  { %v278_v30 = vmul.f32 %v230_v57, %v4299_v15  ;;  %v286_v44 = vmul.f32 %v230_v57, %v4346_v56  ;;  %3381 = vmatprep.subr.bf16.mxu0 %v3380_v20  ;;  %v3506_v45 = vpack.c.bf16 %v269_v39, %v261_v38  ;;  %v275_v47 = vmul.f32 %v218_v12, %v4322_v42 }
  0x21   :  { %3503 = vmatpush1.bf16.msra.mxu1 %v3502_v9  ;;  %v283_v33 = vmul.f32 %v218_v12, %v4356_v0  ;;  %v3384_v55 = vpack.c.bf16 %v284_v41, %v276_v29  ;;  %v277_v57 = vmul.f32 %v226_v28, %v4339_v52  ;;  %v285_v51 = vmul.f32 %v226_v28, %v4365_v26 }
  0x22   :  { %3505 = vmatprep.subr.bf16.mxu1 %v3504_v37  ;;  %v3508_v50 = vpack.c.bf16 %v286_v44, %v278_v30  ;;  %v301_v58 = vrot.slane %v3349_v43, %v4176_v16  ;;  %v309_v59 = vrot.slane %v3349_v43, %v4179_v17  ;;  %v297_v60 = vrot.slane %v3349_v43, %v4184_v19 }
  0x23   :  { %v3386_v54 = vpack.c.bf16 %v283_v33, %v275_v47  ;;  %1420 = vmatprep.mubr.f32.mxu1 %v859_v8  ;;  %3383 = vmatpush1.bf16.msra.mxu0 %v3382_v40  ;;  %v3510_v12 = vpack.c.bf16 %v285_v51, %v277_v57  ;;  %v305_v62 = vrot.slane %v3349_v43, %v4197_v24 }
  0x24   :  { %v4416_v1 = vrot.slane %v4406_v49, %v4176_v16  ;;  %v4420_v9 = vrot.slane %v4406_v49, %v4179_v17  ;;  %3385 = vmatprep.subr.bf16.mxu0 %v3384_v55  ;;  %v315_v28 = vmul.f32 %v301_v58, %v4145_v4  ;;  %v323_v20 = vmul.f32 %v301_v58, %v4147_v5 }
  0x25   :  { %3507 = vmatpush1.bf16.msra.mxu1 %v3506_v45  ;;  %v317_v8 = vmul.f32 %v309_v59, %v4160_v10  ;;  %v325_v21 = vmul.f32 %v309_v59, %v4162_v11  ;;  %v314_v27 = vmul.f32 %v297_v60, %v4167_v13  ;;  %v322_v37 = vmul.f32 %v297_v60, %v4181_v18 }
  0x26   :  { %3509 = vmatprep.subr.bf16.mxu1 %v3508_v50  ;;  %v316_v38 = vmul.f32 %v305_v62, %v4192_v22  ;;  %v3388_v39 = vpack.c.bf16 %v323_v20, %v315_v28  ;;  %v324_v29 = vmul.f32 %v305_v62, %v4194_v23  ;;  %v331_v40 = vmul.f32 %v301_v58, %v4199_v25 }
  0x27   :  { %v339_v41 = vmul.f32 %v301_v58, %v4216_v31  ;;  %3387 = vmatpush1.bf16.msra.mxu0 %v3386_v54  ;;  %v3512_v30 = vpack.c.bf16 %v325_v21, %v317_v8  ;;  %v3390_v44 = vpack.c.bf16 %v322_v37, %v314_v27  ;;  %v333_v43 = vmul.f32 %v309_v59, %v4224_v34 }
  0x28   :  { %v341_v45 = vmul.f32 %v309_v59, %v4226_v35  ;;  %3389 = vmatprep.subr.bf16.mxu0 %v3388_v39  ;;  %v3514_v47 = vpack.c.bf16 %v324_v29, %v316_v38  ;;  %v330_v55 = vmul.f32 %v297_v60, %v4228_v36  ;;  %v338_v57 = vmul.f32 %v297_v60, %v4275_v61 }
  0x29   :  { %3511 = vmatpush1.bf16.msra.mxu1 %v3510_v12  ;;  %v3392_v33 = vpack.c.bf16 %v339_v41, %v331_v40  ;;  %v332_v51 = vmul.f32 %v305_v62, %v4279_v63  ;;  %v340_v54 = vmul.f32 %v305_v62, %v4284_v2  ;;  %v347_v28 = vmul.f32 %v301_v58, %v4286_v3 }
  0x2a   :  { %3513 = vmatprep.subr.bf16.mxu1 %v3512_v30  ;;  %v3516_v50 = vpack.c.bf16 %v341_v45, %v333_v43  ;;  %v355_v20 = vmul.f32 %v301_v58, %v4288_v7  ;;  %v349_v8 = vmul.f32 %v309_v59, %v4297_v14  ;;  %v357_v12 = vmul.f32 %v309_v59, %v4299_v15 }
  0x2b   :  { %3391 = vmatpush1.bf16.msra.mxu0 %v3390_v44  ;;  %v3394_v21 = vpack.c.bf16 %v338_v57, %v330_v55  ;;  %v3518_v27 = vpack.c.bf16 %v340_v54, %v332_v51  ;;  %v346_v37 = vmul.f32 %v297_v60, %v4310_v32  ;;  %v354_v38 = vmul.f32 %v297_v60, %v4322_v42 }
  0x2c   :  { %3393 = vmatprep.subr.bf16.mxu0 %v3392_v33  ;;  %v3396_v39 = vpack.c.bf16 %v355_v20, %v347_v28  ;;  %v3520_v29 = vpack.c.bf16 %v357_v12, %v349_v8  ;;  %v348_v40 = vmul.f32 %v305_v62, %v4332_v48  ;;  %v356_v30 = vmul.f32 %v305_v62, %v4339_v52 }
  0x2d   :  { %3515 = vmatpush1.bf16.msra.mxu1 %v3514_v47  ;;  %v3398_v41 = vpack.c.bf16 %v354_v38, %v346_v37  ;;  %v363_v43 = vmul.f32 %v301_v58, %v4341_v53  ;;  %v394_v44 = vmul.f32 %v4416_v1, %v4145_v4  ;;  %v365_v45 = vmul.f32 %v309_v59, %v4346_v56 }
  0x2e   :  { %3517 = vmatprep.subr.bf16.mxu1 %v3516_v50  ;;  %v396_v55 = vmul.f32 %v4420_v9, %v4160_v10  ;;  %v362_v47 = vmul.f32 %v297_v60, %v4356_v0  ;;  %v376_v33 = vrot.slane %v4406_v49, %v4184_v19  ;;  %v3522_v50 = vpack.c.bf16 %v356_v30, %v348_v40 }
  0x2f   :  { %3395 = vmatpush1.bf16.msra.mxu0 %v3394_v21  ;;  %v3400_v57 = vpack.c.bf16 %v394_v44, %v363_v43  ;;  %v364_v51 = vmul.f32 %v305_v62, %v4365_v26  ;;  %v384_v58 = vrot.slane %v4406_v49, %v4197_v24  ;;  %v402_v28 = vmul.f32 %v4416_v1, %v4147_v5 }
  0x30   :  { %3397 = vmatprep.subr.bf16.mxu0 %v3396_v39  ;;  %v3524_v54 = vpack.c.bf16 %v396_v55, %v365_v45  ;;  %v393_v59 = vmul.f32 %v376_v33, %v4167_v13  ;;  %v410_v20 = vmul.f32 %v4416_v1, %v4199_v25  ;;  %v404_v62 = vmul.f32 %v4420_v9, %v4162_v11 }
  0x31   :  { %3519 = vmatpush1.bf16.msra.mxu1 %v3518_v27  ;;  %v395_v60 = vmul.f32 %v384_v58, %v4192_v22  ;;  %v412_v49 = vmul.f32 %v4420_v9, %v4224_v34  ;;  %v401_v12 = vmul.f32 %v376_v33, %v4181_v18  ;;  %v409_v37 = vmul.f32 %v376_v33, %v4228_v36 }
  0x32   :  { %3521 = vmatprep.subr.bf16.mxu1 %v3520_v29  ;;  %v3402_v8 = vpack.c.bf16 %v393_v59, %v362_v47  ;;  %v3404_v27 = vpack.c.bf16 %v410_v20, %v402_v28  ;;  %v403_v38 = vmul.f32 %v384_v58, %v4194_v23  ;;  %v411_v39 = vmul.f32 %v384_v58, %v4279_v63 }
  0x33   :  { %3399 = vmatpush1.bf16.msra.mxu0 %v3398_v41  ;;  %v3526_v21 = vpack.c.bf16 %v395_v60, %v364_v51  ;;  %v418_v29 = vmul.f32 %v4416_v1, %v4216_v31  ;;  %v426_v40 = vmul.f32 %v4416_v1, %v4286_v3  ;;  %v3528_v30 = vpack.c.bf16 %v412_v49, %v404_v62 }
  0x34   :  { %3401 = vmatprep.subr.bf16.mxu0 %v3400_v57  ;;  %v420_v41 = vmul.f32 %v4420_v9, %v4226_v35  ;;  %v428_v43 = vmul.f32 %v4420_v9, %v4297_v14  ;;  %v417_v44 = vmul.f32 %v376_v33, %v4275_v61  ;;  %v425_v45 = vmul.f32 %v376_v33, %v4310_v32 }
  0x35   :  { %3523 = vmatpush1.bf16.msra.mxu1 %v3522_v50  ;;  %v419_v55 = vmul.f32 %v384_v58, %v4284_v2  ;;  %v427_v47 = vmul.f32 %v384_v58, %v4332_v48  ;;  %v3406_v50 = vpack.c.bf16 %v409_v37, %v401_v12  ;;  %v434_v57 = vmul.f32 %v4416_v1, %v4288_v7 }
  0x36   :  { %3525 = vmatprep.subr.bf16.mxu1 %v3524_v54  ;;  %v442_v51 = vmul.f32 %v4416_v1, %v4341_v53  ;;  %v3351_v54 = vld [vmem:[%s5443_s2 + $0x4] ss:$8 sm:$0xf]  ;;  %v3530_v59 = vpack.c.bf16 %v411_v39, %v403_v38  ;;  %v3408_v28 = vpack.c.bf16 %v426_v40, %v418_v29  ;;  %v3532_v60 = vpack.c.bf16 %v428_v43, %v420_v41 }
  0x37   :  { %3403 = vmatpush1.bf16.msra.mxu0 %v3402_v8  ;;  %v3410_v20 = vpack.c.bf16 %v425_v45, %v417_v44  ;;  %v3534_v62 = vpack.c.bf16 %v427_v47, %v419_v55  ;;  %v436_v49 = vmul.f32 %v4420_v9, %v4299_v15  ;;  %v444_v8 = vmul.f32 %v4420_v9, %v4346_v56 }
  0x38   :  { %3405 = vmatprep.subr.bf16.mxu0 %v3404_v27  ;;  %v3412_v12 = vpack.c.bf16 %v442_v51, %v434_v57  ;;  %v433_v1 = vmul.f32 %v376_v33, %v4322_v42  ;;  %v459_v37 = vrot.slane %v3351_v54, %v4176_v16  ;;  %v441_v27 = vmul.f32 %v376_v33, %v4356_v0  ;;  %v3352_v51 = vld [vmem:[%s5443_s2 + $0x5] ss:$8 sm:$0xf] }
  0x39   :  { %3527 = vmatpush1.bf16.msra.mxu1 %v3526_v21  ;;  %v4498_v21 = vrot.slane %v3351_v54, %v4179_v17  ;;  %v435_v38 = vmul.f32 %v384_v58, %v4339_v52  ;;  %v4503_v39 = vrot.slane %v3351_v54, %v4184_v19  ;;  %v4506_v29 = vrot.slane %v3351_v54, %v4197_v24 }
  0x3a   :  { %3529 = vmatprep.subr.bf16.mxu1 %v3528_v30  ;;  %v443_v9 = vmul.f32 %v384_v58, %v4365_v26  ;;  %v473_v40 = vmul.f32 %v459_v37, %v4145_v4  ;;  %v481_v30 = vmul.f32 %v459_v37, %v4147_v5  ;;  %v3536_v41 = vpack.c.bf16 %v444_v8, %v436_v49 }
  0x3b   :  { %3407 = vmatpush1.bf16.msra.mxu0 %v3406_v50  ;;  %v475_v33 = vmul.f32 %v4498_v21, %v4160_v10  ;;  %v483_v43 = vmul.f32 %v4498_v21, %v4162_v11  ;;  %v472_v44 = vmul.f32 %v4503_v39, %v4167_v13  ;;  %v480_v45 = vmul.f32 %v4503_v39, %v4181_v18 }
  0x3c   :  { %3409 = vmatprep.subr.bf16.mxu0 %v3408_v28  ;;  %v474_v58 = vmul.f32 %v4506_v29, %v4192_v22  ;;  %v482_v55 = vmul.f32 %v4506_v29, %v4194_v23  ;;  %v3414_v47 = vpack.c.bf16 %v441_v27, %v433_v1  ;;  %v489_v50 = vmul.f32 %v459_v37, %v4199_v25 }
  0x3d   :  { %3531 = vmatpush1.bf16.msra.mxu1 %v3530_v59  ;;  %v497_v57 = vmul.f32 %v459_v37, %v4216_v31  ;;  %v3538_v54 = vpack.c.bf16 %v443_v9, %v435_v38  ;;  %v3416_v59 = vpack.c.bf16 %v481_v30, %v473_v40  ;;  %v3540_v28 = vpack.c.bf16 %v483_v43, %v475_v33 }
  0x3e   :  { %3533 = vmatprep.subr.bf16.mxu1 %v3532_v60  ;;  %v491_v60 = vmul.f32 %v4498_v21, %v4224_v34  ;;  %v3418_v49 = vpack.c.bf16 %v480_v45, %v472_v44  ;;  %v3542_v8 = vpack.c.bf16 %v482_v55, %v474_v58  ;;  %v4533_v1 = vrot.slane %v3352_v51, %v4176_v16 }
  0x3f   :  { %3411 = vmatpush1.bf16.msra.mxu0 %v3410_v20  ;;  %v499_v20 = vmul.f32 %v4498_v21, %v4226_v35  ;;  %v3420_v27 = vpack.c.bf16 %v497_v57, %v489_v50  ;;  %v490_v38 = vmul.f32 %v4506_v29, %v4279_v63  ;;  %v498_v9 = vmul.f32 %v4506_v29, %v4284_v2 }
  0x40   :  { %3413 = vmatprep.subr.bf16.mxu0 %v3412_v12  ;;  %v496_v12 = vmul.f32 %v4503_v39, %v4275_v61  ;;  %v505_v40 = vmul.f32 %v459_v37, %v4286_v3  ;;  %v513_v30 = vmul.f32 %v459_v37, %v4288_v7  ;;  %v507_v33 = vmul.f32 %v4498_v21, %v4297_v14 }
  0x41   :  { %3535 = vmatpush1.bf16.msra.mxu1 %v3534_v62  ;;  %v488_v62 = vmul.f32 %v4503_v39, %v4228_v36  ;;  %v515_v43 = vmul.f32 %v4498_v21, %v4299_v15  ;;  %v504_v44 = vmul.f32 %v4503_v39, %v4310_v32  ;;  %v512_v45 = vmul.f32 %v4503_v39, %v4322_v42 }
  0x42   :  { %3537 = vmatprep.subr.bf16.mxu1 %v3536_v41  ;;  %v3544_v41 = vpack.c.bf16 %v499_v20, %v491_v60  ;;  %v506_v58 = vmul.f32 %v4506_v29, %v4332_v48  ;;  %v514_v55 = vmul.f32 %v4506_v29, %v4339_v52  ;;  %v521_v57 = vmul.f32 %v459_v37, %v4341_v53 }
  0x43   :  { %3415 = vmatpush1.bf16.msra.mxu0 %v3414_v47  ;;  %v4558_v47 = vrot.slane %v3352_v51, %v4179_v17  ;;  %v3422_v50 = vpack.c.bf16 %v496_v12, %v488_v62  ;;  %v3424_v60 = vpack.c.bf16 %v513_v30, %v505_v40  ;;  %v4567_v20 = vrot.slane %v3352_v51, %v4197_v24 }
  0x44   :  { %3417 = vmatprep.subr.bf16.mxu0 %v3416_v59  ;;  %v4564_v59 = vrot.slane %v3352_v51, %v4184_v19  ;;  %v3548_v6 = vpack.c.bf16 %v515_v43, %v507_v33  ;;  %v858_v62 = vunpack.c.l.bf16 %v4380_v46  ;;  %v3426_v12 = vpack.c.bf16 %v512_v45, %v504_v44  ;;  %v4585_v46 = vld [vmem:[%s5444_s1 + $0x10] sm:$0xff] }
  0x45   :  { %3539 = vmatpush1.bf16.msra.mxu1 %v3538_v54  ;;  %v552_v54 = vmul.f32 %v4533_v1, %v4145_v4  ;;  %v554_v37 = vmul.f32 %v4558_v47, %v4160_v10  ;;  %v3550_v4 = vpack.c.bf16 %v514_v55, %v506_v58  ;;  %v562_v40 = vmul.f32 %v4558_v47, %v4162_v11 }
  0x46   :  { %3541 = vmatprep.subr.bf16.mxu1 %v3540_v28  ;;  %v3546_v28 = vpack.c.bf16 %v498_v9, %v490_v38  ;;  %v551_v51 = vmul.f32 %v4564_v59, %v4167_v13  ;;  %v522_v38 = vmul.f32 %v4506_v29, %v4365_v26  ;;  %v568_v9 = vmul.f32 %v4533_v1, %v4199_v25 }
  0x47   :  { %3419 = vmatpush1.bf16.msra.mxu0 %v3418_v49  ;;  %v523_v49 = vmul.f32 %v4498_v21, %v4346_v56  ;;  %v560_v21 = vmul.f32 %v4533_v1, %v4147_v5  ;;  %v570_v30 = vmul.f32 %v4558_v47, %v4224_v34  ;;  %v567_v33 = vmul.f32 %v4564_v59, %v4228_v36 }
  0x48   :  { %3421 = vmatprep.subr.bf16.mxu0 %v3420_v27  ;;  %v3428_v27 = vpack.c.bf16 %v552_v54, %v521_v57  ;;  %v561_v43 = vmul.f32 %v4567_v20, %v4194_v23  ;;  %v569_v44 = vmul.f32 %v4567_v20, %v4279_v63  ;;  %v863_v45 = vunpack.c.h.bf16 %v4585_v46  ;;  %v3353_v54 = vld [vmem:[%s5443_s2 + $0x6] ss:$8 sm:$0xf] }
  0x49   :  { %3543 = vmatpush1.bf16.msra.mxu1 %v3542_v8  ;;  %v520_v8 = vmul.f32 %v4503_v39, %v4356_v0  ;;  %v553_v39 = vmul.f32 %v4567_v20, %v4192_v22  ;;  %v3552_v29 = vpack.c.bf16 %v554_v37, %v523_v49  ;;  %v576_v58 = vmul.f32 %v4533_v1, %v4216_v31 }
  0x4a   :  { %3545 = vmatprep.subr.bf16.mxu1 %v3544_v41  ;;  %v559_v41 = vmul.f32 %v4564_v59, %v4181_v18  ;;  %v584_v55 = vmul.f32 %v4533_v1, %v4286_v3  ;;  %v3432_v57 = vpack.c.bf16 %v568_v9, %v560_v21  ;;  %v578_v49 = vmul.f32 %v4558_v47, %v4226_v35 }
  0x4b   :  { %3423 = vmatpush1.bf16.msra.mxu0 %v3422_v50  ;;  %v3554_v50 = vpack.c.bf16 %v553_v39, %v522_v38  ;;  %v586_v37 = vmul.f32 %v4558_v47, %v4297_v14  ;;  %v592_v38 = vmul.f32 %v4533_v1, %v4288_v7  ;;  %v4626_v21 = vrot.slane %v3353_v54, %v4176_v16 }
  0x4c   :  { %3425 = vmatprep.subr.bf16.mxu0 %v3424_v60  ;;  %v3434_v60 = vpack.c.bf16 %v567_v33, %v559_v41  ;;  %v600_v39 = vmul.f32 %v4533_v1, %v4341_v53  ;;  %v594_v9 = vmul.f32 %v4558_v47, %v4299_v15  ;;  %v4638_v41 = vrot.slane %v3353_v54, %v4184_v19 }
  0x4d   :  { %3547 = vmatpush1.bf16.msra.mxu1 %v3546_v28  ;;  %v3556_v28 = vpack.c.bf16 %v570_v30, %v562_v40  ;;  %v602_v40 = vmul.f32 %v4558_v47, %v4346_v56  ;;  %v4635_v30 = vrot.slane %v3353_v54, %v4179_v17  ;;  %v862_v33 = vunpack.c.l.bf16 %v4585_v46 }
  0x4e   :  { %3549 = vmatprep.subr.bf16.mxu1 %v3548_v6  ;;  %1207 = vmatmul.mubr.f32.vlgmr.msra.gmra.mrb[0].mxu0 %v858_v62  ;;  %v3430_v6 = vpack.c.bf16 %v551_v51, %v520_v8  ;;  %v577_v8 = vmul.f32 %v4567_v20, %v4284_v2  ;;  %v585_v51 = vmul.f32 %v4567_v20, %v4332_v48 }
  0x4f   :  { %3427 = vmatpush1.bf16.msra.mxu0 %v3426_v12  ;;  %v583_v12 = vmul.f32 %v4564_v59, %v4310_v32  ;;  %1212 = vmatprep.mubr.f32.mxu0 %v863_v45  ;;  %v591_v1 = vmul.f32 %v4564_v59, %v4322_v42  ;;  %v593_v47 = vmul.f32 %v4567_v20, %v4339_v52 }
  0x50   :  { %1421 = vmatmul.mubr.f32.vlgmr.msra.gmra.mrb[0].mxu1 %v858_v62  ;;  %3429 = vmatprep.subr.bf16.mxu0 %v3428_v27  ;;  %v3558_v62 = vpack.c.bf16 %v569_v44, %v561_v43  ;;  %v3436_v27 = vpack.c.bf16 %v584_v55, %v576_v58  ;;  %v599_v44 = vmul.f32 %v4564_v59, %v4356_v0  ;;  %v5463_v55 = vld [vmem:[#allocation19_spill] sm:$0xff] }
  0x51   :  { %3551 = vmatpush1.bf16.msra.mxu1 %v3550_v4  ;;  %v575_v4 = vmul.f32 %v4564_v59, %v4275_v61  ;;  %1426 = vmatprep.mubr.f32.mxu1 %v863_v45  ;;  %v601_v58 = vmul.f32 %v4567_v20, %v4365_v26  ;;  %v631_v46 = vmul.f32 %v4626_v21, %v5463_v55 }
  0x52   :  { %3553 = vmatprep.subr.bf16.mxu1 %v3552_v29  ;;  %v3560_v29 = vpack.c.bf16 %v586_v37, %v578_v49  ;;  %v3562_v59 = vpack.c.bf16 %v585_v51, %v577_v8  ;;  %v633_v45 = vmul.f32 %v4635_v30, %v4160_v10  ;;  %v630_v20 = vmul.f32 %v4638_v41, %v4167_v13 }
  0x53   :  { %3431 = vmatpush1.bf16.msra.mxu0 %v3430_v6  ;;  %v3438_v43 = vpack.c.bf16 %v583_v12, %v575_v4  ;;  %v4646_v6 = vrot.slane %v3353_v54, %v4197_v24  ;;  %v3564_v54 = vpack.c.bf16 %v602_v40, %v594_v9  ;;  %v655_v4 = vmul.f32 %v4626_v21, %v4216_v31 }
  0x54   :  { %3433 = vmatprep.subr.bf16.mxu0 %v3432_v57  ;;  %v3440_v57 = vpack.c.bf16 %v600_v39, %v592_v38  ;;  %1213 = vmatmul.mubr.f32.gmra.mrb[2].mxu0 %v862_v33  ;;  %v3442_v12 = vpack.c.bf16 %v599_v44, %v591_v1  ;;  %v3566_v8 = vpack.c.bf16 %v601_v58, %v593_v47  ;;  %v4677_v38 = vld [vmem:[%s5444_s1 + $0x20] sm:$0xff] }
  0x55   :  { %3555 = vmatpush1.bf16.msra.mxu1 %v3554_v50  ;;  %v639_v50 = vmul.f32 %v4626_v21, %v4147_v5  ;;  %v632_v49 = vmul.f32 %v4646_v6, %v4192_v22  ;;  %v640_v37 = vmul.f32 %v4646_v6, %v4194_v23  ;;  %v649_v51 = vmul.f32 %v4635_v30, %v4224_v34 }
  0x56   :  { %3557 = vmatprep.subr.bf16.mxu1 %v3556_v28  ;;  %v641_v28 = vmul.f32 %v4635_v30, %v4162_v11  ;;  %v657_v39 = vmul.f32 %v4635_v30, %v4226_v35  ;;  %v646_v9 = vmul.f32 %v4638_v41, %v4228_v36  ;;  %v654_v40 = vmul.f32 %v4638_v41, %v4275_v61 }
  0x57   :  { %3435 = vmatpush1.bf16.msra.mxu0 %v3434_v60  ;;  %v638_v60 = vmul.f32 %v4638_v41, %v4181_v18  ;;  %v648_v1 = vmul.f32 %v4646_v6, %v4279_v63  ;;  %v656_v44 = vmul.f32 %v4646_v6, %v4284_v2  ;;  %v3570_v58 = vpack.c.bf16 %v640_v37, %v632_v49 }
  0x58   :  { %3437 = vmatprep.subr.bf16.mxu0 %v3436_v27  ;;  %v3444_v27 = vpack.c.bf16 %v639_v50, %v631_v46  ;;  %1427 = vmatmul.mubr.f32.gmra.mrb[2].mxu1 %v862_v33  ;;  %v867_v50 = vunpack.c.h.bf16 %v4677_v38  ;;  %v665_v49 = vmul.f32 %v4635_v30, %v4297_v14  ;;  %v673_v37 = vmul.f32 %v4635_v30, %v4299_v15 }
  0x59   :  { %3559 = vmatpush1.bf16.msra.mxu1 %v3558_v62  ;;  %v647_v62 = vmul.f32 %v4626_v21, %v4199_v25  ;;  %v3446_v47 = vpack.c.bf16 %v638_v60, %v630_v20  ;;  %v3450_v20 = vpack.c.bf16 %v654_v40, %v646_v9  ;;  %v3574_v60 = vpack.c.bf16 %v656_v44, %v648_v1 }
  0x5a   :  { %3561 = vmatprep.subr.bf16.mxu1 %v3560_v29  ;;  %v3354_v29 = vld [vmem:[%s5443_s2 + $0x7] ss:$8 sm:$0xf]  ;;  %1218 = vmatprep.mubr.f32.mxu0 %v867_v50  ;;  %v681_v9 = vmul.f32 %v4635_v30, %v4346_v56  ;;  %v678_v1 = vmul.f32 %v4638_v41, %v4356_v0  ;;  %v3576_v44 = vpack.c.bf16 %v673_v37, %v665_v49 }
  0x5b   :  { %3439 = vmatpush1.bf16.msra.mxu0 %v3438_v43  ;;  %v3568_v43 = vpack.c.bf16 %v641_v28, %v633_v45  ;;  %v3448_v46 = vpack.c.bf16 %v655_v4, %v647_v62  ;;  %v4701_v45 = vrot.slane %v3354_v29, %v4179_v17  ;;  %v3572_v28 = vpack.c.bf16 %v657_v39, %v649_v51  ;;  %v852_v37 = vld [vmem:[%s5444_s1 + $0x40] sm:$0xff] }
  0x5c   :  { %3441 = vmatprep.subr.bf16.mxu0 %v3440_v57  ;;  %v671_v57 = vmul.f32 %v4626_v21, %v4288_v7  ;;  %v4704_v33 = vrot.slane %v3354_v29, %v4184_v19  ;;  %v662_v62 = vmul.f32 %v4638_v41, %v4310_v32  ;;  %v670_v4 = vmul.f32 %v4638_v41, %v4322_v42 }
  0x5d   :  { %3563 = vmatpush1.bf16.msra.mxu1 %v3562_v59  ;;  %v663_v59 = vmul.f32 %v4626_v21, %v4286_v3  ;;  %v679_v51 = vmul.f32 %v4626_v21, %v4341_v53  ;;  %v712_v40 = vmul.f32 %v4701_v45, %v4160_v10  ;;  %v866_v10 = vunpack.c.l.bf16 %v4677_v38  ;;  %1432 = vmatprep.mubr.f32.mxu1 %v867_v50 }
  0x5e   :  { %3565 = vmatprep.subr.bf16.mxu1 %v3564_v54  ;;  %v4698_v54 = vrot.slane %v3354_v29, %v4176_v16  ;;  %v709_v21 = vmul.f32 %v4704_v33, %v4167_v13 }
  0x5f   :  { %3443 = vmatpush1.bf16.msra.mxu0 %v3442_v12  ;;  %v664_v12 = vmul.f32 %v4646_v6, %v4332_v48  ;;  %v3580_v49 = vpack.c.bf16 %v712_v40, %v681_v9  ;;  %1433 = vmatmul.mubr.f32.gmra.mrb[4].mxu1 %v866_v10  ;;  %v736_v40 = vmul.f32 %v4701_v45, %v4226_v35 }
  0x60   :  { %3445 = vmatprep.subr.bf16.mxu0 %v3444_v27  ;;  %v4719_v27 = vrot.slane %v3354_v29, %v4197_v24  ;;  %v710_v39 = vmul.f32 %v4698_v54, %v5463_v55  ;;  %v3452_v29 = vpack.c.bf16 %v671_v57, %v663_v59  ;;  %v718_v30 = vmul.f32 %v4698_v54, %v4147_v5 }
  0x61   :  { %3567 = vmatpush1.bf16.msra.mxu1 %v3566_v8  ;;  %v672_v8 = vmul.f32 %v4646_v6, %v4339_v52  ;;  %v3454_v59 = vpack.c.bf16 %v670_v4, %v662_v62  ;;  %v3458_v38 = vpack.c.bf16 %v709_v21, %v678_v1  ;;  %v725_v62 = vmul.f32 %v4704_v33, %v4228_v36 }
  0x62   :  { %3569 = vmatprep.subr.bf16.mxu1 %v3568_v43  ;;  %v850_v43 = vld [vmem:[%s5444_s1 + $0x30] sm:$0xff]  ;;  %1219 = vmatmul.mubr.f32.gmra.mrb[4].mxu0 %v866_v10  ;;  %v742_v9 = vmul.f32 %v4698_v54, %v4286_v3  ;;  %v744_v10 = vmul.f32 %v4701_v45, %v4297_v14  ;;  %v741_v1 = vmul.f32 %v4704_v33, %v4310_v32 }
  0x63   :  { %3447 = vmatpush1.bf16.msra.mxu0 %v3446_v47  ;;  %v726_v47 = vmul.f32 %v4698_v54, %v4199_v25  ;;  %v871_v41 = vunpack.c.h.bf16 %v850_v43  ;;  %v3578_v57 = vpack.c.bf16 %v672_v8, %v664_v12  ;;  %v870_v4 = vunpack.c.l.bf16 %v850_v43  ;;  %v854_v43 = vld [vmem:[%s5444_s1 + $0x50] sm:$0xff] }
  0x64   :  { %3449 = vmatprep.subr.bf16.mxu0 %v3448_v46  ;;  %v711_v46 = vmul.f32 %v4719_v27, %v4192_v22  ;;  %v728_v22 = vmul.f32 %v4701_v45, %v4224_v34  ;;  %v727_v8 = vmul.f32 %v4719_v27, %v4279_v63 }
  0x65   :  { %3571 = vmatpush1.bf16.msra.mxu1 %v3570_v58  ;;  %v680_v58 = vmul.f32 %v4646_v6, %v4365_v26  ;;  %v720_v6 = vmul.f32 %v4701_v45, %v4162_v11  ;;  %v3460_v50 = vpack.c.bf16 %v726_v47, %v718_v30  ;;  %1224 = vmatprep.mubr.f32.mxu0 %v871_v41  ;;  %v3355_v47 = vld [vmem:[%s5443_s2 + $0x20] ss:$8 sm:$0xf]  ;;  %s4932_s2 = scalar_lea.hbm %s5445_s5, 32768 }
  0x66   :  { %3573 = vmatprep.subr.bf16.mxu1 %v3572_v28  ;;  %v3456_v28 = vpack.c.bf16 %v710_v39, %v679_v51  ;;  %v875_v51 = vunpack.c.h.bf16 %v852_v37  ;;  %v734_v39 = vmul.f32 %v4698_v54, %v4216_v31  ;;  %1438 = vmatprep.mubr.f32.mxu1 %v871_v41  ;;  %v743_v30 = vmul.f32 %v4719_v27, %v4332_v48  ;;  %p3993_p1 = scmp.lt.u32.totalorder %s4932_s2, %s4923_s29 }
  0x67   :  { %3451 = vmatpush1.bf16.msra.mxu0 %v3450_v20  ;;  %v717_v20 = vmul.f32 %v4704_v33, %v4181_v18  ;;  %v3582_v12 = vpack.c.bf16 %v711_v46, %v680_v58  ;;  %v3584_v21 = vpack.c.bf16 %v728_v22, %v720_v6  ;;  %v874_v58 = vunpack.c.l.bf16 %v852_v37  ;;  %1439 = vmatmul.mubr.f32.gmra.mrb[6].mxu1 %v870_v4 }
  0x68   :  { %3453 = vmatprep.subr.bf16.mxu0 %v3452_v29  ;;  %v733_v29 = vmul.f32 %v4704_v33, %v4275_v61  ;;  %1225 = vmatmul.mubr.f32.gmra.mrb[6].mxu0 %v870_v4  ;;  %v750_v41 = vmul.f32 %v4698_v54, %v4288_v7  ;;  %v879_v22 = vunpack.c.h.bf16 %v854_v43  ;;  %v760_v6 = vmul.f32 %v4701_v45, %v4346_v56  ;;  %p3995_p3 = por %p3994_p2, %p3993_p1 }
  0x69   :  { %3575 = vmatpush1.bf16.msra.mxu1 %v3574_v60  ;;  %v719_v60 = vmul.f32 %v4719_v27, %v4194_v23  ;;  %v3462_v46 = vpack.c.bf16 %v725_v62, %v717_v20  ;;  %1230 = vmatprep.mubr.f32.mxu0 %v875_v51  ;;  %v3588_v37 = vpack.c.bf16 %v744_v10, %v736_v40 }
  0x6a   :  { %3577 = vmatprep.subr.bf16.mxu1 %v3576_v44  ;;  %v735_v44 = vmul.f32 %v4719_v27, %v4284_v2  ;;  %v3466_v20 = vpack.c.bf16 %v741_v1, %v733_v29  ;;  %v4791_v62 = vrot.slane %v3355_v47, %v4176_v16  ;;  %v4797_v4 = vrot.slane %v3355_v47, %v4179_v17  ;;  %v4820_v29 = vld [vmem:[%s5444_s1 + $0x8] sm:$0xff]  ;;  %p3996_p4 = pnand %p3995_p3, %p3991_p0 }
  0x6b   :  { %3455 = vmatpush1.bf16.msra.mxu0 %v3454_v59  ;;  %v758_v59 = vmul.f32 %v4698_v54, %v4341_v53  ;;  %v856_v54 = vld [vmem:[%s5444_s1 + $0x60] sm:$0xff]  ;;  %1444 = vmatprep.mubr.f32.mxu1 %v875_v51  ;;  %v759_v40 = vmul.f32 %v4719_v27, %v4365_v26 }
  0x6c   :  { %3457 = vmatprep.subr.bf16.mxu0 %v3456_v28  ;;  %v3464_v28 = vpack.c.bf16 %v742_v9, %v734_v39  ;;  %1231 = vmatmul.mubr.f32.gmra.mrb[8].mxu0 %v874_v58  ;;  %v751_v9 = vmul.f32 %v4719_v27, %v4339_v52  ;;  %v883_v51 = vunpack.c.h.bf16 %v856_v54  ;;  %v789_v10 = vmul.f32 %v4791_v62, %v5463_v55  ;;  %v5464_v27 = vld [vmem:[#allocation21_spill] sm:$0xff] }
  0x6d   :  { %3579 = vmatpush1.bf16.msra.mxu1 %v3578_v57  ;;  %v3586_v57 = vpack.c.bf16 %v727_v8, %v719_v60  ;;  %v4800_v60 = vrot.slane %v3355_v47, %v4184_v19  ;;  %v878_v8 = vunpack.c.l.bf16 %v854_v43  ;;  %1236 = vmatprep.mubr.f32.mxu0 %v879_v22  ;;  %v4815_v43 = vrot.slane %v3355_v47, %v4197_v24 }
  0x6e   :  { %3581 = vmatprep.subr.bf16.mxu1 %v3580_v49  ;;  %v752_v49 = vmul.f32 %v4701_v45, %v4299_v15  ;;  %v3468_v45 = vpack.c.bf16 %v758_v59, %v750_v41  ;;  %1445 = vmatmul.mubr.f32.gmra.mrb[8].mxu1 %v874_v58  ;;  %v791_v1 = vmul.f32 %v4797_v4, %v5464_v27  ;;  %v882_v47 = vunpack.c.l.bf16 %v856_v54  ;;  %v5465_v41 = vld [vmem:[#allocation22_spill] sm:$0xff] }
  0x6f   :  { %3459 = vmatpush1.bf16.msra.mxu0 %v3458_v38  ;;  %v3590_v38 = vpack.c.bf16 %v743_v30, %v735_v44  ;;  %v788_v55 = vmul.f32 %v4800_v60, %v4167_v13  ;;  %1450 = vmatprep.mubr.f32.mxu1 %v879_v22  ;;  %v805_v44 = vmul.f32 %v4791_v62, %v4199_v25 }
  0x70   :  { %3461 = vmatprep.subr.bf16.mxu0 %v3460_v50  ;;  %v749_v50 = vmul.f32 %v4704_v33, %v4322_v42  ;;  %v3592_v39 = vpack.c.bf16 %v760_v6, %v752_v49  ;;  %v813_v30 = vmul.f32 %v4791_v62, %v4216_v31  ;;  %1237 = vmatmul.mubr.f32.gmra.mrb[10].mxu0 %v878_v8 }
  0x71   :  { %3583 = vmatpush1.bf16.msra.mxu1 %v3582_v12  ;;  %v757_v12 = vmul.f32 %v4704_v33, %v4356_v0  ;;  %v797_v33 = vmul.f32 %v4791_v62, %v4147_v5  ;;  %v796_v5 = vmul.f32 %v4800_v60, %v4181_v18  ;;  %1242 = vmatprep.mubr.f32.mxu0 %v883_v51 }
  0x72   :  { %3585 = vmatprep.subr.bf16.mxu1 %v3584_v21  ;;  %v799_v21 = vmul.f32 %v4797_v4, %v4162_v11  ;;  %1451 = vmatmul.mubr.f32.gmra.mrb[10].mxu1 %v878_v8  ;;  %v861_v11 = vunpack.c.h.bf16 %v4820_v29  ;;  %v790_v18 = vmul.f32 %v4815_v43, %v5465_v41  ;;  %v798_v25 = vmul.f32 %v4815_v43, %v4194_v23 }
  0x73   :  { %3463 = vmatpush1.bf16.msra.mxu0 %v3462_v46  ;;  %v3470_v58 = vpack.c.bf16 %v757_v12, %v749_v50  ;;  %v3594_v46 = vpack.c.bf16 %v759_v40, %v751_v9  ;;  %v3472_v13 = vpack.c.bf16 %v797_v33, %v789_v10  ;;  %v807_v59 = vmul.f32 %v4797_v4, %v4224_v34  ;;  %v853_v9 = vld [vmem:[%s5444_s1 + $0x48] sm:$0xff]  ;;  %v855_v10 = vld [vmem:[%s5444_s1 + $0x58] sm:$0xff] }
  0x74   :  { %3465 = vmatprep.subr.bf16.mxu0 %v3464_v28  ;;  %v3596_v31 = vpack.c.bf16 %v799_v21, %v791_v1  ;;  %v815_v22 = vmul.f32 %v4797_v4, %v4226_v35  ;;  %1456 = vmatprep.mubr.f32.mxu1 %v883_v51  ;;  %v3476_v28 = vpack.c.bf16 %v813_v30, %v805_v44  ;;  %v860_v8 = vunpack.c.l.bf16 %v4820_v29  ;;  %v857_v29 = vld [vmem:[%s5444_s1 + $0x68] sm:$0xff] }
  0x75   :  { %3587 = vmatpush1.bf16.msra.mxu1 %v3586_v57  ;;  %v3474_v57 = vpack.c.bf16 %v796_v5, %v788_v55  ;;  %v804_v49 = vmul.f32 %v4800_v60, %v4228_v36  ;;  %1243 = vmatmul.mubr.f32.gmra.mrb[12].mxu0 %v882_v47  ;;  %v812_v23 = vmul.f32 %v4800_v60, %v4275_v61  ;;  %v877_v51 = vunpack.c.h.bf16 %v853_v9 }
  0x76   :  { %3589 = vmatprep.subr.bf16.mxu1 %v3588_v37  ;;  %1457 = vmatmul.mubr.f32.gmra.mrb[12].mxu1 %v882_v47  ;;  %v806_v6 = vmul.f32 %v4815_v43, %v4279_v63  ;;  %v814_v34 = vmul.f32 %v4815_v43, %v4284_v2  ;;  %v3598_v35 = vpack.c.bf16 %v798_v25, %v790_v18  ;;  %v876_v33 = vunpack.c.l.bf16 %v853_v9 }
  0x77   :  { %3467 = vmatpush1.bf16.msra.mxu0 %v3466_v20  ;;  %1313 = vmatprep.mubr.f32.mxu0 %v861_v11  ;;  %v821_v37 = vmul.f32 %v4791_v62, %v4286_v3  ;;  %v829_v36 = vmul.f32 %v4791_v62, %v4288_v7  ;;  %v3600_v20 = vpack.c.bf16 %v815_v22, %v807_v59  ;;  %v880_v27 = vunpack.c.l.bf16 %v855_v10 }
  0x78   :  { %3469 = vmatprep.subr.bf16.mxu0 %v3468_v45  ;;  %v823_v61 = vmul.f32 %v4797_v4, %v4297_v14  ;;  %v831_v63 = vmul.f32 %v4797_v4, %v4299_v15  ;;  %1527 = vmatprep.mubr.f32.mxu1 %v861_v11  ;;  %v3478_v2 = vpack.c.bf16 %v812_v23, %v804_v49  ;;  %v885_v1 = vunpack.c.h.bf16 %v857_v29 }
  0x79   :  { %3591 = vmatpush1.bf16.msra.mxu1 %v3590_v38  ;;  %v3602_v54 = vpack.c.bf16 %v814_v34, %v806_v6  ;;  %v820_v38 = vmul.f32 %v4800_v60, %v4310_v32  ;;  %v828_v3 = vmul.f32 %v4800_v60, %v4322_v42  ;;  %v3480_v7 = vpack.c.bf16 %v829_v36, %v821_v37 }
  0x7a   :  { %3593 = vmatprep.subr.bf16.mxu1 %v3592_v39  ;;  %v822_v45 = vmul.f32 %v4815_v43, %v4332_v48  ;;  %v830_v14 = vmul.f32 %v4815_v43, %v4339_v52  ;;  %v3604_v15 = vpack.c.bf16 %v831_v63, %v823_v61  ;;  %v837_v32 = vmul.f32 %v4791_v62, %v4341_v53  ;;  %v847_v48 = vld [vmem:[%s5444_s1 + $0x18] sm:$0xff] }
  0x7b   :  { %3471 = vmatpush1.bf16.msra.mxu0 %v3470_v58  ;;  %v3482_v50 = vpack.c.bf16 %v828_v3, %v820_v38  ;;  %v839_v42 = vmul.f32 %v4797_v4, %v4346_v56  ;;  %v836_v52 = vmul.f32 %v4800_v60, %v4356_v0  ;;  %v838_v39 = vmul.f32 %v4815_v43, %v4365_v26  ;;  %v849_v56 = vld [vmem:[%s5444_s1 + $0x28] sm:$0xff]  ;;  %v851_v4 = vld [vmem:[%s5444_s1 + $0x38] sm:$0xff]  ;;  %s4095_s1 = smov [#allocation3]  }
  0x7c   :  { %3473 = vmatprep.subr.bf16.mxu0 %v3472_v13  ;;  %v3606_v12 = vpack.c.bf16 %v830_v14, %v822_v45  ;;  %v865_v53 = vunpack.c.h.bf16 %v847_v48  ;;  %v864_v62 = vunpack.c.l.bf16 %v847_v48  ;;  %v869_v0 = vunpack.c.h.bf16 %v849_v56  ;;  %s28_s24 = sshll.u32 %s4095_s1, 4  ;;  %s4916_s24 = int_to_ptr.vmem [resolvable:$true] %s28_s24 }
  0x7d   :  { %3595 = vmatpush1.bf16.msra.mxu1 %v3594_v46  ;;  %v868_v26 = vunpack.c.l.bf16 %v849_v56  ;;  %v873_v60 = vunpack.c.h.bf16 %v851_v4  ;;  %v872_v40 = vunpack.c.l.bf16 %v851_v4  ;;  %v881_v43 = vunpack.c.h.bf16 %v855_v10 }
  0x7e   :  { %3597 = vmatprep.subr.bf16.mxu1 %v3596_v31  ;;  %v884_v21 = vunpack.c.l.bf16 %v857_v29 }
  0x7f   :  { %3475 = vmatpush1.bf16.msra.mxu0 %v3474_v57 }
  0x80   :  { %3477 = vmatprep.subr.bf16.mxu0 %v3476_v28 }
  0x81   :  { %3599 = vmatpush1.bf16.msra.mxu1 %v3598_v35 }
  0x82   :  { %3601 = vmatprep.subr.bf16.mxu1 %v3600_v20 }
  0x83   :  { %3479 = vmatpush1.bf16.msra.mxu0 %v3478_v2 }
  0x84   :  { %3481 = vmatprep.subr.bf16.mxu0 %v3480_v7 }
  0x85   :  { %3603 = vmatpush1.bf16.msra.mxu1 %v3602_v54 }
  0x86   :  { %3605 = vmatprep.subr.bf16.mxu1 %v3604_v15 }
  0x87   :  { %3483 = vmatpush1.bf16.msra.mxu0 %v3482_v50 }
  0x88   :  { %1309 = vmatprep.subr.mxu0 %v837_v32 }
  0x89   :  { %3607 = vmatpush1.bf16.msra.mxu1 %v3606_v12 }
  0x8a   :  { %1523 = vmatprep.subr.mxu1 %v839_v42 }
  0x8b   :  { %1310 = vmatpush1.msra.mxu0 %v836_v52 }
  0x8c   :  { %1314 = vmatmul.mubr.f32.vlgmr.msra.gmra.mrb[0].mxu0 %v860_v8 }
  0x8d   :  { %1524 = vmatpush1.msra.mxu1 %v838_v39  ;;  %1319 = vmatprep.mubr.f32.mxu0 %v865_v53 }
  0x8e   :  { %1528 = vmatmul.mubr.f32.vlgmr.msra.gmra.mrb[0].mxu1 %v860_v8 }
  0x8f   :  { %1533 = vmatprep.mubr.f32.mxu1 %v865_v53 }
  0x90   :  { %1320 = vmatmul.mubr.f32.gmra.mrb[2].mxu0 %v864_v62 }
  0x91   :  { %1325 = vmatprep.mubr.f32.mxu0 %v869_v0 }
  0x92   :  { %1534 = vmatmul.mubr.f32.gmra.mrb[2].mxu1 %v864_v62 }
  0x93   :  { %1539 = vmatprep.mubr.f32.mxu1 %v869_v0 }
  0x94   :  { %1326 = vmatmul.mubr.f32.gmra.mrb[4].mxu0 %v868_v26 }
  0x95   :  { %1331 = vmatprep.mubr.f32.mxu0 %v873_v60 }
  0x96   :  { %1540 = vmatmul.mubr.f32.gmra.mrb[4].mxu1 %v868_v26 }
  0x97   :  { %1545 = vmatprep.mubr.f32.mxu1 %v873_v60 }
  0x98   :  { %1332 = vmatmul.mubr.f32.gmra.mrb[6].mxu0 %v872_v40 }
  0x99   :  { %1337 = vmatprep.mubr.f32.mxu0 %v877_v51 }
  0x9a   :  { %1546 = vmatmul.mubr.f32.gmra.mrb[6].mxu1 %v872_v40 }
  0x9b   :  { %1551 = vmatprep.mubr.f32.mxu1 %v877_v51 }
  0x9c   :  { %1338 = vmatmul.mubr.f32.gmra.mrb[8].mxu0 %v876_v33 }
  0x9d   :  { %1343 = vmatprep.mubr.f32.mxu0 %v881_v43 }
  0x9e   :  { %1552 = vmatmul.mubr.f32.gmra.mrb[8].mxu1 %v876_v33 }
  0x9f   :  { %1557 = vmatprep.mubr.f32.mxu1 %v881_v43 }
  0xa0   :  { %1344 = vmatmul.mubr.f32.gmra.mrb[10].mxu0 %v880_v27 }
  0xa1   :  { %1349 = vmatprep.mubr.f32.mxu0 %v885_v1 }
  0xa2   :  { %1558 = vmatmul.mubr.f32.gmra.mrb[10].mxu1 %v880_v27 }
  0xa3   :  { %1563 = vmatprep.mubr.f32.mxu1 %v885_v1 }
  0xa4   :  { %1350 = vmatmul.mubr.f32.gmra.mrb[12].mxu0 %v884_v21 }
  0xa6   :  { %1564 = vmatmul.mubr.f32.gmra.mrb[12].mxu1 %v884_v21 }
 0x15f   :  { %v4894_v55 = vpop.f32.mrb[0].mxu0 }
 0x160   :  { %v4898_v44 = vpop.f32.mrb[1].mxu0 }
 0x161   :  { %v4896_v5 = vpop.f32.mrb[0].mxu1 }
 0x162   :  { %v4900_v30 = vpop.f32.mrb[1].mxu1 }
 0x163   :  { %v4902_v47 = vpop.f32.mrb[2].mxu0 }
 0x164   :  { %v1570_v58 = vadd.f32 %v4902_v47, %v4894_v55  ;;  %v4908_v11 = vpop.f32.mrb[3].mxu0 }
 0x165   :  { %v4906_v46 = vpop.f32.mrb[2].mxu1  ;;  %v1582_v41 = vadd.f32 %v4908_v11, %v4898_v44 }
 0x166   :  { %v1594_v13 = vadd.f32 %v4906_v46, %v4896_v5  ;;  %v4914_v18 = vpop.f32.mrb[3].mxu1 }
 0x167   :  { %v1606_v25 = vadd.f32 %v4914_v18, %v4900_v30 }
 0x168   :  { %3999 = shalt.err (!%p3996_p4)  }
 0x169   :  { %s4000_s13 = scalar_lea.vmem %s4916_s24, 8192  ;;  %s4948_s14 = scalar_lea.vmem %s4916_s24, 32768 }
 0x16a   :  { %p4001_p5 = scmp.ne.s32.totalorder %s4916_s24, %s4000_s13  ;;  %p4005_p6 = scmp.lt.s32.totalorder %s4916_s24, %s4916_s24 }
 0x16b   :  { %p4006_p7 = scmp.lt.s32.totalorder %s4948_s14, %s4000_s13 }
 0x16d   :  { %p4007_p8 = por %p4006_p7, %p4005_p6 }
 0x16f   :  { %p4008_p9 = pnand %p4007_p8, %p4001_p5 }
 0x171   :  { %4011 = shalt.err (!%p4008_p9)  }
 0x172   :  { %31 = dma.hbm_to_vmem [thread:$0]  %s5445_s5, 8192, %s4916_s24, [#allocation4]  ;;  %v4957_v31 = vpop.f32.mrb[4].mxu0  ;;  %v4960_v22 = vpop.f32.mrb[4].mxu1 }
 0x173   :  { %v1571_v59 = vadd.f32 %v1570_v58, %v4957_v31  ;;  %v4962_v57 = vpop.f32.mrb[5].mxu0  ;;  %s4967_s19 = scalar_lea.hbm %s5445_s5, 16384 }
 0x174   :  { %p4013_p10 = scmp.ne.s32.totalorder %s4923_s29, %s4967_s19  ;;  %p4016_p11 = scmp.lt.u32.totalorder %s4932_s2, %s4967_s19 }
 0x175   :  { %p4018_p13 = scmp.lt.u32.totalorder %s4967_s19, %s4923_s29 }
 0x176   :  { %p4017_p12 = por %p4016_p11, %p3994_p2 }
 0x178   :  { %p4019_p0 = por %p4018_p13, %p4017_p12 }
 0x17a   :  { %p4020_p1 = pnand %p4019_p0, %p4013_p10 }
 0x17c   :  { %4023 = shalt.err (!%p4020_p1)  }
 0x17d   :  { %s4024_s22 = scalar_lea.vmem %s43_s26, 8192  ;;  %p4029_p4 = scmp.lt.s32.totalorder %s43_s26, %s4916_s24 }
 0x17e   :  { %p4025_p3 = scmp.ne.s32.totalorder %s43_s26, %s4024_s22  ;;  %p4030_p5 = scmp.lt.s32.totalorder %s4948_s14, %s4024_s22 }
 0x180   :  { %p4031_p6 = por %p4030_p5, %p4029_p4 }
 0x182   :  { %p4032_p7 = pnand %p4031_p6, %p4025_p3 }
 0x184   :  { %4035 = shalt.err (!%p4032_p7)  }
 0x185   :  { %45 = dma.hbm_to_vmem [thread:$0]  %s4923_s29, 8192, %s43_s26, [#allocation4 + $0x1]  ;;  %v1595_v28 = vadd.f32 %v1594_v13, %v4960_v22  ;;  %v1583_v49 = vadd.f32 %v1582_v41, %v4962_v57  ;;  %v4985_v23 = vpop.f32.mrb[5].mxu1  ;;  %v4993_v34 = vpop.f32.mrb[6].mxu0 }
 0x186   :  { %v1607_v6 = vadd.f32 %v1606_v25, %v4985_v23  ;;  %s4097_s23 = smov [#allocation3 + $0x400]   ;;  %s4991_s28 = scalar_lea.hbm %s5445_s5, 24576  ;;  %v1572_v35 = vadd.f32 %v1571_v59, %v4993_v34  ;;  %v4996_v37 = vpop.f32.mrb[6].mxu1  ;;  %v4998_v36 = vpop.f32.mrb[7].mxu0 }
 0x187   :  { %s56_s1 = sshll.u32 %s4097_s23, 4  ;;  %p4038_p2 = scmp.ne.s32.totalorder %s4967_s19, %s4991_s28  ;;  %s57_s1 = int_to_ptr.vmem [resolvable:$true] %s56_s1 }
 0x188   :  { %p4040_p8 = scmp.lt.u32.totalorder %s4967_s19, %s5445_s5  ;;  %p4041_p9 = scmp.lt.u32.totalorder %s4932_s2, %s4991_s28 }
 0x189   :  { %p4043_p11 = scmp.lt.u32.totalorder %s4991_s28, %s4967_s19 }
 0x18a   :  { %p4042_p10 = por %p4041_p9, %p4040_p8 }
 0x18c   :  { %p4044_p12 = por %p4043_p11, %p4042_p10 }
 0x18e   :  { %p4045_p13 = pnand %p4044_p12, %p4038_p2 }
 0x190   :  { %4048 = shalt.err (!%p4045_p13)  }
 0x191   :  { %s4049_s30 = scalar_lea.vmem %s57_s1, 8192  ;;  %p4054_p1 = scmp.lt.s32.totalorder %s57_s1, %s4916_s24 }
 0x192   :  { %p4050_p0 = scmp.ne.s32.totalorder %s57_s1, %s4049_s30  ;;  %p4055_p3 = scmp.lt.s32.totalorder %s4948_s14, %s4049_s30 }
 0x194   :  { %p4056_p4 = por %p4055_p3, %p4054_p1 }
 0x196   :  { %p4057_p5 = pnand %p4056_p4, %p4050_p0 }
 0x198   :  { %4060 = shalt.err (!%p4057_p5)  }
 0x199   :  { %59 = dma.hbm_to_vmem [thread:$0]  %s4967_s19, 8192, %s57_s1, [#allocation4 + $0x2]  ;;  %v1596_v20 = vadd.f32 %v1595_v28, %v4996_v37  ;;  %v1584_v61 = vadd.f32 %v1583_v49, %v4998_v36  ;;  %v5018_v63 = vpop.f32.mrb[7].mxu1  ;;  %v5021_v54 = vpop.f32.mrb[8].mxu0 }
 0x19a   :  { %s4098_s7 = smov [#allocation3 + $0x600]   ;;  %v1608_v2 = vadd.f32 %v1607_v6, %v5018_v63  ;;  %p4063_p6 = scmp.ne.s32.totalorder %s4991_s28, %s4932_s2 }
 0x19b   :  { %s70_s8 = sshll.u32 %s4098_s7, 4  ;;  %p4065_p7 = scmp.lt.u32.totalorder %s4991_s28, %s5445_s5  ;;  %s71_s8 = int_to_ptr.vmem [resolvable:$true] %s70_s8 }
 0x19c   :  { %p4066_p2 = scmp.lt.u32.totalorder %s4932_s2, %s4932_s2 }
 0x19e   :  { %p4067_p8 = por %p4066_p2, %p4065_p7 }
 0x1a0   :  { %p4069_p10 = por %p4067_p8, %p4041_p9 }
 0x1a2   :  { %p4070_p11 = pnand %p4069_p10, %p4063_p6 }
 0x1a4   :  { %4073 = shalt.err (!%p4070_p11)  }
 0x1a5   :  { %s4074_s10 = scalar_lea.vmem %s71_s8, 8192  ;;  %p4079_p13 = scmp.lt.s32.totalorder %s71_s8, %s4916_s24 }
 0x1a6   :  { %p4075_p12 = scmp.ne.s32.totalorder %s71_s8, %s4074_s10  ;;  %p4080_p0 = scmp.lt.s32.totalorder %s4948_s14, %s4074_s10 }
 0x1a8   :  { %p4081_p1 = por %p4080_p0, %p4079_p13 }
 0x1aa   :  { %p4082_p3 = pnand %p4081_p1, %p4075_p12 }
 0x1ac   :  { %4085 = shalt.err (!%p4082_p3)  }
 0x1ad   :  { %73 = dma.hbm_to_vmem [thread:$0]  %s4991_s28, 8192, %s71_s8, [#allocation4 + $0x3]  ;;  %v1573_v38 = vadd.f32 %v1572_v35, %v5021_v54  ;;  %v5038_v3 = vpop.f32.mrb[8].mxu1  ;;  %v5040_v7 = vpop.f32.mrb[9].mxu0 }
 0x1ae   :  { %v1597_v45 = vadd.f32 %v1596_v20, %v5038_v3  ;;  %v1585_v14 = vadd.f32 %v1584_v61, %v5040_v7  ;;  %v5044_v15 = vpop.f32.mrb[9].mxu1  ;;  %v5047_v12 = vpop.f32.mrb[10].mxu0 }
 0x1af   :  { %v1609_v50 = vadd.f32 %v1608_v2, %v5044_v15  ;;  %5466 = vst [vmem:[#allocation19_spill] sm:$0xff] %v5047_v12  ;;  %v1574_v32 = vadd.f32 %v1573_v38, %v5047_v12  ;;  %v5050_v42 = vpop.f32.mrb[10].mxu1  ;;  %v5052_v48 = vpop.f32.mrb[11].mxu0 }
 0x1b0   :  { %5467 = vst [vmem:[#allocation21_spill] sm:$0xff] %v5050_v42  ;;  %5468 = vst [vmem:[#allocation22_spill] sm:$0xff] %v5052_v48  ;;  %v1598_v52 = vadd.f32 %v1597_v45, %v5050_v42  ;;  %v1586_v8 = vadd.f32 %v1585_v14, %v5052_v48  ;;  %v5056_v39 = vpop.f32.mrb[11].mxu1  ;;  %v5059_v56 = vpop.f32.mrb[12].mxu0 }
 0x1b1   :  { %v1610_v53 = vadd.f32 %v1609_v50, %v5056_v39  ;;  %5469 = vst [vmem:[#allocation23_spill] sm:$0xff] %v5059_v56  ;;  %v1575_v62 = vadd.f32 %v1574_v32, %v5059_v56  ;;  %v5062_v0 = vpop.f32.mrb[12].mxu1  ;;  %v5064_v4 = vpop.f32.mrb[13].mxu0 }
 0x1b2   :  { %5470 = vst [vmem:[#allocation24_spill] sm:$0xff] %v5062_v0  ;;  %v1599_v26 = vadd.f32 %v1598_v52, %v5062_v0  ;;  %v1587_v60 = vadd.f32 %v1586_v8, %v5064_v4  ;;  %v5068_v9 = vpop.f32.mrb[13].mxu1 }
 0x1b3   :  { %v1576_v40 = vrot.slane %v1575_v62, 4  ;;  %v1611_v51 = vadd.f32 %v1610_v53, %v5068_v9 }
 0x1b4   :  { %v1600_v10 = vrot.slane %v1599_v26, 4  ;;  %v1588_v33 = vrot.slane %v1587_v60, 4 }
 0x1b5   :  { %v1577_v43 = vadd.f32 %v1576_v40, %v1575_v62  ;;  %v1612_v29 = vrot.slane %v1611_v51, 4 }
 0x1b6   :  { %v1601_v27 = vadd.f32 %v1600_v10, %v1599_v26  ;;  %v1589_v1 = vadd.f32 %v1588_v33, %v1587_v60 }
 0x1b7   :  { %v1578_v21 = vrot.slane %v1577_v43, 2  ;;  %v1613_v41 = vadd.f32 %v1612_v29, %v1611_v51 }
 0x1b8   :  { %v1602_v58 = vrot.slane %v1601_v27, 2  ;;  %v1590_v13 = vrot.slane %v1589_v1, 2 }
 0x1b9   :  { %v1579_v25 = vadd.f32 %v1578_v21, %v1577_v43  ;;  %v1614_v20 = vrot.slane %v1613_v41, 2 }
 0x1ba   :  { %v1603_v59 = vadd.f32 %v1602_v58, %v1601_v27  ;;  %v1591_v28 = vadd.f32 %v1590_v13, %v1589_v1 }
 0x1bb   :  { %v1580_v49 = vrot.slane %v1579_v25, 1  ;;  %v1615_v50 = vadd.f32 %v1614_v20, %v1613_v41 }
 0x1bc   :  { %v1604_v6 = vrot.slane %v1603_v59, 1  ;;  %v1592_v35 = vrot.slane %v1591_v28, 1 }
 0x1bd   :  { %v1581_v61 = vadd.f32 %v1580_v49, %v1579_v25  ;;  %v1616_v43 = vrot.slane %v1615_v50, 1 }
 0x1be   :  { %v1605_v2 = vadd.f32 %v1604_v6, %v1603_v59  ;;  %v1593_v14 = vadd.f32 %v1592_v35, %v1591_v28 }
 0x1bf   :  { %v5071_v38 = vmul.f32 0.020408163, %v1581_v61  ;;  %v1617_v61 = vadd.f32 %v1616_v43, %v1615_v50 }
 0x1c0   :  { %v5073_v45 = vmul.f32 0.020408163, %v1605_v2  ;;  %v5089_v33 = vmul.f32 0.020408163, %v1593_v14 }
 0x1c1   :  { %v1623_v32 = vsub.f32 %v4894_v55, %v5071_v38  ;;  %v1627_v52 = vsub.f32 %v4902_v47, %v5071_v38  ;;  %v1631_v8 = vsub.f32 %v4957_v31, %v5071_v38  ;;  %v1635_v53 = vsub.f32 %v4993_v34, %v5071_v38 }
 0x1c2   :  { %v1639_v62 = vsub.f32 %v5021_v54, %v5071_v38  ;;  %v1643_v26 = vsub.f32 %v5047_v12, %v5071_v38  ;;  %v1647_v60 = vsub.f32 %v5059_v56, %v5071_v38  ;;  %v1625_v27 = vsub.f32 %v4896_v5, %v5073_v45 }
 0x1c3   :  { %v1651_v40 = vmul.f32 %v1623_v32, %v1623_v32  ;;  %v1655_v51 = vmul.f32 %v1627_v52, %v1627_v52  ;;  %v1659_v10 = vmul.f32 %v1631_v8, %v1631_v8  ;;  %v1629_v1 = vsub.f32 %v4906_v46, %v5073_v45 }
 0x1c4   :  { %v1633_v21 = vsub.f32 %v4960_v22, %v5073_v45  ;;  %v1637_v58 = vsub.f32 %v4996_v37, %v5073_v45  ;;  %v1641_v13 = vsub.f32 %v5038_v3, %v5073_v45  ;;  %v1645_v41 = vsub.f32 %v5050_v42, %v5073_v45 }
 0x1c5   :  { %v1679_v29 = vadd.f32 %v1655_v51, %v1651_v40  ;;  %v1649_v25 = vsub.f32 %v5062_v0, %v5073_v45  ;;  %v1663_v59 = vmul.f32 %v1635_v53, %v1635_v53  ;;  %v1653_v49 = vmul.f32 %v1625_v27, %v1625_v27 }
 0x1c6   :  { %v1657_v6 = vmul.f32 %v1629_v1, %v1629_v1  ;;  %v1667_v35 = vmul.f32 %v1639_v62, %v1639_v62  ;;  %v1671_v20 = vmul.f32 %v1643_v26, %v1643_v26  ;;  %v1661_v14 = vmul.f32 %v1633_v21, %v1633_v21 }
 0x1c7   :  { %v1680_v28 = vadd.f32 %v1679_v29, %v1659_v10  ;;  %v1624_v52 = vsub.f32 %v4898_v44, %v5089_v33  ;;  %v1628_v8 = vsub.f32 %v4908_v11, %v5089_v33  ;;  %v1632_v40 = vsub.f32 %v4962_v57, %v5089_v33 }
 0x1c8   :  { %v1703_v32 = vadd.f32 %v1657_v6, %v1653_v49  ;;  %v1636_v53 = vsub.f32 %v4998_v36, %v5089_v33  ;;  %v1640_v62 = vsub.f32 %v5040_v7, %v5089_v33  ;;  %v1665_v50 = vmul.f32 %v1637_v58, %v1637_v58 }
 0x1c9   :  { %v1681_v2 = vadd.f32 %v1680_v28, %v1663_v59  ;;  %v1644_v10 = vsub.f32 %v5052_v48, %v5089_v33  ;;  %v1648_v43 = vsub.f32 %v5064_v4, %v5089_v33  ;;  %v1652_v29 = vmul.f32 %v1624_v52, %v1624_v52 }
 0x1ca   :  { %v1704_v51 = vadd.f32 %v1703_v32, %v1661_v14  ;;  %v1656_v27 = vmul.f32 %v1628_v8, %v1628_v8  ;;  %v1675_v1 = vmul.f32 %v1647_v60, %v1647_v60  ;;  %v1669_v59 = vmul.f32 %v1641_v13, %v1641_v13 }
 0x1cb   :  { %v1682_v26 = vadd.f32 %v1681_v2, %v1667_v35  ;;  %v1660_v49 = vmul.f32 %v1632_v40, %v1632_v40  ;;  %v1673_v56 = vmul.f32 %v1645_v41, %v1645_v41  ;;  %v5119_v35 = vmul.f32 0.020408163, %v1617_v61 }
 0x1cc   :  { %v1705_v28 = vadd.f32 %v1704_v51, %v1665_v50  ;;  %v1691_v6 = vadd.f32 %v1656_v27, %v1652_v29  ;;  %v1677_v58 = vmul.f32 %v1649_v25, %v1649_v25  ;;  %v1664_v2 = vmul.f32 %v1636_v53, %v1636_v53 }
 0x1cd   :  { %v1683_v21 = vadd.f32 %v1682_v26, %v1671_v20  ;;  %v1668_v14 = vmul.f32 %v1640_v62, %v1640_v62  ;;  %v1626_v52 = vsub.f32 %v4900_v30, %v5119_v35  ;;  %v1630_v60 = vsub.f32 %v4914_v18, %v5119_v35 }
 0x1ce   :  { %v1706_v42 = vadd.f32 %v1705_v28, %v1669_v59  ;;  %v1692_v32 = vadd.f32 %v1691_v6, %v1660_v49  ;;  %v1634_v20 = vsub.f32 %v4985_v23, %v5119_v35  ;;  %v1638_v41 = vsub.f32 %v5018_v63, %v5119_v35 }
 0x1cf   :  { %v1684_v0 = vadd.f32 %v1683_v21, %v1675_v1  ;;  %v1642_v25 = vsub.f32 %v5044_v15, %v5119_v35  ;;  %v1672_v40 = vmul.f32 %v1644_v10, %v1644_v10  ;;  %v1654_v62 = vmul.f32 %v1626_v52, %v1626_v52 }
 0x1d0   :  { %v1707_v12 = vadd.f32 %v1706_v42, %v1673_v56  ;;  %v1693_v13 = vadd.f32 %v1692_v32, %v1664_v2  ;;  %v1646_v42 = vsub.f32 %v5056_v39, %v5119_v35  ;;  %v1650_v56 = vsub.f32 %v5068_v9, %v5119_v35 }
 0x1d1   :  { %v1685_v48 = vrot.slane %v1684_v0, 4  ;;  %v1658_v26 = vmul.f32 %v1630_v60, %v1630_v60  ;;  %v1676_v29 = vmul.f32 %v1648_v43, %v1648_v43  ;;  %v1662_v1 = vmul.f32 %v1634_v20, %v1634_v20 }
 0x1d2   :  { %v1708_v8 = vadd.f32 %v1707_v12, %v1677_v58  ;;  %v1694_v53 = vadd.f32 %v1693_v13, %v1668_v14  ;;  %v1666_v28 = vmul.f32 %v1638_v41, %v1638_v41  ;;  %v1670_v10 = vmul.f32 %v1642_v25, %v1642_v25 }
 0x1d3   :  { %v1686_v61 = vadd.f32 %v1685_v48, %v1684_v0  ;;  %v1715_v21 = vadd.f32 %v1658_v26, %v1654_v62  ;;  %v1727_v48 = vmul.f32 7.0, %v5071_v38  ;;  %v1729_v43 = vmul.f32 7.0, %v5073_v45 }
 0x1d4   :  { %v1709_v51 = vrot.slane %v1708_v8, 4  ;;  %v1695_v27 = vadd.f32 %v1694_v53, %v1672_v40  ;;  %v1674_v20 = vmul.f32 %v1646_v42, %v1646_v42  ;;  %v1678_v62 = vmul.f32 %v1650_v56, %v1650_v56 }
 0x1d5   :  { %v1687_v50 = vrot.slane %v1686_v61, 2  ;;  %v1716_v49 = vadd.f32 %v1715_v21, %v1662_v1  ;;  %v1731_v52 = vmul.f32 %v1727_v48, %v5071_v38  ;;  %v1728_v25 = vmul.f32 7.0, %v5089_v33 }
 0x1d6   :  { %v1710_v12 = vadd.f32 %v1709_v51, %v1708_v8  ;;  %v1696_v0 = vadd.f32 %v1695_v27, %v1676_v29 }
 0x1d7   :  { %v1688_v59 = vadd.f32 %v1687_v50, %v1686_v61  ;;  %v1717_v14 = vadd.f32 %v1716_v49, %v1666_v28  ;;  %v1733_v50 = vmul.f32 %v1729_v43, %v5073_v45  ;;  %v1732_v42 = vmul.f32 %v1728_v25, %v5089_v33 }
 0x1d8   :  { %v1711_v58 = vrot.slane %v1710_v12, 2  ;;  %v1697_v2 = vrot.slane %v1696_v0, 4 }
 0x1d9   :  { %v1689_v6 = vrot.slane %v1688_v59, 1  ;;  %v1718_v61 = vadd.f32 %v1717_v14, %v1670_v10 }
 0x1da   :  { %v1712_v60 = vadd.f32 %v1711_v58, %v1710_v12  ;;  %v1698_v13 = vadd.f32 %v1697_v2, %v1696_v0  ;;  %v1730_v58 = vmul.f32 7.0, %v5119_v35 }
 0x1db   :  { %v1690_v32 = vadd.f32 %v1689_v6, %v1688_v59  ;;  %v1719_v41 = vadd.f32 %v1718_v61, %v1674_v20  ;;  %v4099_v61 = vmov 1966171168  }
 0x1dc   :  { %v1713_v53 = vrot.slane %v1712_v60, 1  ;;  %v1699_v8 = vrot.slane %v1698_v13, 2 }
 0x1dd   :  { %v1735_v40 = vsub.f32 %v1690_v32, %v1731_v52  ;;  %v1720_v29 = vadd.f32 %v1719_v41, %v1678_v62  ;;  %v1734_v52 = vmul.f32 %v1730_v58, %v5119_v35 }
 0x1de   :  { %v1714_v26 = vadd.f32 %v1713_v53, %v1712_v60  ;;  %v1700_v51 = vadd.f32 %v1699_v8, %v1698_v13 }
 0x1df   :  { %v1739_v1 = vmul.f32 0.020408163, %v1735_v40  ;;  %v1721_v59 = vrot.slane %v1720_v29, 4  ;;  %v1759_v40 = vunpack.c.l.s4 %v4099_v61 }
 0x1e0   :  { %v1737_v27 = vsub.f32 %v1714_v26, %v1733_v50  ;;  %v1701_v21 = vrot.slane %v1700_v51, 1  ;;  %v5471_v26 = vld [vmem:[#allocation20_spill] sm:$0xff] }
 0x1e1   :  { %v1722_v12 = vadd.f32 %v1721_v59, %v1720_v29  ;;  %v1744_v0 = vadd.f32 1e-05, %v1739_v1  ;;  %v1760_v41 = vunpack.c.0.s8 %v1759_v40  ;;  %v1743_v59 = vld [vmem:[%s5447_s3] sm:$0xf] }
 0x1e2   :  { %v1702_v48 = vadd.f32 %v1701_v21, %v1700_v51  ;;  %v1741_v2 = vmul.f32 0.020408163, %v1737_v27 }
 0x1e3   :  { %v1723_v49 = vrot.slane %v1722_v12, 2  ;;  %3982 = vrsqrt.f32 %v1744_v0  ;;  %v1763_v50 = vsub.s32 %v1760_v41, %v5471_v26 }
 0x1e4   :  { %v1736_v28 = vsub.f32 %v1702_v48, %v1732_v42  ;;  %v1746_v60 = vadd.f32 1e-05, %v1741_v2 }
 0x1e5   :  { %v1724_v6 = vadd.f32 %v1723_v49, %v1722_v12 }
 0x1e6   :  { %v1740_v56 = vmul.f32 0.020408163, %v1736_v28 }
 0x1e7   :  { %v1725_v14 = vrot.slane %v1724_v6, 1 }
 0x1e8   :  { %v1745_v10 = vadd.f32 1e-05, %v1740_v56 }
 0x1e9   :  { %v1726_v32 = vadd.f32 %v1725_v14, %v1724_v6 }
 0x1ea   :  { %3984 = vrsqrt.f32 %v1745_v10 }
 0x1eb   :  { %v1738_v43 = vsub.f32 %v1726_v32, %v1734_v52  ;;  %3986 = vrsqrt.f32 %v1746_v60 }
 0x1ed   :  { %v1742_v13 = vmul.f32 0.020408163, %v1738_v43  ;;  %v3983_v53 = vpop.eup %3982 }
 0x1ef   :  { %v1747_v20 = vadd.f32 1e-05, %v1742_v13 }
 0x1f1   :  { %3988 = vrsqrt.f32 %v1747_v20 }
 0x1f4   :  { %v3985_v8 = vpop.eup %3984 }
 0x1f5   :  { %v1756_v62 = vcombine.low %v3983_v53, %v3985_v8  ;;  %v3987_v51 = vpop.eup %3986 }
 0x1f7   :  { %v1764_v29 = vrot.slane %v1756_v62, %v1763_v50 }
 0x1fb   :  { %v3989_v25 = vpop.eup %3988 }
 0x1fc   :  { %v1757_v27 = vcombine.low %v3987_v51, %v3989_v25 }
 0x1fe   :  { %v1771_v1 = vrot.slane %v1757_v27, %v1763_v50 }
 0x200   :  { %v1772_v21 = vcombine.low %v1764_v29, %v1771_v1 }
 0x202   :  { %v1779_v48 = vrot.slane %v1772_v21, %v1763_v50 }
 0x204   :  { %v1781_v42 = vmul.f32 %v1779_v48, %v1743_v59 }
 0x206   :  { %v1787_v12 = vrot.slane %v1781_v42, %v4184_v19  ;;  %v1791_v0 = vrot.slane %v1781_v42, %v4176_v16  ;;  %v1795_v28 = vrot.slane %v1781_v42, %v4197_v24  ;;  %v1799_v49 = vrot.slane %v1781_v42, %v4179_v17 }
 0x208   :  { %v1804_v56 = vmul.f32 %v1787_v12, %v5071_v38  ;;  %v1805_v6 = vmul.f32 %v1791_v0, %v5089_v33  ;;  %v1806_v58 = vmul.f32 %v1795_v28, %v5073_v45  ;;  %v1807_v2 = vmul.f32 %v1799_v49, %v5119_v35 }
 0x209   :  { %v1838_v10 = vmul.f32 %v1787_v12, %v4894_v55  ;;  %v1839_v14 = vmul.f32 %v1791_v0, %v4898_v44  ;;  %v1840_v32 = vmul.f32 %v1795_v28, %v4896_v5  ;;  %v1841_v52 = vmul.f32 %v1799_v49, %v4900_v30 }
 0x20a   :  { %v1812_v60 = vcombine.low %v1804_v56, %v1805_v6  ;;  %v1813_v43 = vcombine.low %v1806_v58, %v1807_v2  ;;  %v1842_v13 = vmul.f32 %v1787_v12, %v4902_v47  ;;  %v1843_v38 = vmul.f32 %v1791_v0, %v4908_v11 }
 0x20b   :  { %v1844_v33 = vmul.f32 %v1795_v28, %v4906_v46  ;;  %v1845_v45 = vmul.f32 %v1799_v49, %v4914_v18  ;;  %v1846_v35 = vmul.f32 %v1787_v12, %v4957_v31  ;;  %v1847_v55 = vmul.f32 %v1791_v0, %v4962_v57 }
 0x20c   :  { %v1820_v20 = vrot.slane %v1812_v60, %v1763_v50  ;;  %v1827_v44 = vrot.slane %v1813_v43, %v1763_v50  ;;  %v1848_v5 = vmul.f32 %v1795_v28, %v4960_v22  ;;  %v1849_v30 = vmul.f32 %v1799_v49, %v4985_v23  ;;  %v1782_v22 = vld [vmem:[%s5448_s4] sm:$0xf] }
 0x20d   :  { %v1850_v61 = vmul.f32 %v1787_v12, %v4993_v34  ;;  %v1851_v47 = vmul.f32 %v1791_v0, %v4998_v36  ;;  %v1852_v11 = vmul.f32 %v1795_v28, %v4996_v37  ;;  %v1853_v46 = vmul.f32 %v1799_v49, %v5018_v63  ;;  %v5472_v34 = vld [vmem:[#allocation19_spill] sm:$0xff]  ;;  %v5473_v36 = vld [vmem:[#allocation22_spill] sm:$0xff]  ;;  %v5474_v37 = vld [vmem:[#allocation21_spill] sm:$0xff] }
 0x20e   :  { %v1828_v40 = vcombine.low %v1820_v20, %v1827_v44  ;;  %v1854_v18 = vmul.f32 %v1787_v12, %v5021_v54  ;;  %v1855_v31 = vmul.f32 %v1791_v0, %v5040_v7  ;;  %v1856_v57 = vmul.f32 %v1795_v28, %v5038_v3  ;;  %v5475_v54 = vld [vmem:[#allocation23_spill] sm:$0xff]  ;;  %v5476_v3 = vld [vmem:[#allocation24_spill] sm:$0xff] }
 0x20f   :  { %v1857_v23 = vmul.f32 %v1799_v49, %v5044_v15  ;;  %v1858_v53 = vmul.f32 %v1787_v12, %v5472_v34  ;;  %v1859_v8 = vmul.f32 %v1791_v0, %v5473_v36  ;;  %v1860_v62 = vmul.f32 %v1795_v28, %v5474_v37 }
 0x210   :  { %v1835_v63 = vrot.slane %v1828_v40, %v1763_v50  ;;  %v1861_v41 = vmul.f32 %v1799_v49, %v5056_v39  ;;  %v1862_v26 = vmul.f32 %v1787_v12, %v5475_v54  ;;  %v1863_v7 = vmul.f32 %v1791_v0, %v5064_v4 }
 0x211   :  { %v1864_v51 = vmul.f32 %v1795_v28, %v5476_v3  ;;  %v1865_v25 = vmul.f32 %v1799_v49, %v5068_v9 }
 0x212   :  { %v1837_v29 = vsub.f32 %v1782_v22, %v1835_v63 }
 0x214   :  { %v1870_v15 = vrot.slane %v1837_v29, %v4184_v19  ;;  %v1874_v27 = vrot.slane %v1837_v29, %v4176_v16  ;;  %v1878_v1 = vrot.slane %v1837_v29, %v4197_v24  ;;  %v1882_v21 = vrot.slane %v1837_v29, %v4179_v17 }
 0x216   :  { %v5190_v50 = vadd.f32 %v1870_v15, %v1838_v10  ;;  %v5192_v39 = vadd.f32 %v1874_v27, %v1839_v14  ;;  %v5194_v59 = vadd.f32 %v1878_v1, %v1840_v32  ;;  %v5196_v4 = vadd.f32 %v1882_v21, %v1841_v52 }
 0x217   :  { %v5198_v48 = vadd.f32 %v1870_v15, %v1842_v13  ;;  %v5200_v9 = vadd.f32 %v1874_v27, %v1843_v38  ;;  %v5202_v42 = vadd.f32 %v1878_v1, %v1844_v33  ;;  %v5204_v19 = vadd.f32 %v1882_v21, %v1845_v45 }
 0x218   :  { %v5206_v16 = vadd.f32 %v1870_v15, %v1846_v35  ;;  %v5208_v24 = vadd.f32 %v1874_v27, %v1847_v55  ;;  %v5210_v17 = vadd.f32 %v1878_v1, %v1848_v5  ;;  %v5212_v12 = vadd.f32 %v1882_v21, %v1849_v30 }
 0x219   :  { %v5214_v0 = vadd.f32 %v1870_v15, %v1850_v61  ;;  %v5216_v28 = vadd.f32 %v1874_v27, %v1851_v47  ;;  %v5218_v49 = vadd.f32 %v1878_v1, %v1852_v11  ;;  %v5220_v56 = vadd.f32 %v1882_v21, %v1853_v46 }
 0x21a   :  { %v5222_v6 = vadd.f32 %v1870_v15, %v1854_v18  ;;  %v5224_v58 = vadd.f32 %v1874_v27, %v1855_v31  ;;  %v5226_v2 = vadd.f32 %v1878_v1, %v1856_v57  ;;  %v5228_v10 = vadd.f32 %v1882_v21, %v1857_v23 }
 0x21b   :  { %v5230_v14 = vadd.f32 %v1870_v15, %v1858_v53  ;;  %v5232_v32 = vadd.f32 %v1874_v27, %v1859_v8  ;;  %v5234_v52 = vadd.f32 %v1878_v1, %v1860_v62  ;;  %v5236_v60 = vadd.f32 %v1882_v21, %v1861_v41 }
 0x21c   :  { %v5238_v43 = vadd.f32 %v1870_v15, %v1862_v26  ;;  %v5240_v13 = vadd.f32 %v1874_v27, %v1863_v7  ;;  %v5242_v38 = vadd.f32 %v1878_v1, %v1864_v51  ;;  %v5244_v33 = vadd.f32 %v1882_v21, %v1865_v25 }
 0x21d   :  { %4087 = dma.done.wait [#allocation4], 8192 }
 0x21e   :  { %4088 = vsyncadd [#allocation4], 4294959104  ;;  %v4100_v45 = vmov 0.0   ;;  %v1920_v35 = vld [vmem:[#allocation3 + $0x8] sm:$0xff]  ;;  %v1922_v20 = vld [vmem:[#allocation3 + $0x18] sm:$0xff] }
 0x21f   :  { %2047 = vmatprep.mubr.f32.mxu0 %v4100_v45  ;;  %2154 = vmatprep.mubr.f32.mxu1 %v4100_v45  ;;  %v1924_v55 = vld [vmem:[#allocation3 + $0x28] sm:$0xff]  ;;  %v1926_v5 = vld [vmem:[#allocation3 + $0x38] sm:$0xff]  ;;  %v1919_v30 = vld [vmem:[#allocation3] sm:$0xff] }
 0x220   :  { %v3608_v44 = vpack.c.bf16 %v1924_v55, %v1920_v35  ;;  %v1923_v61 = vld [vmem:[#allocation3 + $0x20] sm:$0xff]  ;;  %v3640_v47 = vpack.c.bf16 %v1926_v5, %v1922_v20  ;;  %v1921_v46 = vld [vmem:[#allocation3 + $0x10] sm:$0xff]  ;;  %v1928_v18 = vld [vmem:[#allocation3 + $0x48] sm:$0xff] }
 0x221   :  { %v3610_v11 = vpack.c.bf16 %v1923_v61, %v1919_v30  ;;  %v1925_v40 = vld [vmem:[#allocation3 + $0x30] sm:$0xff]  ;;  %v1932_v57 = vld [vmem:[#allocation3 + $0x68] sm:$0xff]  ;;  %v1930_v22 = vld [vmem:[#allocation3 + $0x58] sm:$0xff] }
 0x222   :  { %3609 = vmatprep.subr.bf16.mxu0 %v3608_v44  ;;  %v3642_v31 = vpack.c.bf16 %v1925_v40, %v1921_v46  ;;  %v1934_v23 = vld [vmem:[#allocation3 + $0x78] sm:$0xff]  ;;  %3641 = vmatprep.subr.bf16.mxu1 %v3640_v47  ;;  %v3612_v34 = vpack.c.bf16 %v1932_v57, %v1928_v18  ;;  %v1927_v36 = vld [vmem:[#allocation3 + $0x40] sm:$0xff]  ;;  %v1929_v37 = vld [vmem:[#allocation3 + $0x50] sm:$0xff] }
 0x223   :  { %3611 = vmatpush1.bf16.msra.mxu0 %v3610_v11  ;;  %v3644_v53 = vpack.c.bf16 %v1934_v23, %v1930_v22  ;;  %v1931_v8 = vld [vmem:[#allocation3 + $0x60] sm:$0xff]  ;;  %v1933_v63 = vld [vmem:[#allocation3 + $0x70] sm:$0xff]  ;;  %v1936_v41 = vld [vmem:[#allocation3 + $0x88] sm:$0xff] }
 0x224   :  { %3643 = vmatpush1.bf16.msra.mxu1 %v3642_v31  ;;  %v3614_v62 = vpack.c.bf16 %v1931_v8, %v1927_v36  ;;  %v1940_v54 = vld [vmem:[#allocation3 + $0xa8] sm:$0xff]  ;;  %3613 = vmatprep.subr.bf16.mxu0 %v3612_v34  ;;  %v3646_v26 = vpack.c.bf16 %v1933_v63, %v1929_v37  ;;  %v1938_v3 = vld [vmem:[#allocation3 + $0x98] sm:$0xff]  ;;  %v1935_v25 = vld [vmem:[#allocation3 + $0x80] sm:$0xff] }
 0x225   :  { %3645 = vmatprep.subr.bf16.mxu1 %v3644_v53  ;;  %v3616_v7 = vpack.c.bf16 %v1940_v54, %v1936_v41  ;;  %v1942_v51 = vld [vmem:[#allocation3 + $0xb8] sm:$0xff]  ;;  %v1939_v15 = vld [vmem:[#allocation3 + $0xa0] sm:$0xff]  ;;  %v1937_v27 = vld [vmem:[#allocation3 + $0x90] sm:$0xff] }
 0x226   :  { %v3648_v29 = vpack.c.bf16 %v1942_v51, %v1938_v3  ;;  %v1941_v1 = vld [vmem:[#allocation3 + $0xb0] sm:$0xff]  ;;  %v3618_v21 = vpack.c.bf16 %v1939_v15, %v1935_v25  ;;  %v1944_v35 = vld [vmem:[#allocation3 + $0xc8] sm:$0xff]  ;;  %v1946_v20 = vld [vmem:[#allocation3 + $0xd8] sm:$0xff] }
 0x227   :  { %3615 = vmatpush1.bf16.msra.mxu0 %v3614_v62  ;;  %v1948_v55 = vld [vmem:[#allocation3 + $0xe8] sm:$0xff]  ;;  %v3650_v44 = vpack.c.bf16 %v1941_v1, %v1937_v27  ;;  %v1950_v30 = vld [vmem:[#allocation3 + $0xf8] sm:$0xff]  ;;  %v1943_v61 = vld [vmem:[#allocation3 + $0xc0] sm:$0xff] }
 0x228   :  { %3647 = vmatpush1.bf16.msra.mxu1 %v3646_v26  ;;  %3617 = vmatprep.subr.bf16.mxu0 %v3616_v7  ;;  %v3620_v5 = vpack.c.bf16 %v1948_v55, %v1944_v35  ;;  %v1947_v47 = vld [vmem:[#allocation3 + $0xe0] sm:$0xff]  ;;  %v3652_v11 = vpack.c.bf16 %v1950_v30, %v1946_v20  ;;  %v1945_v46 = vld [vmem:[#allocation3 + $0xd0] sm:$0xff]  ;;  %v1952_v18 = vld [vmem:[#allocation3 + $0x108] sm:$0xff] }
 0x229   :  { %3649 = vmatprep.subr.bf16.mxu1 %v3648_v29  ;;  %v1949_v40 = vld [vmem:[#allocation3 + $0xf0] sm:$0xff]  ;;  %v1956_v31 = vld [vmem:[#allocation3 + $0x128] sm:$0xff]  ;;  %v1954_v57 = vld [vmem:[#allocation3 + $0x118] sm:$0xff]  ;;  %v3622_v23 = vpack.c.bf16 %v1947_v47, %v1943_v61 }
 0x22a   :  { %v1958_v22 = vld [vmem:[#allocation3 + $0x138] sm:$0xff]  ;;  %v3654_v34 = vpack.c.bf16 %v1949_v40, %v1945_v46  ;;  %v3624_v53 = vpack.c.bf16 %v1956_v31, %v1952_v18  ;;  %v1951_v36 = vld [vmem:[#allocation3 + $0x100] sm:$0xff]  ;;  %v1953_v37 = vld [vmem:[#allocation3 + $0x110] sm:$0xff] }
 0x22b   :  { %3619 = vmatpush1.bf16.msra.mxu0 %v3618_v21  ;;  %v1955_v8 = vld [vmem:[#allocation3 + $0x120] sm:$0xff]  ;;  %v3656_v62 = vpack.c.bf16 %v1958_v22, %v1954_v57  ;;  %v1957_v63 = vld [vmem:[#allocation3 + $0x130] sm:$0xff]  ;;  %v1960_v41 = vld [vmem:[#allocation3 + $0x148] sm:$0xff] }
 0x22c   :  { %3651 = vmatpush1.bf16.msra.mxu1 %v3650_v44  ;;  %3621 = vmatprep.subr.bf16.mxu0 %v3620_v5  ;;  %v1964_v54 = vld [vmem:[#allocation3 + $0x168] sm:$0xff]  ;;  %v1962_v26 = vld [vmem:[#allocation3 + $0x158] sm:$0xff]  ;;  %v3626_v3 = vpack.c.bf16 %v1955_v8, %v1951_v36  ;;  %v3658_v51 = vpack.c.bf16 %v1957_v63, %v1953_v37  ;;  %v1959_v29 = vld [vmem:[#allocation3 + $0x140] sm:$0xff] }
 0x22d   :  { %3653 = vmatprep.subr.bf16.mxu1 %v3652_v11  ;;  %v1966_v7 = vld [vmem:[#allocation3 + $0x178] sm:$0xff]  ;;  %v3628_v25 = vpack.c.bf16 %v1964_v54, %v1960_v41  ;;  %v1963_v15 = vld [vmem:[#allocation3 + $0x160] sm:$0xff]  ;;  %v1961_v27 = vld [vmem:[#allocation3 + $0x150] sm:$0xff] }
 0x22e   :  { %v3660_v1 = vpack.c.bf16 %v1966_v7, %v1962_v26  ;;  %v1965_v21 = vld [vmem:[#allocation3 + $0x170] sm:$0xff]  ;;  %v1968_v35 = vld [vmem:[#allocation3 + $0x188] sm:$0xff]  ;;  %v1970_v20 = vld [vmem:[#allocation3 + $0x198] sm:$0xff]  ;;  %v3630_v5 = vpack.c.bf16 %v1963_v15, %v1959_v29 }
 0x22f   :  { %3623 = vmatpush1.bf16.msra.mxu0 %v3622_v23  ;;  %v1972_v55 = vld [vmem:[#allocation3 + $0x1a8] sm:$0xff]  ;;  %v1974_v44 = vld [vmem:[#allocation3 + $0x1b8] sm:$0xff]  ;;  %v3662_v30 = vpack.c.bf16 %v1965_v21, %v1961_v27  ;;  %v1967_v47 = vld [vmem:[#allocation3 + $0x180] sm:$0xff] }
 0x230   :  { %3655 = vmatpush1.bf16.msra.mxu1 %v3654_v34  ;;  %3625 = vmatprep.subr.bf16.mxu0 %v3624_v53  ;;  %v3632_v61 = vpack.c.bf16 %v1972_v55, %v1968_v35  ;;  %v1971_v11 = vld [vmem:[#allocation3 + $0x1a0] sm:$0xff]  ;;  %v1969_v46 = vld [vmem:[#allocation3 + $0x190] sm:$0xff]  ;;  %v3664_v40 = vpack.c.bf16 %v1974_v44, %v1970_v20  ;;  %v1976_v31 = vld [vmem:[#allocation3 + $0x1c8] sm:$0xff] }
 0x231   :  { %3657 = vmatprep.subr.bf16.mxu1 %v3656_v62  ;;  %v1973_v18 = vld [vmem:[#allocation3 + $0x1b0] sm:$0xff]  ;;  %v1980_v57 = vld [vmem:[#allocation3 + $0x1e8] sm:$0xff]  ;;  %v1978_v22 = vld [vmem:[#allocation3 + $0x1d8] sm:$0xff]  ;;  %v3634_v34 = vpack.c.bf16 %v1971_v11, %v1967_v47 }
 0x232   :  { %v1982_v23 = vld [vmem:[#allocation3 + $0x1f8] sm:$0xff]  ;;  %v3666_v53 = vpack.c.bf16 %v1973_v18, %v1969_v46  ;;  %v3636_v36 = vpack.c.bf16 %v1980_v57, %v1976_v31  ;;  %v1975_v8 = vld [vmem:[#allocation3 + $0x1c0] sm:$0xff]  ;;  %v1977_v63 = vld [vmem:[#allocation3 + $0x1d0] sm:$0xff] }
 0x233   :  { %3627 = vmatpush1.bf16.msra.mxu0 %v3626_v3  ;;  %v1979_v37 = vld [vmem:[#allocation3 + $0x1e0] sm:$0xff]  ;;  %v3668_v62 = vpack.c.bf16 %v1982_v23, %v1978_v22  ;;  %v1981_v41 = vld [vmem:[#allocation3 + $0x1f0] sm:$0xff] }
 0x234   :  { %3659 = vmatpush1.bf16.msra.mxu1 %v3658_v51  ;;  %3629 = vmatprep.subr.bf16.mxu0 %v3628_v25  ;;  %v3638_v54 = vpack.c.bf16 %v1979_v37, %v1975_v8  ;;  %v3670_v26 = vpack.c.bf16 %v1981_v41, %v1977_v63 }
 0x235   :  { %3661 = vmatprep.subr.bf16.mxu1 %v3660_v1 }
 0x237   :  { %3631 = vmatpush1.bf16.msra.mxu0 %v3630_v5 }
 0x238   :  { %3663 = vmatpush1.bf16.msra.mxu1 %v3662_v30  ;;  %3633 = vmatprep.subr.bf16.mxu0 %v3632_v61 }
 0x239   :  { %3665 = vmatprep.subr.bf16.mxu1 %v3664_v40 }
 0x23b   :  { %3635 = vmatpush1.bf16.msra.mxu0 %v3634_v34 }
 0x23c   :  { %3667 = vmatpush1.bf16.msra.mxu1 %v3666_v53  ;;  %3637 = vmatprep.subr.bf16.mxu0 %v3636_v36 }
 0x23d   :  { %3669 = vmatprep.subr.bf16.mxu1 %v3668_v62 }
 0x23f   :  { %3639 = vmatpush1.bf16.msra.mxu0 %v3638_v54 }
 0x240   :  { %3671 = vmatpush1.bf16.msra.mxu1 %v3670_v26 }
 0x242   :  { %2048 = vmatmul.mubr.f32.vlgmr.msra.gmra.mrb[14].mxu0 %v5190_v50 }
 0x243   :  { %2155 = vmatmul.mubr.f32.vlgmr.msra.gmra.mrb[14].mxu1 %v5190_v50  ;;  %2053 = vmatprep.mubr.f32.mxu0 %v4100_v45 }
 0x244   :  { %2160 = vmatprep.mubr.f32.mxu1 %v4100_v45 }
 0x246   :  { %2054 = vmatmul.mubr.f32.gmra.mrb[16].mxu0 %v5198_v48 }
 0x247   :  { %2161 = vmatmul.mubr.f32.gmra.mrb[16].mxu1 %v5198_v48  ;;  %2059 = vmatprep.mubr.f32.mxu0 %v4100_v45 }
 0x248   :  { %2166 = vmatprep.mubr.f32.mxu1 %v4100_v45 }
 0x24a   :  { %2060 = vmatmul.mubr.f32.gmra.mrb[18].mxu0 %v5206_v16 }
 0x24b   :  { %2167 = vmatmul.mubr.f32.gmra.mrb[18].mxu1 %v5206_v16  ;;  %2065 = vmatprep.mubr.f32.mxu0 %v4100_v45 }
 0x24c   :  { %2172 = vmatprep.mubr.f32.mxu1 %v4100_v45 }
 0x24e   :  { %2066 = vmatmul.mubr.f32.gmra.mrb[20].mxu0 %v5214_v0 }
 0x24f   :  { %2173 = vmatmul.mubr.f32.gmra.mrb[20].mxu1 %v5214_v0  ;;  %2071 = vmatprep.mubr.f32.mxu0 %v4100_v45 }
 0x250   :  { %2178 = vmatprep.mubr.f32.mxu1 %v4100_v45 }
 0x252   :  { %2072 = vmatmul.mubr.f32.gmra.mrb[22].mxu0 %v5222_v6 }
 0x253   :  { %2179 = vmatmul.mubr.f32.gmra.mrb[22].mxu1 %v5222_v6  ;;  %2077 = vmatprep.mubr.f32.mxu0 %v4100_v45 }
 0x254   :  { %2184 = vmatprep.mubr.f32.mxu1 %v4100_v45 }
 0x256   :  { %2078 = vmatmul.mubr.f32.gmra.mrb[24].mxu0 %v5230_v14 }
 0x257   :  { %2185 = vmatmul.mubr.f32.gmra.mrb[24].mxu1 %v5230_v14  ;;  %2083 = vmatprep.mubr.f32.mxu0 %v4100_v45 }
 0x258   :  { %2190 = vmatprep.mubr.f32.mxu1 %v4100_v45 }
 0x25a   :  { %2084 = vmatmul.mubr.f32.gmra.mrb[26].mxu0 %v5238_v43 }
 0x25b   :  { %2191 = vmatmul.mubr.f32.gmra.mrb[26].mxu1 %v5238_v43 }
 0x25c   :  { %4089 = dma.done.wait [#allocation4 + $0x1], 8192 }
 0x25d   :  { %4090 = vsyncadd [#allocation4 + $0x1], 4294959104  ;;  %2355 = vmatprep.mubr.f32.mxu0 %v4100_v45  ;;  %2462 = vmatprep.mubr.f32.mxu1 %v4100_v45  ;;  %v2228_v50 = vld [vmem:[#allocation3 + $0x208] sm:$0xff]  ;;  %v2230_v16 = vld [vmem:[#allocation3 + $0x218] sm:$0xff] }
 0x25e   :  { %v2232_v48 = vld [vmem:[#allocation3 + $0x228] sm:$0xff]  ;;  %v2234_v6 = vld [vmem:[#allocation3 + $0x238] sm:$0xff]  ;;  %v2227_v14 = vld [vmem:[#allocation3 + $0x200] sm:$0xff] }
 0x25f   :  { %v3672_v0 = vpack.c.bf16 %v2232_v48, %v2228_v50  ;;  %v2231_v7 = vld [vmem:[#allocation3 + $0x220] sm:$0xff]  ;;  %v3704_v3 = vpack.c.bf16 %v2234_v6, %v2230_v16  ;;  %v2229_v25 = vld [vmem:[#allocation3 + $0x210] sm:$0xff]  ;;  %v2236_v15 = vld [vmem:[#allocation3 + $0x248] sm:$0xff] }
 0x260   :  { %v3674_v51 = vpack.c.bf16 %v2231_v7, %v2227_v14  ;;  %v2233_v29 = vld [vmem:[#allocation3 + $0x230] sm:$0xff]  ;;  %v2240_v27 = vld [vmem:[#allocation3 + $0x268] sm:$0xff]  ;;  %v2238_v1 = vld [vmem:[#allocation3 + $0x258] sm:$0xff] }
 0x261   :  { %3673 = vmatprep.subr.bf16.mxu0 %v3672_v0  ;;  %v3706_v43 = vpack.c.bf16 %v2233_v29, %v2229_v25  ;;  %v2242_v21 = vld [vmem:[#allocation3 + $0x278] sm:$0xff]  ;;  %3705 = vmatprep.subr.bf16.mxu1 %v3704_v3  ;;  %v3676_v35 = vpack.c.bf16 %v2240_v27, %v2236_v15  ;;  %v2235_v20 = vld [vmem:[#allocation3 + $0x240] sm:$0xff]  ;;  %v2237_v5 = vld [vmem:[#allocation3 + $0x250] sm:$0xff] }
 0x262   :  { %3675 = vmatpush1.bf16.msra.mxu0 %v3674_v51  ;;  %v3708_v55 = vpack.c.bf16 %v2242_v21, %v2238_v1  ;;  %v2239_v44 = vld [vmem:[#allocation3 + $0x260] sm:$0xff]  ;;  %v2241_v61 = vld [vmem:[#allocation3 + $0x270] sm:$0xff]  ;;  %v2244_v47 = vld [vmem:[#allocation3 + $0x288] sm:$0xff] }
 0x263   :  { %3707 = vmatpush1.bf16.msra.mxu1 %v3706_v43  ;;  %v3678_v30 = vpack.c.bf16 %v2239_v44, %v2235_v20  ;;  %v2248_v11 = vld [vmem:[#allocation3 + $0x2a8] sm:$0xff]  ;;  %3677 = vmatprep.subr.bf16.mxu0 %v3676_v35  ;;  %v3710_v46 = vpack.c.bf16 %v2241_v61, %v2237_v5  ;;  %v2246_v18 = vld [vmem:[#allocation3 + $0x298] sm:$0xff]  ;;  %v2243_v57 = vld [vmem:[#allocation3 + $0x280] sm:$0xff] }
 0x264   :  { %3709 = vmatprep.subr.bf16.mxu1 %v3708_v55  ;;  %v3680_v40 = vpack.c.bf16 %v2248_v11, %v2244_v47  ;;  %v2250_v31 = vld [vmem:[#allocation3 + $0x2b8] sm:$0xff]  ;;  %v2247_v23 = vld [vmem:[#allocation3 + $0x2a0] sm:$0xff]  ;;  %v2245_v34 = vld [vmem:[#allocation3 + $0x290] sm:$0xff] }
 0x265   :  { %v3712_v22 = vpack.c.bf16 %v2250_v31, %v2246_v18  ;;  %v2249_v53 = vld [vmem:[#allocation3 + $0x2b0] sm:$0xff]  ;;  %v3682_v36 = vpack.c.bf16 %v2247_v23, %v2243_v57  ;;  %v2252_v8 = vld [vmem:[#allocation3 + $0x2c8] sm:$0xff]  ;;  %v2254_v62 = vld [vmem:[#allocation3 + $0x2d8] sm:$0xff] }
 0x266   :  { %3679 = vmatpush1.bf16.msra.mxu0 %v3678_v30  ;;  %v2256_v37 = vld [vmem:[#allocation3 + $0x2e8] sm:$0xff]  ;;  %v3714_v63 = vpack.c.bf16 %v2249_v53, %v2245_v34  ;;  %v2258_v54 = vld [vmem:[#allocation3 + $0x2f8] sm:$0xff]  ;;  %v2251_v26 = vld [vmem:[#allocation3 + $0x2c0] sm:$0xff] }
 0x267   :  { %3711 = vmatpush1.bf16.msra.mxu1 %v3710_v46  ;;  %3681 = vmatprep.subr.bf16.mxu0 %v3680_v40  ;;  %v3684_v41 = vpack.c.bf16 %v2256_v37, %v2252_v8  ;;  %v2255_v50 = vld [vmem:[#allocation3 + $0x2e0] sm:$0xff]  ;;  %v3716_v48 = vpack.c.bf16 %v2258_v54, %v2254_v62  ;;  %v2253_v16 = vld [vmem:[#allocation3 + $0x2d0] sm:$0xff]  ;;  %v2260_v6 = vld [vmem:[#allocation3 + $0x308] sm:$0xff] }
 0x268   :  { %3713 = vmatprep.subr.bf16.mxu1 %v3712_v22  ;;  %v2257_v0 = vld [vmem:[#allocation3 + $0x2f0] sm:$0xff]  ;;  %v2264_v14 = vld [vmem:[#allocation3 + $0x328] sm:$0xff]  ;;  %v2262_v7 = vld [vmem:[#allocation3 + $0x318] sm:$0xff]  ;;  %v3686_v51 = vpack.c.bf16 %v2255_v50, %v2251_v26 }
 0x269   :  { %v2266_v3 = vld [vmem:[#allocation3 + $0x338] sm:$0xff]  ;;  %v3718_v25 = vpack.c.bf16 %v2257_v0, %v2253_v16  ;;  %v3688_v29 = vpack.c.bf16 %v2264_v14, %v2260_v6  ;;  %v2259_v15 = vld [vmem:[#allocation3 + $0x300] sm:$0xff]  ;;  %v2261_v27 = vld [vmem:[#allocation3 + $0x310] sm:$0xff] }
 0x26a   :  { %3683 = vmatpush1.bf16.msra.mxu0 %v3682_v36  ;;  %v2263_v43 = vld [vmem:[#allocation3 + $0x320] sm:$0xff]  ;;  %v3720_v1 = vpack.c.bf16 %v2266_v3, %v2262_v7  ;;  %v2265_v21 = vld [vmem:[#allocation3 + $0x330] sm:$0xff]  ;;  %v2268_v35 = vld [vmem:[#allocation3 + $0x348] sm:$0xff] }
 0x26b   :  { %3715 = vmatpush1.bf16.msra.mxu1 %v3714_v63  ;;  %3685 = vmatprep.subr.bf16.mxu0 %v3684_v41  ;;  %v2272_v55 = vld [vmem:[#allocation3 + $0x368] sm:$0xff]  ;;  %v2270_v20 = vld [vmem:[#allocation3 + $0x358] sm:$0xff]  ;;  %v3690_v5 = vpack.c.bf16 %v2263_v43, %v2259_v15  ;;  %v3722_v30 = vpack.c.bf16 %v2265_v21, %v2261_v27  ;;  %v2267_v47 = vld [vmem:[#allocation3 + $0x340] sm:$0xff] }
 0x26c   :  { %3717 = vmatprep.subr.bf16.mxu1 %v3716_v48  ;;  %v2274_v44 = vld [vmem:[#allocation3 + $0x378] sm:$0xff]  ;;  %v3692_v61 = vpack.c.bf16 %v2272_v55, %v2268_v35  ;;  %v2271_v11 = vld [vmem:[#allocation3 + $0x360] sm:$0xff]  ;;  %v2269_v46 = vld [vmem:[#allocation3 + $0x350] sm:$0xff] }
 0x26d   :  { %v3724_v40 = vpack.c.bf16 %v2274_v44, %v2270_v20  ;;  %v2273_v18 = vld [vmem:[#allocation3 + $0x370] sm:$0xff]  ;;  %v2276_v31 = vld [vmem:[#allocation3 + $0x388] sm:$0xff]  ;;  %v2278_v22 = vld [vmem:[#allocation3 + $0x398] sm:$0xff]  ;;  %v3694_v34 = vpack.c.bf16 %v2271_v11, %v2267_v47 }
 0x26e   :  { %3687 = vmatpush1.bf16.msra.mxu0 %v3686_v51  ;;  %v2280_v57 = vld [vmem:[#allocation3 + $0x3a8] sm:$0xff]  ;;  %v2282_v23 = vld [vmem:[#allocation3 + $0x3b8] sm:$0xff]  ;;  %v3726_v53 = vpack.c.bf16 %v2273_v18, %v2269_v46  ;;  %v2275_v8 = vld [vmem:[#allocation3 + $0x380] sm:$0xff] }
 0x26f   :  { %3719 = vmatpush1.bf16.msra.mxu1 %v3718_v25  ;;  %3689 = vmatprep.subr.bf16.mxu0 %v3688_v29  ;;  %v3696_v36 = vpack.c.bf16 %v2280_v57, %v2276_v31  ;;  %v2279_v37 = vld [vmem:[#allocation3 + $0x3a0] sm:$0xff]  ;;  %v2277_v62 = vld [vmem:[#allocation3 + $0x390] sm:$0xff]  ;;  %v3728_v63 = vpack.c.bf16 %v2282_v23, %v2278_v22  ;;  %v2284_v54 = vld [vmem:[#allocation3 + $0x3c8] sm:$0xff] }
 0x270   :  { %3721 = vmatprep.subr.bf16.mxu1 %v3720_v1  ;;  %v2281_v41 = vld [vmem:[#allocation3 + $0x3b0] sm:$0xff]  ;;  %v2288_v26 = vld [vmem:[#allocation3 + $0x3e8] sm:$0xff]  ;;  %v2286_v50 = vld [vmem:[#allocation3 + $0x3d8] sm:$0xff]  ;;  %v3698_v16 = vpack.c.bf16 %v2279_v37, %v2275_v8 }
 0x271   :  { %v2290_v48 = vld [vmem:[#allocation3 + $0x3f8] sm:$0xff]  ;;  %v3730_v0 = vpack.c.bf16 %v2281_v41, %v2277_v62  ;;  %v3700_v6 = vpack.c.bf16 %v2288_v26, %v2284_v54  ;;  %v2283_v14 = vld [vmem:[#allocation3 + $0x3c0] sm:$0xff]  ;;  %v2285_v51 = vld [vmem:[#allocation3 + $0x3d0] sm:$0xff] }
 0x272   :  { %3691 = vmatpush1.bf16.msra.mxu0 %v3690_v5  ;;  %v2287_v7 = vld [vmem:[#allocation3 + $0x3e0] sm:$0xff]  ;;  %v3732_v3 = vpack.c.bf16 %v2290_v48, %v2286_v50  ;;  %v2289_v25 = vld [vmem:[#allocation3 + $0x3f0] sm:$0xff] }
 0x273   :  { %3723 = vmatpush1.bf16.msra.mxu1 %v3722_v30  ;;  %3693 = vmatprep.subr.bf16.mxu0 %v3692_v61  ;;  %v3702_v29 = vpack.c.bf16 %v2287_v7, %v2283_v14  ;;  %v3734_v15 = vpack.c.bf16 %v2289_v25, %v2285_v51 }
 0x274   :  { %3725 = vmatprep.subr.bf16.mxu1 %v3724_v40 }
 0x276   :  { %3695 = vmatpush1.bf16.msra.mxu0 %v3694_v34 }
 0x277   :  { %3727 = vmatpush1.bf16.msra.mxu1 %v3726_v53  ;;  %3697 = vmatprep.subr.bf16.mxu0 %v3696_v36 }
 0x278   :  { %3729 = vmatprep.subr.bf16.mxu1 %v3728_v63 }
 0x27a   :  { %3699 = vmatpush1.bf16.msra.mxu0 %v3698_v16 }
 0x27b   :  { %3731 = vmatpush1.bf16.msra.mxu1 %v3730_v0  ;;  %3701 = vmatprep.subr.bf16.mxu0 %v3700_v6 }
 0x27c   :  { %3733 = vmatprep.subr.bf16.mxu1 %v3732_v3 }
 0x27e   :  { %3703 = vmatpush1.bf16.msra.mxu0 %v3702_v29 }
 0x27f   :  { %3735 = vmatpush1.bf16.msra.mxu1 %v3734_v15 }
 0x281   :  { %2356 = vmatmul.mubr.f32.vlgmr.msra.gmra.mrb[14].mxu0 %v5192_v39 }
 0x282   :  { %2463 = vmatmul.mubr.f32.vlgmr.msra.gmra.mrb[14].mxu1 %v5192_v39  ;;  %2361 = vmatprep.mubr.f32.mxu0 %v4100_v45 }
 0x283   :  { %2468 = vmatprep.mubr.f32.mxu1 %v4100_v45 }
 0x285   :  { %2362 = vmatmul.mubr.f32.gmra.mrb[16].mxu0 %v5200_v9 }
 0x286   :  { %2469 = vmatmul.mubr.f32.gmra.mrb[16].mxu1 %v5200_v9  ;;  %2367 = vmatprep.mubr.f32.mxu0 %v4100_v45 }
 0x287   :  { %2474 = vmatprep.mubr.f32.mxu1 %v4100_v45 }
 0x289   :  { %2368 = vmatmul.mubr.f32.gmra.mrb[18].mxu0 %v5208_v24 }
 0x28a   :  { %2475 = vmatmul.mubr.f32.gmra.mrb[18].mxu1 %v5208_v24  ;;  %2373 = vmatprep.mubr.f32.mxu0 %v4100_v45 }
 0x28b   :  { %2480 = vmatprep.mubr.f32.mxu1 %v4100_v45 }
 0x28d   :  { %2374 = vmatmul.mubr.f32.gmra.mrb[20].mxu0 %v5216_v28 }
 0x28e   :  { %2481 = vmatmul.mubr.f32.gmra.mrb[20].mxu1 %v5216_v28  ;;  %2379 = vmatprep.mubr.f32.mxu0 %v4100_v45 }
 0x28f   :  { %2486 = vmatprep.mubr.f32.mxu1 %v4100_v45 }
 0x291   :  { %2380 = vmatmul.mubr.f32.gmra.mrb[22].mxu0 %v5224_v58 }
 0x292   :  { %2487 = vmatmul.mubr.f32.gmra.mrb[22].mxu1 %v5224_v58  ;;  %2385 = vmatprep.mubr.f32.mxu0 %v4100_v45 }
 0x293   :  { %2492 = vmatprep.mubr.f32.mxu1 %v4100_v45 }
 0x295   :  { %2386 = vmatmul.mubr.f32.gmra.mrb[24].mxu0 %v5232_v32 }
 0x296   :  { %2493 = vmatmul.mubr.f32.gmra.mrb[24].mxu1 %v5232_v32  ;;  %2391 = vmatprep.mubr.f32.mxu0 %v4100_v45 }
 0x297   :  { %2498 = vmatprep.mubr.f32.mxu1 %v4100_v45 }
 0x299   :  { %2392 = vmatmul.mubr.f32.gmra.mrb[26].mxu0 %v5240_v13 }
 0x29a   :  { %2499 = vmatmul.mubr.f32.gmra.mrb[26].mxu1 %v5240_v13 }
 0x29b   :  { %4091 = dma.done.wait [#allocation4 + $0x2], 8192 }
 0x29c   :  { %4092 = vsyncadd [#allocation4 + $0x2], 4294959104  ;;  %2719 = vmatprep.mubr.f32.mxu0 %v4100_v45  ;;  %2826 = vmatprep.mubr.f32.mxu1 %v4100_v45  ;;  %v2592_v39 = vld [vmem:[#allocation3 + $0x408] sm:$0xff]  ;;  %v2594_v24 = vld [vmem:[#allocation3 + $0x418] sm:$0xff] }
 0x29d   :  { %v2596_v9 = vld [vmem:[#allocation3 + $0x428] sm:$0xff]  ;;  %v2598_v58 = vld [vmem:[#allocation3 + $0x438] sm:$0xff]  ;;  %v2591_v32 = vld [vmem:[#allocation3 + $0x400] sm:$0xff] }
 0x29e   :  { %v3736_v28 = vpack.c.bf16 %v2596_v9, %v2592_v39  ;;  %v2595_v43 = vld [vmem:[#allocation3 + $0x420] sm:$0xff]  ;;  %v3768_v27 = vpack.c.bf16 %v2598_v58, %v2594_v24  ;;  %v2593_v21 = vld [vmem:[#allocation3 + $0x410] sm:$0xff]  ;;  %v2600_v55 = vld [vmem:[#allocation3 + $0x448] sm:$0xff] }
 0x29f   :  { %v3738_v1 = vpack.c.bf16 %v2595_v43, %v2591_v32  ;;  %v2597_v35 = vld [vmem:[#allocation3 + $0x430] sm:$0xff]  ;;  %v2604_v20 = vld [vmem:[#allocation3 + $0x468] sm:$0xff]  ;;  %v2602_v44 = vld [vmem:[#allocation3 + $0x458] sm:$0xff] }
 0x2a0   :  { %3737 = vmatprep.subr.bf16.mxu0 %v3736_v28  ;;  %v3770_v13 = vpack.c.bf16 %v2597_v35, %v2593_v21  ;;  %v2606_v5 = vld [vmem:[#allocation3 + $0x478] sm:$0xff]  ;;  %3769 = vmatprep.subr.bf16.mxu1 %v3768_v27  ;;  %v3740_v30 = vpack.c.bf16 %v2604_v20, %v2600_v55  ;;  %v2599_v47 = vld [vmem:[#allocation3 + $0x440] sm:$0xff]  ;;  %v2601_v46 = vld [vmem:[#allocation3 + $0x450] sm:$0xff] }
 0x2a1   :  { %3739 = vmatpush1.bf16.msra.mxu0 %v3738_v1  ;;  %v3772_v61 = vpack.c.bf16 %v2606_v5, %v2602_v44  ;;  %v2603_v11 = vld [vmem:[#allocation3 + $0x460] sm:$0xff]  ;;  %v2605_v18 = vld [vmem:[#allocation3 + $0x470] sm:$0xff]  ;;  %v2608_v31 = vld [vmem:[#allocation3 + $0x488] sm:$0xff] }
 0x2a2   :  { %3771 = vmatpush1.bf16.msra.mxu1 %v3770_v13  ;;  %v3742_v40 = vpack.c.bf16 %v2603_v11, %v2599_v47  ;;  %v2612_v57 = vld [vmem:[#allocation3 + $0x4a8] sm:$0xff]  ;;  %3741 = vmatprep.subr.bf16.mxu0 %v3740_v30  ;;  %v3774_v22 = vpack.c.bf16 %v2605_v18, %v2601_v46  ;;  %v2610_v34 = vld [vmem:[#allocation3 + $0x498] sm:$0xff]  ;;  %v2607_v36 = vld [vmem:[#allocation3 + $0x480] sm:$0xff] }
 0x2a3   :  { %3773 = vmatprep.subr.bf16.mxu1 %v3772_v61  ;;  %v3744_v23 = vpack.c.bf16 %v2612_v57, %v2608_v31  ;;  %v2614_v53 = vld [vmem:[#allocation3 + $0x4b8] sm:$0xff]  ;;  %v2611_v37 = vld [vmem:[#allocation3 + $0x4a0] sm:$0xff]  ;;  %v2609_v62 = vld [vmem:[#allocation3 + $0x490] sm:$0xff] }
 0x2a4   :  { %v3776_v8 = vpack.c.bf16 %v2614_v53, %v2610_v34  ;;  %v2613_v63 = vld [vmem:[#allocation3 + $0x4b0] sm:$0xff]  ;;  %v3746_v41 = vpack.c.bf16 %v2611_v37, %v2607_v36  ;;  %v2616_v54 = vld [vmem:[#allocation3 + $0x4c8] sm:$0xff]  ;;  %v2618_v50 = vld [vmem:[#allocation3 + $0x4d8] sm:$0xff] }
 0x2a5   :  { %3743 = vmatpush1.bf16.msra.mxu0 %v3742_v40  ;;  %v2620_v26 = vld [vmem:[#allocation3 + $0x4e8] sm:$0xff]  ;;  %v3778_v48 = vpack.c.bf16 %v2613_v63, %v2609_v62  ;;  %v2622_v0 = vld [vmem:[#allocation3 + $0x4f8] sm:$0xff]  ;;  %v2615_v6 = vld [vmem:[#allocation3 + $0x4c0] sm:$0xff] }
 0x2a6   :  { %3775 = vmatpush1.bf16.msra.mxu1 %v3774_v22  ;;  %3745 = vmatprep.subr.bf16.mxu0 %v3744_v23  ;;  %v3748_v16 = vpack.c.bf16 %v2620_v26, %v2616_v54  ;;  %v2619_v14 = vld [vmem:[#allocation3 + $0x4e0] sm:$0xff]  ;;  %v3780_v7 = vpack.c.bf16 %v2622_v0, %v2618_v50  ;;  %v2617_v3 = vld [vmem:[#allocation3 + $0x4d0] sm:$0xff]  ;;  %v2624_v25 = vld [vmem:[#allocation3 + $0x508] sm:$0xff] }
 0x2a7   :  { %3777 = vmatprep.subr.bf16.mxu1 %v3776_v8  ;;  %v2621_v51 = vld [vmem:[#allocation3 + $0x4f0] sm:$0xff]  ;;  %v2628_v29 = vld [vmem:[#allocation3 + $0x528] sm:$0xff]  ;;  %v2626_v15 = vld [vmem:[#allocation3 + $0x518] sm:$0xff]  ;;  %v3750_v9 = vpack.c.bf16 %v2619_v14, %v2615_v6 }
 0x2a8   :  { %v2630_v39 = vld [vmem:[#allocation3 + $0x538] sm:$0xff]  ;;  %v3782_v24 = vpack.c.bf16 %v2621_v51, %v2617_v3  ;;  %v3752_v28 = vpack.c.bf16 %v2628_v29, %v2624_v25  ;;  %v2623_v58 = vld [vmem:[#allocation3 + $0x500] sm:$0xff]  ;;  %v2625_v43 = vld [vmem:[#allocation3 + $0x510] sm:$0xff] }
 0x2a9   :  { %3747 = vmatpush1.bf16.msra.mxu0 %v3746_v41  ;;  %v2627_v32 = vld [vmem:[#allocation3 + $0x520] sm:$0xff]  ;;  %v3784_v27 = vpack.c.bf16 %v2630_v39, %v2626_v15  ;;  %v2629_v1 = vld [vmem:[#allocation3 + $0x530] sm:$0xff]  ;;  %v2632_v21 = vld [vmem:[#allocation3 + $0x548] sm:$0xff] }
 0x2aa   :  { %3779 = vmatpush1.bf16.msra.mxu1 %v3778_v48  ;;  %3749 = vmatprep.subr.bf16.mxu0 %v3748_v16  ;;  %v2636_v35 = vld [vmem:[#allocation3 + $0x568] sm:$0xff]  ;;  %v2634_v55 = vld [vmem:[#allocation3 + $0x558] sm:$0xff]  ;;  %v3754_v20 = vpack.c.bf16 %v2627_v32, %v2623_v58  ;;  %v3786_v44 = vpack.c.bf16 %v2629_v1, %v2625_v43  ;;  %v2631_v30 = vld [vmem:[#allocation3 + $0x540] sm:$0xff] }
 0x2ab   :  { %3781 = vmatprep.subr.bf16.mxu1 %v3780_v7  ;;  %v2638_v13 = vld [vmem:[#allocation3 + $0x578] sm:$0xff]  ;;  %v3756_v5 = vpack.c.bf16 %v2636_v35, %v2632_v21  ;;  %v2635_v61 = vld [vmem:[#allocation3 + $0x560] sm:$0xff]  ;;  %v2633_v47 = vld [vmem:[#allocation3 + $0x550] sm:$0xff] }
 0x2ac   :  { %v3788_v11 = vpack.c.bf16 %v2638_v13, %v2634_v55  ;;  %v2637_v46 = vld [vmem:[#allocation3 + $0x570] sm:$0xff]  ;;  %v2640_v40 = vld [vmem:[#allocation3 + $0x588] sm:$0xff]  ;;  %v2642_v31 = vld [vmem:[#allocation3 + $0x598] sm:$0xff]  ;;  %v3758_v22 = vpack.c.bf16 %v2635_v61, %v2631_v30 }
 0x2ad   :  { %3751 = vmatpush1.bf16.msra.mxu0 %v3750_v9  ;;  %v2644_v18 = vld [vmem:[#allocation3 + $0x5a8] sm:$0xff]  ;;  %v2646_v57 = vld [vmem:[#allocation3 + $0x5b8] sm:$0xff]  ;;  %v3790_v23 = vpack.c.bf16 %v2637_v46, %v2633_v47  ;;  %v2639_v53 = vld [vmem:[#allocation3 + $0x580] sm:$0xff] }
 0x2ae   :  { %3783 = vmatpush1.bf16.msra.mxu1 %v3782_v24  ;;  %3753 = vmatprep.subr.bf16.mxu0 %v3752_v28  ;;  %v3760_v34 = vpack.c.bf16 %v2644_v18, %v2640_v40  ;;  %v2643_v36 = vld [vmem:[#allocation3 + $0x5a0] sm:$0xff]  ;;  %v2641_v8 = vld [vmem:[#allocation3 + $0x590] sm:$0xff]  ;;  %v3792_v37 = vpack.c.bf16 %v2646_v57, %v2642_v31  ;;  %v2648_v63 = vld [vmem:[#allocation3 + $0x5c8] sm:$0xff] }
 0x2af   :  { %3785 = vmatprep.subr.bf16.mxu1 %v3784_v27  ;;  %v2645_v62 = vld [vmem:[#allocation3 + $0x5b0] sm:$0xff]  ;;  %v2652_v41 = vld [vmem:[#allocation3 + $0x5e8] sm:$0xff]  ;;  %v2650_v54 = vld [vmem:[#allocation3 + $0x5d8] sm:$0xff]  ;;  %v3762_v50 = vpack.c.bf16 %v2643_v36, %v2639_v53 }
 0x2b0   :  { %v2654_v26 = vld [vmem:[#allocation3 + $0x5f8] sm:$0xff]  ;;  %v3794_v48 = vpack.c.bf16 %v2645_v62, %v2641_v8  ;;  %v3764_v16 = vpack.c.bf16 %v2652_v41, %v2648_v63  ;;  %v2647_v0 = vld [vmem:[#allocation3 + $0x5c0] sm:$0xff]  ;;  %v2649_v7 = vld [vmem:[#allocation3 + $0x5d0] sm:$0xff] }
 0x2b1   :  { %3755 = vmatpush1.bf16.msra.mxu0 %v3754_v20  ;;  %v2651_v6 = vld [vmem:[#allocation3 + $0x5e0] sm:$0xff]  ;;  %v3796_v14 = vpack.c.bf16 %v2654_v26, %v2650_v54  ;;  %v2653_v3 = vld [vmem:[#allocation3 + $0x5f0] sm:$0xff] }
 0x2b2   :  { %3787 = vmatpush1.bf16.msra.mxu1 %v3786_v44  ;;  %3757 = vmatprep.subr.bf16.mxu0 %v3756_v5  ;;  %v3766_v51 = vpack.c.bf16 %v2651_v6, %v2647_v0  ;;  %v3798_v25 = vpack.c.bf16 %v2653_v3, %v2649_v7 }
 0x2b3   :  { %3789 = vmatprep.subr.bf16.mxu1 %v3788_v11 }
 0x2b5   :  { %3759 = vmatpush1.bf16.msra.mxu0 %v3758_v22 }
 0x2b6   :  { %3791 = vmatpush1.bf16.msra.mxu1 %v3790_v23  ;;  %3761 = vmatprep.subr.bf16.mxu0 %v3760_v34 }
 0x2b7   :  { %3793 = vmatprep.subr.bf16.mxu1 %v3792_v37 }
 0x2b9   :  { %3763 = vmatpush1.bf16.msra.mxu0 %v3762_v50 }
 0x2ba   :  { %3795 = vmatpush1.bf16.msra.mxu1 %v3794_v48  ;;  %3765 = vmatprep.subr.bf16.mxu0 %v3764_v16 }
 0x2bb   :  { %3797 = vmatprep.subr.bf16.mxu1 %v3796_v14 }
 0x2bd   :  { %3767 = vmatpush1.bf16.msra.mxu0 %v3766_v51 }
 0x2be   :  { %3799 = vmatpush1.bf16.msra.mxu1 %v3798_v25 }
 0x2c0   :  { %2720 = vmatmul.mubr.f32.vlgmr.msra.gmra.mrb[14].mxu0 %v5194_v59 }
 0x2c1   :  { %2827 = vmatmul.mubr.f32.vlgmr.msra.gmra.mrb[14].mxu1 %v5194_v59  ;;  %2725 = vmatprep.mubr.f32.mxu0 %v4100_v45 }
 0x2c2   :  { %2832 = vmatprep.mubr.f32.mxu1 %v4100_v45 }
 0x2c4   :  { %2726 = vmatmul.mubr.f32.gmra.mrb[16].mxu0 %v5202_v42 }
 0x2c5   :  { %2833 = vmatmul.mubr.f32.gmra.mrb[16].mxu1 %v5202_v42  ;;  %2731 = vmatprep.mubr.f32.mxu0 %v4100_v45 }
 0x2c6   :  { %2838 = vmatprep.mubr.f32.mxu1 %v4100_v45 }
 0x2c8   :  { %2732 = vmatmul.mubr.f32.gmra.mrb[18].mxu0 %v5210_v17 }
 0x2c9   :  { %2839 = vmatmul.mubr.f32.gmra.mrb[18].mxu1 %v5210_v17  ;;  %2737 = vmatprep.mubr.f32.mxu0 %v4100_v45 }
 0x2ca   :  { %2844 = vmatprep.mubr.f32.mxu1 %v4100_v45 }
 0x2cc   :  { %2738 = vmatmul.mubr.f32.gmra.mrb[20].mxu0 %v5218_v49 }
 0x2cd   :  { %2845 = vmatmul.mubr.f32.gmra.mrb[20].mxu1 %v5218_v49  ;;  %2743 = vmatprep.mubr.f32.mxu0 %v4100_v45 }
 0x2ce   :  { %2850 = vmatprep.mubr.f32.mxu1 %v4100_v45 }
 0x2d0   :  { %2744 = vmatmul.mubr.f32.gmra.mrb[22].mxu0 %v5226_v2 }
 0x2d1   :  { %2851 = vmatmul.mubr.f32.gmra.mrb[22].mxu1 %v5226_v2  ;;  %2749 = vmatprep.mubr.f32.mxu0 %v4100_v45 }
 0x2d2   :  { %2856 = vmatprep.mubr.f32.mxu1 %v4100_v45 }
 0x2d4   :  { %2750 = vmatmul.mubr.f32.gmra.mrb[24].mxu0 %v5234_v52 }
 0x2d5   :  { %2857 = vmatmul.mubr.f32.gmra.mrb[24].mxu1 %v5234_v52  ;;  %2755 = vmatprep.mubr.f32.mxu0 %v4100_v45 }
 0x2d6   :  { %2862 = vmatprep.mubr.f32.mxu1 %v4100_v45 }
 0x2d8   :  { %2756 = vmatmul.mubr.f32.gmra.mrb[26].mxu0 %v5242_v38 }
 0x2d9   :  { %2863 = vmatmul.mubr.f32.gmra.mrb[26].mxu1 %v5242_v38 }
 0x2da   :  { %4093 = dma.done.wait [#allocation4 + $0x3], 8192 }
 0x2db   :  { %4094 = vsyncadd [#allocation4 + $0x3], 4294959104  ;;  %3083 = vmatprep.mubr.f32.mxu0 %v4100_v45  ;;  %3190 = vmatprep.mubr.f32.mxu1 %v4100_v45  ;;  %v2956_v59 = vld [vmem:[#allocation3 + $0x608] sm:$0xff]  ;;  %v2958_v17 = vld [vmem:[#allocation3 + $0x618] sm:$0xff] }
 0x2dc   :  { %v2960_v42 = vld [vmem:[#allocation3 + $0x628] sm:$0xff]  ;;  %v2962_v2 = vld [vmem:[#allocation3 + $0x638] sm:$0xff]  ;;  %v2955_v52 = vld [vmem:[#allocation3 + $0x600] sm:$0xff] }
 0x2dd   :  { %v3800_v49 = vpack.c.bf16 %v2960_v42, %v2956_v59  ;;  %v2959_v29 = vld [vmem:[#allocation3 + $0x620] sm:$0xff]  ;;  %v3832_v15 = vpack.c.bf16 %v2962_v2, %v2958_v17  ;;  %v2957_v9 = vld [vmem:[#allocation3 + $0x610] sm:$0xff]  ;;  %v2964_v28 = vld [vmem:[#allocation3 + $0x648] sm:$0xff] }
 0x2de   :  { %v3802_v39 = vpack.c.bf16 %v2959_v29, %v2955_v52  ;;  %v2961_v24 = vld [vmem:[#allocation3 + $0x630] sm:$0xff]  ;;  %v2968_v58 = vld [vmem:[#allocation3 + $0x668] sm:$0xff]  ;;  %v2966_v32 = vld [vmem:[#allocation3 + $0x658] sm:$0xff] }
 0x2df   :  { %3801 = vmatprep.subr.bf16.mxu0 %v3800_v49  ;;  %v3834_v38 = vpack.c.bf16 %v2961_v24, %v2957_v9  ;;  %v2970_v43 = vld [vmem:[#allocation3 + $0x678] sm:$0xff]  ;;  %3833 = vmatprep.subr.bf16.mxu1 %v3832_v15  ;;  %v3804_v27 = vpack.c.bf16 %v2968_v58, %v2964_v28  ;;  %v2963_v21 = vld [vmem:[#allocation3 + $0x640] sm:$0xff]  ;;  %v2965_v55 = vld [vmem:[#allocation3 + $0x650] sm:$0xff] }
 0x2e0   :  { %3803 = vmatpush1.bf16.msra.mxu0 %v3802_v39  ;;  %v3836_v1 = vpack.c.bf16 %v2970_v43, %v2966_v32  ;;  %v2967_v35 = vld [vmem:[#allocation3 + $0x660] sm:$0xff]  ;;  %v2969_v20 = vld [vmem:[#allocation3 + $0x670] sm:$0xff]  ;;  %v2972_v44 = vld [vmem:[#allocation3 + $0x688] sm:$0xff] }
 0x2e1   :  { %3835 = vmatpush1.bf16.msra.mxu1 %v3834_v38  ;;  %v3806_v13 = vpack.c.bf16 %v2967_v35, %v2963_v21  ;;  %v2976_v5 = vld [vmem:[#allocation3 + $0x6a8] sm:$0xff]  ;;  %3805 = vmatprep.subr.bf16.mxu0 %v3804_v27  ;;  %v3838_v30 = vpack.c.bf16 %v2969_v20, %v2965_v55  ;;  %v2974_v47 = vld [vmem:[#allocation3 + $0x698] sm:$0xff]  ;;  %v2971_v46 = vld [vmem:[#allocation3 + $0x680] sm:$0xff] }
 0x2e2   :  { %3837 = vmatprep.subr.bf16.mxu1 %v3836_v1  ;;  %v3808_v61 = vpack.c.bf16 %v2976_v5, %v2972_v44  ;;  %v2978_v11 = vld [vmem:[#allocation3 + $0x6b8] sm:$0xff]  ;;  %v2975_v18 = vld [vmem:[#allocation3 + $0x6a0] sm:$0xff]  ;;  %v2973_v31 = vld [vmem:[#allocation3 + $0x690] sm:$0xff] }
 0x2e3   :  { %v3840_v40 = vpack.c.bf16 %v2978_v11, %v2974_v47  ;;  %v2977_v57 = vld [vmem:[#allocation3 + $0x6b0] sm:$0xff]  ;;  %v3810_v22 = vpack.c.bf16 %v2975_v18, %v2971_v46  ;;  %v2980_v23 = vld [vmem:[#allocation3 + $0x6c8] sm:$0xff]  ;;  %v2982_v53 = vld [vmem:[#allocation3 + $0x6d8] sm:$0xff] }
 0x2e4   :  { %3807 = vmatpush1.bf16.msra.mxu0 %v3806_v13  ;;  %v2984_v34 = vld [vmem:[#allocation3 + $0x6e8] sm:$0xff]  ;;  %v3842_v36 = vpack.c.bf16 %v2977_v57, %v2973_v31  ;;  %v2986_v37 = vld [vmem:[#allocation3 + $0x6f8] sm:$0xff]  ;;  %v2979_v62 = vld [vmem:[#allocation3 + $0x6c0] sm:$0xff] }
 0x2e5   :  { %3839 = vmatpush1.bf16.msra.mxu1 %v3838_v30  ;;  %3809 = vmatprep.subr.bf16.mxu0 %v3808_v61  ;;  %v3812_v8 = vpack.c.bf16 %v2984_v34, %v2980_v23  ;;  %v2983_v63 = vld [vmem:[#allocation3 + $0x6e0] sm:$0xff]  ;;  %v3844_v41 = vpack.c.bf16 %v2986_v37, %v2982_v53  ;;  %v2981_v54 = vld [vmem:[#allocation3 + $0x6d0] sm:$0xff]  ;;  %v2988_v50 = vld [vmem:[#allocation3 + $0x708] sm:$0xff] }
 0x2e6   :  { %3841 = vmatprep.subr.bf16.mxu1 %v3840_v40  ;;  %v2985_v26 = vld [vmem:[#allocation3 + $0x6f0] sm:$0xff]  ;;  %v2992_v48 = vld [vmem:[#allocation3 + $0x728] sm:$0xff]  ;;  %v2990_v16 = vld [vmem:[#allocation3 + $0x718] sm:$0xff]  ;;  %v3814_v6 = vpack.c.bf16 %v2983_v63, %v2979_v62 }
 0x2e7   :  { %v2994_v0 = vld [vmem:[#allocation3 + $0x738] sm:$0xff]  ;;  %v3846_v14 = vpack.c.bf16 %v2985_v26, %v2981_v54  ;;  %v3816_v7 = vpack.c.bf16 %v2992_v48, %v2988_v50  ;;  %v2987_v3 = vld [vmem:[#allocation3 + $0x700] sm:$0xff]  ;;  %v2989_v25 = vld [vmem:[#allocation3 + $0x710] sm:$0xff] }
 0x2e8   :  { %3811 = vmatpush1.bf16.msra.mxu0 %v3810_v22  ;;  %v2991_v51 = vld [vmem:[#allocation3 + $0x720] sm:$0xff]  ;;  %v3848_v59 = vpack.c.bf16 %v2994_v0, %v2990_v16  ;;  %v2993_v42 = vld [vmem:[#allocation3 + $0x730] sm:$0xff]  ;;  %v2996_v17 = vld [vmem:[#allocation3 + $0x748] sm:$0xff] }
 0x2e9   :  { %3843 = vmatpush1.bf16.msra.mxu1 %v3842_v36  ;;  %3813 = vmatprep.subr.bf16.mxu0 %v3812_v8  ;;  %v3000_v49 = vld [vmem:[#allocation3 + $0x768] sm:$0xff]  ;;  %v2998_v2 = vld [vmem:[#allocation3 + $0x758] sm:$0xff]  ;;  %v3818_v29 = vpack.c.bf16 %v2991_v51, %v2987_v3  ;;  %v3850_v15 = vpack.c.bf16 %v2993_v42, %v2989_v25  ;;  %v2995_v9 = vld [vmem:[#allocation3 + $0x740] sm:$0xff] }
 0x2ea   :  { %3845 = vmatprep.subr.bf16.mxu1 %v3844_v41  ;;  %v3002_v52 = vld [vmem:[#allocation3 + $0x778] sm:$0xff]  ;;  %v3820_v39 = vpack.c.bf16 %v3000_v49, %v2996_v17  ;;  %v2999_v24 = vld [vmem:[#allocation3 + $0x760] sm:$0xff]  ;;  %v2997_v28 = vld [vmem:[#allocation3 + $0x750] sm:$0xff] }
 0x2eb   :  { %v3852_v38 = vpack.c.bf16 %v3002_v52, %v2998_v2  ;;  %v3001_v58 = vld [vmem:[#allocation3 + $0x770] sm:$0xff]  ;;  %v3004_v32 = vld [vmem:[#allocation3 + $0x788] sm:$0xff]  ;;  %v3006_v27 = vld [vmem:[#allocation3 + $0x798] sm:$0xff]  ;;  %v3822_v21 = vpack.c.bf16 %v2999_v24, %v2995_v9 }
 0x2ec   :  { %3815 = vmatpush1.bf16.msra.mxu0 %v3814_v6  ;;  %v3008_v43 = vld [vmem:[#allocation3 + $0x7a8] sm:$0xff]  ;;  %v3010_v1 = vld [vmem:[#allocation3 + $0x7b8] sm:$0xff]  ;;  %v3854_v35 = vpack.c.bf16 %v3001_v58, %v2997_v28  ;;  %v3003_v13 = vld [vmem:[#allocation3 + $0x780] sm:$0xff] }
 0x2ed   :  { %3847 = vmatpush1.bf16.msra.mxu1 %v3846_v14  ;;  %3817 = vmatprep.subr.bf16.mxu0 %v3816_v7  ;;  %v3824_v55 = vpack.c.bf16 %v3008_v43, %v3004_v32  ;;  %v3007_v20 = vld [vmem:[#allocation3 + $0x7a0] sm:$0xff]  ;;  %v3005_v44 = vld [vmem:[#allocation3 + $0x790] sm:$0xff]  ;;  %v3856_v5 = vpack.c.bf16 %v3010_v1, %v3006_v27  ;;  %v3012_v61 = vld [vmem:[#allocation3 + $0x7c8] sm:$0xff] }
 0x2ee   :  { %3849 = vmatprep.subr.bf16.mxu1 %v3848_v59  ;;  %v3009_v30 = vld [vmem:[#allocation3 + $0x7b0] sm:$0xff]  ;;  %v3016_v47 = vld [vmem:[#allocation3 + $0x7e8] sm:$0xff]  ;;  %v3014_v11 = vld [vmem:[#allocation3 + $0x7d8] sm:$0xff]  ;;  %v3826_v40 = vpack.c.bf16 %v3007_v20, %v3003_v13 }
 0x2ef   :  { %v3018_v46 = vld [vmem:[#allocation3 + $0x7f8] sm:$0xff]  ;;  %v3858_v18 = vpack.c.bf16 %v3009_v30, %v3005_v44  ;;  %v3828_v31 = vpack.c.bf16 %v3016_v47, %v3012_v61  ;;  %v3011_v57 = vld [vmem:[#allocation3 + $0x7c0] sm:$0xff]  ;;  %v3013_v34 = vld [vmem:[#allocation3 + $0x7d0] sm:$0xff] }
 0x2f0   :  { %3819 = vmatpush1.bf16.msra.mxu0 %v3818_v29  ;;  %v3015_v22 = vld [vmem:[#allocation3 + $0x7e0] sm:$0xff]  ;;  %v3860_v23 = vpack.c.bf16 %v3018_v46, %v3014_v11  ;;  %v3017_v53 = vld [vmem:[#allocation3 + $0x7f0] sm:$0xff] }
 0x2f1   :  { %3851 = vmatpush1.bf16.msra.mxu1 %v3850_v15  ;;  %3821 = vmatprep.subr.bf16.mxu0 %v3820_v39  ;;  %v3830_v36 = vpack.c.bf16 %v3015_v22, %v3011_v57  ;;  %v3862_v8 = vpack.c.bf16 %v3017_v53, %v3013_v34 }
 0x2f2   :  { %3853 = vmatprep.subr.bf16.mxu1 %v3852_v38 }
 0x2f4   :  { %3823 = vmatpush1.bf16.msra.mxu0 %v3822_v21 }
 0x2f5   :  { %3855 = vmatpush1.bf16.msra.mxu1 %v3854_v35  ;;  %3825 = vmatprep.subr.bf16.mxu0 %v3824_v55 }
 0x2f6   :  { %3857 = vmatprep.subr.bf16.mxu1 %v3856_v5 }
 0x2f8   :  { %3827 = vmatpush1.bf16.msra.mxu0 %v3826_v40 }
 0x2f9   :  { %3859 = vmatpush1.bf16.msra.mxu1 %v3858_v18  ;;  %3829 = vmatprep.subr.bf16.mxu0 %v3828_v31 }
 0x2fa   :  { %3861 = vmatprep.subr.bf16.mxu1 %v3860_v23 }
 0x2fc   :  { %3831 = vmatpush1.bf16.msra.mxu0 %v3830_v36 }
 0x2fd   :  { %3863 = vmatpush1.bf16.msra.mxu1 %v3862_v8 }
 0x2ff   :  { %3084 = vmatmul.mubr.f32.vlgmr.msra.gmra.mrb[14].mxu0 %v5196_v4 }
 0x300   :  { %3191 = vmatmul.mubr.f32.vlgmr.msra.gmra.mrb[14].mxu1 %v5196_v4  ;;  %3089 = vmatprep.mubr.f32.mxu0 %v4100_v45 }
 0x301   :  { %3196 = vmatprep.mubr.f32.mxu1 %v4100_v45 }
 0x303   :  { %3090 = vmatmul.mubr.f32.gmra.mrb[16].mxu0 %v5204_v19 }
 0x304   :  { %3197 = vmatmul.mubr.f32.gmra.mrb[16].mxu1 %v5204_v19  ;;  %3095 = vmatprep.mubr.f32.mxu0 %v4100_v45 }
 0x305   :  { %3202 = vmatprep.mubr.f32.mxu1 %v4100_v45 }
 0x307   :  { %3096 = vmatmul.mubr.f32.gmra.mrb[18].mxu0 %v5212_v12 }
 0x308   :  { %3203 = vmatmul.mubr.f32.gmra.mrb[18].mxu1 %v5212_v12  ;;  %3101 = vmatprep.mubr.f32.mxu0 %v4100_v45 }
 0x309   :  { %3208 = vmatprep.mubr.f32.mxu1 %v4100_v45 }
 0x30b   :  { %3102 = vmatmul.mubr.f32.gmra.mrb[20].mxu0 %v5220_v56 }
 0x30c   :  { %3209 = vmatmul.mubr.f32.gmra.mrb[20].mxu1 %v5220_v56  ;;  %3107 = vmatprep.mubr.f32.mxu0 %v4100_v45 }
 0x30d   :  { %3214 = vmatprep.mubr.f32.mxu1 %v4100_v45 }
 0x30f   :  { %3108 = vmatmul.mubr.f32.gmra.mrb[22].mxu0 %v5228_v10 }
 0x310   :  { %3215 = vmatmul.mubr.f32.gmra.mrb[22].mxu1 %v5228_v10  ;;  %3113 = vmatprep.mubr.f32.mxu0 %v4100_v45 }
 0x311   :  { %3220 = vmatprep.mubr.f32.mxu1 %v4100_v45 }
 0x313   :  { %3114 = vmatmul.mubr.f32.gmra.mrb[24].mxu0 %v5236_v60 }
 0x314   :  { %3221 = vmatmul.mubr.f32.gmra.mrb[24].mxu1 %v5236_v60  ;;  %3119 = vmatprep.mubr.f32.mxu0 %v4100_v45 }
 0x315   :  { %3226 = vmatprep.mubr.f32.mxu1 %v4100_v45 }
 0x317   :  { %3120 = vmatmul.mubr.f32.gmra.mrb[26].mxu0 %v5244_v33 }
 0x318   :  { %3227 = vmatmul.mubr.f32.gmra.mrb[26].mxu1 %v5244_v33 }
 0x3d2   :  { %v3085_v4 = vpop.f32.mrb[14].mxu0 }
 0x3d3   :  { %3289 = vst [vmem:[%s5446_s6] sm:$0xff] %v3085_v4  ;;  %v3192_v19 = vpop.f32.mrb[14].mxu1  ;;  %v3087_v12 = vpop.f32.mrb[15].mxu0 }
 0x3d4   :  { %3291 = vst [vmem:[%s5446_s6 + $0x10] sm:$0xff] %v3192_v19  ;;  %3290 = vst [vmem:[%s5446_s6 + $0x8] sm:$0xff] %v3087_v12  ;;  %v3194_v56 = vpop.f32.mrb[15].mxu1 }
 0x3d5   :  { %3292 = vst [vmem:[%s5446_s6 + $0x18] sm:$0xff] %v3194_v56 }
 0x3d6   :  { %v3091_v10 = vpop.f32.mrb[16].mxu0 }
 0x3d7   :  { %3293 = vst [vmem:[%s5446_s6 + $0x20] sm:$0xff] %v3091_v10  ;;  %v3198_v60 = vpop.f32.mrb[16].mxu1  ;;  %v3093_v33 = vpop.f32.mrb[17].mxu0 }
 0x3d8   :  { %3295 = vst [vmem:[%s5446_s6 + $0x30] sm:$0xff] %v3198_v60  ;;  %3294 = vst [vmem:[%s5446_s6 + $0x28] sm:$0xff] %v3093_v33  ;;  %v3200_v45 = vpop.f32.mrb[17].mxu1 }
 0x3d9   :  { %3296 = vst [vmem:[%s5446_s6 + $0x38] sm:$0xff] %v3200_v45 }
 0x3da   :  { %v3097_v37 = vpop.f32.mrb[18].mxu0 }
 0x3db   :  { %3297 = vst [vmem:[%s5446_s6 + $0x40] sm:$0xff] %v3097_v37  ;;  %v3204_v62 = vpop.f32.mrb[18].mxu1  ;;  %v3099_v63 = vpop.f32.mrb[19].mxu0 }
 0x3dc   :  { %3299 = vst [vmem:[%s5446_s6 + $0x50] sm:$0xff] %v3204_v62  ;;  %3298 = vst [vmem:[%s5446_s6 + $0x48] sm:$0xff] %v3099_v63  ;;  %v3206_v41 = vpop.f32.mrb[19].mxu1 }
 0x3dd   :  { %3300 = vst [vmem:[%s5446_s6 + $0x58] sm:$0xff] %v3206_v41 }
 0x3de   :  { %v3103_v54 = vpop.f32.mrb[20].mxu0 }
 0x3df   :  { %3301 = vst [vmem:[%s5446_s6 + $0x60] sm:$0xff] %v3103_v54  ;;  %v3210_v26 = vpop.f32.mrb[20].mxu1  ;;  %v3105_v50 = vpop.f32.mrb[21].mxu0 }
 0x3e0   :  { %3303 = vst [vmem:[%s5446_s6 + $0x70] sm:$0xff] %v3210_v26  ;;  %3302 = vst [vmem:[%s5446_s6 + $0x68] sm:$0xff] %v3105_v50  ;;  %v3212_v48 = vpop.f32.mrb[21].mxu1 }
 0x3e1   :  { %3304 = vst [vmem:[%s5446_s6 + $0x78] sm:$0xff] %v3212_v48 }
 0x3e2   :  { %v3109_v16 = vpop.f32.mrb[22].mxu0 }
 0x3e3   :  { %3305 = vst [vmem:[%s5446_s6 + $0x80] sm:$0xff] %v3109_v16  ;;  %v3216_v0 = vpop.f32.mrb[22].mxu1  ;;  %v3111_v6 = vpop.f32.mrb[23].mxu0 }
 0x3e4   :  { %3307 = vst [vmem:[%s5446_s6 + $0x90] sm:$0xff] %v3216_v0  ;;  %3306 = vst [vmem:[%s5446_s6 + $0x88] sm:$0xff] %v3111_v6  ;;  %v3218_v14 = vpop.f32.mrb[23].mxu1 }
 0x3e5   :  { %3308 = vst [vmem:[%s5446_s6 + $0x98] sm:$0xff] %v3218_v14 }
 0x3e6   :  { %v3115_v7 = vpop.f32.mrb[24].mxu0 }
 0x3e7   :  { %3309 = vst [vmem:[%s5446_s6 + $0xa0] sm:$0xff] %v3115_v7  ;;  %v3222_v3 = vpop.f32.mrb[24].mxu1  ;;  %v3117_v51 = vpop.f32.mrb[25].mxu0 }
 0x3e8   :  { %3311 = vst [vmem:[%s5446_s6 + $0xb0] sm:$0xff] %v3222_v3  ;;  %3310 = vst [vmem:[%s5446_s6 + $0xa8] sm:$0xff] %v3117_v51  ;;  %v3224_v25 = vpop.f32.mrb[25].mxu1 }
 0x3e9   :  { %3312 = vst [vmem:[%s5446_s6 + $0xb8] sm:$0xff] %v3224_v25 }
 0x3ea   :  { %v3121_v59 = vpop.f32.mrb[26].mxu0 }
 0x3eb   :  { %3313 = vst [vmem:[%s5446_s6 + $0xc0] sm:$0xff] %v3121_v59  ;;  %v3228_v42 = vpop.f32.mrb[26].mxu1  ;;  %v3123_v17 = vpop.f32.mrb[27].mxu0 }
 0x3ec   :  { %3315 = vst [vmem:[%s5446_s6 + $0xd0] sm:$0xff] %v3228_v42  ;;  %3314 = vst [vmem:[%s5446_s6 + $0xc8] sm:$0xff] %v3123_v17  ;;  %v3230_v49 = vpop.f32.mrb[27].mxu1 }
 0x3ed   :  { %3316 = vst [vmem:[%s5446_s6 + $0xd8] sm:$0xff] %v3230_v49 }
 0x3ee   :  { %3321 = vsyncmov [#allocation4] }
 0x3f1   :  { %s3322_s5 = vpop.sfrf %3321 }
 0x3f2   :  { %p3356_p9 = scmp.ne.s32.totalorder %s3322_s5, 0 }
 0x3f4   :  { %3326 = shalt.err (%p3356_p9)  }
 0x3f5   :  { %3328 = vsyncmov [#allocation4 + $0x1] }
 0x3f8   :  { %s3329_s24 = vpop.sfrf %3328 }
 0x3f9   :  { %p3357_p4 = scmp.ne.s32.totalorder %s3329_s24, 0 }
 0x3fb   :  { %3333 = shalt.err (%p3357_p4)  }
 0x3fc   :  { %3335 = vsyncmov [#allocation4 + $0x2] }
 0x3ff   :  { %s3336_s3 = vpop.sfrf %3335 }
 0x400   :  { %p3358_p5 = scmp.ne.s32.totalorder %s3336_s3, 0 }
 0x402   :  { %3340 = shalt.err (%p3358_p5)  }
 0x403   :  { %3342 = vsyncmov [#allocation4 + $0x3] }
 0x406   :  { %s3343_s2 = vpop.sfrf %3342 }
 0x407   :  { %p3359_p6 = scmp.ne.s32.totalorder %s3343_s2, 0 }
 0x409   :  { %3347 = shalt.err (%p3359_p6)  }

</bundles_post_ra>
